<compile_context>
chip_gen: v7x
topology: tpu7x:2x2x1
jax: 0.10.0
libtpu: 0.0.40
codegen_flags: <defaults>
</compile_context>

<pallas_src>
import functools

import jax
import jax.numpy as jnp
from jax.experimental import pallas as pl
from jax.experimental.pallas import tpu as pltpu

BN_EPS = 1e-5
LANE = 128
# Row-tile target (multiple of 8): big enough for ~85% of HBM roofline, small
# enough that per-step live bytes stay far below the 32 MiB scoped / 64 MiB
# physical VMEM on v7x (also fine on v5e/v6e).
ROW_TILE = 512
VMEM_LIMIT_BYTES = 32 * 1024 * 1024


# ----------------------------------------------------------------------------
# small helpers
# ----------------------------------------------------------------------------
def _round_up(v, m):
    return -(-v // m) * m


def _pick_tile(total, target=ROW_TILE):
    """Largest multiple-of-8 divisor of `total` that is <= target; else `total`
    (a full-extent block is always a legal block shape)."""
    if total <= target:
        return total
    for t in range(target - target % 8, 7, -8):
        if total % t == 0:
            return t
    return total


def _pad_last(a, to):
    pad = to - a.shape[-1]
    if pad == 0:
        return a
    return jnp.pad(a, [(0, 0)] * (a.ndim - 1) + [(0, pad)])


def _pad_2d(a, rows, cols):
    pr, pc = rows - a.shape[0], cols - a.shape[1]
    if pr == 0 and pc == 0:
        return a
    return jnp.pad(a, ((0, pr), (0, pc)))


# ----------------------------------------------------------------------------
# Kernel 1: BatchNorm batch statistics of h1 = x @ w1 (row-tiled accumulation)
# ----------------------------------------------------------------------------
def _bn_stats_kernel(x_ref, w1_ref, sum_ref, sq_ref, *, matmul_dtype):
    @pl.when(pl.program_id(0) == 0)
    def _():
        sum_ref[...] = jnp.zeros_like(sum_ref)
        sq_ref[...] = jnp.zeros_like(sq_ref)

    x = x_ref[...]                                               # (tile_n, Cp)
    h1 = jnp.dot(x.astype(matmul_dtype), w1_ref[...].astype(matmul_dtype),
                 preferred_element_type=jnp.float32)             # (tile_n, C2p)
    # Row reductions on the MXU (ones @ h1, ones @ h1^2); the 8 output rows are
    # identical broadcasts, row 0 is consumed downstream. f32 accumulation.
    ones = jnp.ones((8, h1.shape[0]), jnp.float32)
    sum_ref[...] += jnp.dot(ones, h1, preferred_element_type=jnp.float32)
    sq_ref[...] += jnp.dot(ones, h1 * h1, preferred_element_type=jnp.float32)


def bn_stats(x_flat, w1, *, tile_n, matmul_dtype):
    n, c_in = x_flat.shape
    c_mid = w1.shape[1]
    nt = n // tile_n
    flops = 2 * n * c_in * c_mid + 33 * n * c_mid
    byts = 4 * (n * c_in + c_in * c_mid + 2 * 8 * c_mid)
    kern = functools.partial(_bn_stats_kernel, matmul_dtype=matmul_dtype)
    return pl.pallas_call(
        kern,
        out_shape=(jax.ShapeDtypeStruct((8, c_mid), jnp.float32),
                   jax.ShapeDtypeStruct((8, c_mid), jnp.float32)),
        grid=(nt,),
        in_specs=[
            pl.BlockSpec((tile_n, c_in), lambda i: (i, 0)),
            pl.BlockSpec((c_in, c_mid), lambda i: (0, 0)),
        ],
        out_specs=(
            pl.BlockSpec((8, c_mid), lambda i: (0, 0)),
            pl.BlockSpec((8, c_mid), lambda i: (0, 0)),
        ),
        compiler_params=pltpu.CompilerParams(
            dimension_semantics=("arbitrary",),
            vmem_limit_bytes=VMEM_LIMIT_BYTES),
        cost_estimate=pl.CostEstimate(flops=flops, transcendentals=0,
                                      bytes_accessed=byts),
    )(x_flat, w1)


# ----------------------------------------------------------------------------
# Kernel 2: conv1x1 -> BN affine -> ReLU -> conv1x1 + bias  (+ partial sums)
# ----------------------------------------------------------------------------
def _mlp_branch_kernel(x_ref, w1_ref, scale_ref, shift_ref, w2_ref, b2_ref,
                       h_ref, bsum_ref, *, matmul_dtype):
    x = x_ref[0]                                                 # (tile_hw, Cp)
    h1 = jnp.dot(x.astype(matmul_dtype), w1_ref[...].astype(matmul_dtype),
                 preferred_element_type=jnp.float32)             # (tile_hw, C2p)
    h1 = jnp.maximum(h1 * scale_ref[...] + shift_ref[...], 0.0)  # BN + ReLU
    h2 = jnp.dot(h1.astype(matmul_dtype), w2_ref[...].astype(matmul_dtype),
                 preferred_element_type=jnp.float32)             # (tile_hw, Cp)
    h2 = h2 + b2_ref[...]
    h_ref[0] = h2.astype(h_ref.dtype)
    # Per-(batch, tile) partial spatial sum of h for the reweight branch,
    # computed on the MXU (8 identical broadcast rows; row 0 used downstream).
    ones = jnp.ones((8, h2.shape[0]), jnp.float32)
    bsum_ref[0, 0] = jnp.dot(ones, h2, preferred_element_type=jnp.float32)


def mlp_branch(x3, w1, scale, shift, w2, b2, *, tile_hw, matmul_dtype):
    b, hw, c_in = x3.shape
    c_mid, c_out = w2.shape
    nj = hw // tile_hw
    n = b * hw
    flops = (2 * n * c_in * c_mid + 2 * n * c_mid * c_out
             + 16 * n * c_out + 3 * n * c_mid)
    byts = 4 * (2 * n * c_in + c_in * c_mid + c_mid * c_out + b * nj * 8 * c_out)
    kern = functools.partial(_mlp_branch_kernel, matmul_dtype=matmul_dtype)
    return pl.pallas_call(
        kern,
        out_shape=(jax.ShapeDtypeStruct((b, hw, c_out), x3.dtype),
                   jax.ShapeDtypeStruct((b, nj, 8, c_out), jnp.float32)),
        grid=(b, nj),
        in_specs=[
            pl.BlockSpec((1, tile_hw, c_in), lambda i, j: (i, j, 0)),
            pl.BlockSpec((c_in, c_mid), lambda i, j: (0, 0)),
            pl.BlockSpec((1, c_mid), lambda i, j: (0, 0)),
            pl.BlockSpec((1, c_mid), lambda i, j: (0, 0)),
            pl.BlockSpec((c_mid, c_out), lambda i, j: (0, 0)),
            pl.BlockSpec((1, c_out), lambda i, j: (0, 0)),
        ],
        out_specs=(
            pl.BlockSpec((1, tile_hw, c_out), lambda i, j: (i, j, 0)),
            pl.BlockSpec((1, 1, 8, c_out), lambda i, j: (i, j, 0, 0)),
        ),
        compiler_params=pltpu.CompilerParams(
            dimension_semantics=("parallel", "parallel"),
            vmem_limit_bytes=VMEM_LIMIT_BYTES),
        cost_estimate=pl.CostEstimate(flops=flops, transcendentals=0,
                                      bytes_accessed=byts),
    )(x3, w1, scale, shift, w2, b2)


# ----------------------------------------------------------------------------
# Kernel 3: channel gating with a[0] + final 1x1 projection
# ----------------------------------------------------------------------------
def _gate_proj_kernel(h_ref, g_ref, pw_ref, pb_ref, o_ref, *, matmul_dtype):
    hg = h_ref[0] * g_ref[0]                                     # (tile_hw, Cp)
    y = jnp.dot(hg.astype(matmul_dtype), pw_ref[...].astype(matmul_dtype),
                preferred_element_type=jnp.float32) + pb_ref[...]
    o_ref[0] = y.astype(o_ref.dtype)


def gate_proj(h3, gate, pw, pb, *, tile_hw, matmul_dtype):
    b, hw, c = h3.shape
    nj = hw // tile_hw
    n = b * hw
    flops = 2 * n * c * c + 2 * n * c
    byts = 4 * (2 * n * c + c * c + b * c + c)
    kern = functools.partial(_gate_proj_kernel, matmul_dtype=matmul_dtype)
    return pl.pallas_call(
        kern,
        out_shape=jax.ShapeDtypeStruct((b, hw, c), h3.dtype),
        grid=(b, nj),
        in_specs=[
            pl.BlockSpec((1, tile_hw, c), lambda i, j: (i, j, 0)),
            pl.BlockSpec((1, 1, c), lambda i, j: (i, 0, 0)),   # per-batch gate
            pl.BlockSpec((c, c), lambda i, j: (0, 0)),
            pl.BlockSpec((1, c), lambda i, j: (0, 0)),
        ],
        out_specs=pl.BlockSpec((1, tile_hw, c), lambda i, j: (i, j, 0)),
        compiler_params=pltpu.CompilerParams(
            dimension_semantics=("parallel", "parallel"),
            vmem_limit_bytes=VMEM_LIMIT_BYTES),
        cost_estimate=pl.CostEstimate(flops=flops, transcendentals=0,
                                      bytes_accessed=byts),
    )(h3, gate, pw, pb)


# ----------------------------------------------------------------------------
# Forward pass
# ----------------------------------------------------------------------------
def hire_mlp_h_wai_forward(x_nchw, p, step=1, step_pad_mode="c",
                           matmul_dtype=jnp.float32):
    # TODO(synk): pass matmul_dtype=jnp.bfloat16 on v6e/v7x for MXU throughput;
    # float32 is kept as the default to hold the tight reference tolerance.
    B, C, H, W = x_nchw.shape
    HW = H * W
    N = B * HW
    C2 = C // 2
    Cp = _round_up(C, LANE)
    C2p = _round_up(C2, LANE)

    # NCHW -> NHWC so the 1x1 convolutions become lane-dense matmuls.
    x = jnp.transpose(x_nchw, (0, 2, 3, 1))

    # Cross-region rearrangement: the h-branch is spatially pointwise and the
    # BN batch stats are permutation-invariant, so for step_pad_mode == 'c'
    # (default) roll(+step) ... roll(-step) cancels exactly and both HBM
    # round trips are dropped. Only the no-roll-back mode needs a real roll.
    if step and step_pad_mode != "c":
        x = jnp.roll(x, step, axis=1)

    # Zero-pad channel dims to multiples of 128; padded channels are exactly
    # zero through every stage, so results are unchanged.
    x3 = _pad_last(x.reshape(B, HW, C), Cp)
    w1 = _pad_2d(p["w1"], Cp, C2p)
    w2 = _pad_2d(p["w2"], C2p, Cp)
    b2 = _pad_last(p["b2"].reshape(1, C), Cp)
    gamma = _pad_last(p["gamma"].reshape(1, C2), C2p)
    beta = _pad_last(p["beta"].reshape(1, C2), C2p)
    pw = _pad_2d(p["pw"], Cp, Cp)
    pb = _pad_last(p["pb"].reshape(1, C), Cp)

    # Pass 1: BN training-mode batch statistics (biased variance, eps=1e-5).
    tile_n = _pick_tile(N)
    s_sum, s_sq = bn_stats(x3.reshape(N, Cp), w1, tile_n=tile_n,
                           matmul_dtype=matmul_dtype)
    mean = s_sum[0:1] / N
    var = jnp.maximum(s_sq[0:1] / N - mean * mean, 0.0)
    scale = gamma * jax.lax.rsqrt(var + BN_EPS)
    shift = beta - mean * scale

    # Pass 2: conv1x1 -> BN affine -> ReLU -> conv1x1 + bias, with per-batch
    # partial spatial sums accumulated in-kernel for the reweight branch.
    tile_hw = _pick_tile(HW)
    h3, bsum = mlp_branch(x3, w1, scale, shift, w2, b2,
                          tile_hw=tile_hw, matmul_dtype=matmul_dtype)
    a_mean = bsum[:, :, 0, :C].sum(axis=1) / HW              # (B, C)

    # Reweight MLP (exact erf-GELU) + softmax over the 3 branch logits; the
    # h branch is gated by a[0]. Tiny (B, C) work -> plain-JAX glue.
    z = a_mean @ p["rw1"] + p["rb1"]
    z = jax.nn.gelu(z, approximate=False)
    z = z @ p["rw2"] + p["rb2"]
    z = jnp.transpose(z.reshape(B, C, 3), (2, 0, 1))
    gate = jax.nn.softmax(z, axis=0)[0]                      # (B, C)
    gate = _pad_last(gate, Cp)[:, None, :]                   # (B, 1, Cp)

    # Pass 3: channel gating + final 1x1 projection (proj_drop p=0 -> identity).
    y3 = gate_proj(h3, gate, pw, pb, tile_hw=tile_hw, matmul_dtype=matmul_dtype)

    y = y3[:, :, :C].reshape(B, H, W, C)
    return jnp.transpose(y, (0, 3, 1, 2))                    # back to NCHW


# ----------------------------------------------------------------------------
# Pure-JAX reference (NCHW, mirrors the PyTorch module incl. explicit rolls)
# ----------------------------------------------------------------------------
def reference_forward(x, p, step=1):
    B, C, H, W = x.shape
    h = jnp.roll(x, step, axis=2)
    h = jnp.einsum("bchw,cd->bdhw", h, p["w1"])
    mean = h.mean(axis=(0, 2, 3), keepdims=True)
    var = ((h - mean) ** 2).mean(axis=(0, 2, 3), keepdims=True)
    h = (h - mean) / jnp.sqrt(var + BN_EPS)
    h = h * p["gamma"].reshape(1, -1, 1, 1) + p["beta"].reshape(1, -1, 1, 1)
    h = jnp.maximum(h, 0.0)
    h = jnp.einsum("bchw,cd->bdhw", h, p["w2"]) + p["b2"].reshape(1, -1, 1, 1)
    h = jnp.roll(h, -step, axis=2)
    a = h.reshape(B, C, H * W).mean(axis=2)
    z = a @ p["rw1"] + p["rb1"]
    z = jax.nn.gelu(z, approximate=False)
    z = z @ p["rw2"] + p["rb2"]
    z = jnp.transpose(z.reshape(B, C, 3), (2, 0, 1))
    gate = jax.nn.softmax(z, axis=0)[0]
    y = h * gate[:, :, None, None]
    y = jnp.einsum("bchw,cd->bdhw", y, p["pw"]) + p["pb"].reshape(1, -1, 1, 1)
    return y


# ----------------------------------------------------------------------------
# Deterministic synthetic parameters (shapes follow the PyTorch module)
# ----------------------------------------------------------------------------
def init_params(key, dim):
    ks = jax.random.split(key, 12)
    nrm = lambda k, shape, s: s * jax.random.normal(k, shape, jnp.float32)
    return dict(
        w1=nrm(ks[0], (dim, dim // 2), 0.2),          # mlp_h1.weight^T (no bias)
        gamma=1.0 + nrm(ks[1], (1, dim // 2), 0.1),   # BN weight
        beta=nrm(ks[2], (1, dim // 2), 0.1),          # BN bias
        w2=nrm(ks[3], (dim // 2, dim), 0.2),          # mlp_h2.weight^T
        b2=nrm(ks[4], (1, dim), 0.1),                 # mlp_h2.bias
        rw1=nrm(ks[5], (dim, dim // 4), 0.2),         # reweight.fc1.weight^T
        rb1=nrm(ks[6], (1, dim // 4), 0.1),
        rw2=nrm(ks[7], (dim // 4, dim * 3), 0.2),     # reweight.fc2.weight^T
        rb2=nrm(ks[8], (1, dim * 3), 0.1),
        pw=nrm(ks[9], (dim, dim), 0.2),               # proj.weight^T
        pb=nrm(ks[10], (1, dim), 0.1),                # proj.bias
    )


if __name__ == "__main__":
    key = jax.random.PRNGKey(0)
    B, C, H, W = 2, 16, 32, 32      # small, but large enough to exercise
    kx, kp = jax.random.split(key)  # multi-step grids in all three kernels
    x = jax.random.normal(kx, (B, C, H, W), jnp.float32)
    params = init_params(kp, C)

    fwd = jax.jit(hire_mlp_h_wai_forward)
    out = jax.block_until_ready(fwd(x, params))
    assert out.shape == (B, C, H, W), out.shape

    ref = reference_forward(x, params)
    err = float(jnp.max(jnp.abs(out - ref)))
    assert err < 2e-3, f"max abs err {err}"

    print("KERNEL_OK")
</pallas_src>

<mosaic_0001>
module attributes {stable_mosaic.version = 11 : i64} {
  func.func @_bn_stats_kernel(%arg0: i32, %arg1: memref<512x128xf32, #tpu.memory_space<vmem>>, %arg2: memref<128x128xf32, #tpu.memory_space<vmem>>, %arg3: memref<8x128xf32, #tpu.memory_space<vmem>>, %arg4: memref<8x128xf32, #tpu.memory_space<vmem>>) attributes {dimension_semantics = [#tpu.dimension_semantics<arbitrary>], iteration_bounds = array<i64: 4>, scalar_prefetch = 0 : i64, scratch_operands = 0 : i64, tpu.core_type = #tpu.core_type<tc>, window_params = [{transform_indices = @transform_0, window_bounds = array<i64: 512, 128>}, {pipeline_mode = #tpu.pipeline_mode<synchronous>, transform_indices = @transform_1, window_bounds = array<i64: 128, 128>}, {pipeline_mode = #tpu.pipeline_mode<synchronous>, transform_indices = @transform_2, window_bounds = array<i64: 8, 128>}, {pipeline_mode = #tpu.pipeline_mode<synchronous>, transform_indices = @transform_3, window_bounds = array<i64: 8, 128>}]} {
    %c0_i32 = arith.constant 0 : i32
    %0 = arith.cmpi eq, %arg0, %c0_i32 : i32
    %1 = arith.extui %0 : i1 to i32
    %c0_i32_0 = arith.constant 0 : i32
    %2 = arith.cmpi ne, %1, %c0_i32_0 : i32
    scf.if %2 {
      %cst_15 = arith.constant 0.000000e+00 : f32
      %16 = vector.broadcast %cst_15 : f32 to vector<8x128xf32>
      %c0_16 = arith.constant 0 : index
      %c0_17 = arith.constant 0 : index
      %17 = vector.load %arg3[%c0_16, %c0_17] : memref<8x128xf32, #tpu.memory_space<vmem>>, vector<8x128xf32>
      tpu.vector_store %arg3[%c0_16, %c0_17], %16 {strides = array<i32>} : memref<8x128xf32, #tpu.memory_space<vmem>>, vector<8x128xf32>,
      %cst_18 = arith.constant 0.000000e+00 : f32
      %18 = vector.broadcast %cst_18 : f32 to vector<8x128xf32>
      %c0_19 = arith.constant 0 : index
      %c0_20 = arith.constant 0 : index
      %19 = vector.load %arg4[%c0_19, %c0_20] : memref<8x128xf32, #tpu.memory_space<vmem>>, vector<8x128xf32>
      tpu.vector_store %arg4[%c0_19, %c0_20], %18 {strides = array<i32>} : memref<8x128xf32, #tpu.memory_space<vmem>>, vector<8x128xf32>,
    } else {
    }
    %c0 = arith.constant 0 : index
    %c0_1 = arith.constant 0 : index
    %3 = vector.load %arg1[%c0, %c0_1] : memref<512x128xf32, #tpu.memory_space<vmem>>, vector<512x128xf32>
    %c0_2 = arith.constant 0 : index
    %c0_3 = arith.constant 0 : index
    %4 = vector.load %arg2[%c0_2, %c0_3] : memref<128x128xf32, #tpu.memory_space<vmem>>, vector<128x128xf32>
    %cst = arith.constant dense<0.000000e+00> : vector<512x128xf32>
    %5 = tpu.matmul %3, %4, %cst {dimension_numbers = #tpu.dot_dimension_numbers<[1], [0], [0], [1], [0, 0, 1, 1], [], []>} : vector<512x128xf32>, vector<128x128xf32>, vector<512x128xf32> -> vector<512x128xf32>
    %cst_4 = arith.constant 1.000000e+00 : f32
    %6 = vector.broadcast %cst_4 : f32 to vector<8x512xf32>
    %c0_5 = arith.constant 0 : index
    %c0_6 = arith.constant 0 : index
    %7 = vector.load %arg3[%c0_5, %c0_6] : memref<8x128xf32, #tpu.memory_space<vmem>>, vector<8x128xf32>
    %cst_7 = arith.constant dense<0.000000e+00> : vector<8x128xf32>
    %8 = tpu.matmul %6, %5, %cst_7 {dimension_numbers = #tpu.dot_dimension_numbers<[1], [0], [0], [1], [0, 0, 1, 1], [], []>} : vector<8x512xf32>, vector<512x128xf32>, vector<8x128xf32> -> vector<8x128xf32>
    %9 = arith.addf %7, %8 : vector<8x128xf32>
    %c0_8 = arith.constant 0 : index
    %c0_9 = arith.constant 0 : index
    %10 = vector.load %arg3[%c0_8, %c0_9] : memref<8x128xf32, #tpu.memory_space<vmem>>, vector<8x128xf32>
    tpu.vector_store %arg3[%c0_8, %c0_9], %9 {strides = array<i32>} : memref<8x128xf32, #tpu.memory_space<vmem>>, vector<8x128xf32>,
    %c0_10 = arith.constant 0 : index
    %c0_11 = arith.constant 0 : index
    %11 = vector.load %arg4[%c0_10, %c0_11] : memref<8x128xf32, #tpu.memory_space<vmem>>, vector<8x128xf32>
    %12 = arith.mulf %5, %5 : vector<512x128xf32>
    %cst_12 = arith.constant dense<0.000000e+00> : vector<8x128xf32>
    %13 = tpu.matmul %6, %12, %cst_12 {dimension_numbers = #tpu.dot_dimension_numbers<[1], [0], [0], [1], [0, 0, 1, 1], [], []>} : vector<8x512xf32>, vector<512x128xf32>, vector<8x128xf32> -> vector<8x128xf32>
    %14 = arith.addf %11, %13 : vector<8x128xf32>
    %c0_13 = arith.constant 0 : index
    %c0_14 = arith.constant 0 : index
    %15 = vector.load %arg4[%c0_13, %c0_14] : memref<8x128xf32, #tpu.memory_space<vmem>>, vector<8x128xf32>
    tpu.vector_store %arg4[%c0_13, %c0_14], %14 {strides = array<i32>} : memref<8x128xf32, #tpu.memory_space<vmem>>, vector<8x128xf32>,
    return
  }
  func.func @transform_0(%arg0: i32) -> (i32, i32) {
    %c0_i32 = arith.constant 0 : i32
    %c0_i32_0 = arith.constant 0 : i32
    return %arg0, %c0_i32 : i32, i32
  }
  func.func @transform_1(%arg0: i32) -> (i32, i32) {
    %c0_i32 = arith.constant 0 : i32
    %c0_i32_0 = arith.constant 0 : i32
    %c0_i32_1 = arith.constant 0 : i32
    return %c0_i32, %c0_i32_0 : i32, i32
  }
  func.func @transform_2(%arg0: i32) -> (i32, i32) {
    %c0_i32 = arith.constant 0 : i32
    %c0_i32_0 = arith.constant 0 : i32
    %c0_i32_1 = arith.constant 0 : i32
    return %c0_i32, %c0_i32_0 : i32, i32
  }
  func.func @transform_3(%arg0: i32) -> (i32, i32) {
    %c0_i32 = arith.constant 0 : i32
    %c0_i32_0 = arith.constant 0 : i32
    %c0_i32_1 = arith.constant 0 : i32
    return %c0_i32, %c0_i32_0 : i32, i32
  }
}

module attributes {stable_mosaic.version = 11 : i64} {
  func.func @_mlp_branch_kernel(%arg0: i32, %arg1: i32, %arg2: memref<1x512x128xf32, #tpu.memory_space<vmem>>, %arg3: memref<128x128xf32, #tpu.memory_space<vmem>>, %arg4: memref<1x128xf32, #tpu.memory_space<vmem>>, %arg5: memref<1x128xf32, #tpu.memory_space<vmem>>, %arg6: memref<128x128xf32, #tpu.memory_space<vmem>>, %arg7: memref<1x128xf32, #tpu.memory_space<vmem>>, %arg8: memref<1x512x128xf32, #tpu.memory_space<vmem>>, %arg9: memref<1x1x8x128xf32, #tpu.memory_space<vmem>>) attributes {dimension_semantics = [#tpu.dimension_semantics<parallel>, #tpu.dimension_semantics<parallel>], iteration_bounds = array<i64: 2, 2>, scalar_prefetch = 0 : i64, scratch_operands = 0 : i64, tpu.core_type = #tpu.core_type<tc>, window_params = [{transform_indices = @transform_0, window_bounds = array<i64: 1, 512, 128>}, {pipeline_mode = #tpu.pipeline_mode<synchronous>, transform_indices = @transform_1, window_bounds = array<i64: 128, 128>}, {pipeline_mode = #tpu.pipeline_mode<synchronous>, transform_indices = @transform_2, window_bounds = array<i64: 1, 128>}, {pipeline_mode = #tpu.pipeline_mode<synchronous>, transform_indices = @transform_3, window_bounds = array<i64: 1, 128>}, {pipeline_mode = #tpu.pipeline_mode<synchronous>, transform_indices = @transform_4, window_bounds = array<i64: 128, 128>}, {pipeline_mode = #tpu.pipeline_mode<synchronous>, transform_indices = @transform_5, window_bounds = array<i64: 1, 128>}, {transform_indices = @transform_6, window_bounds = array<i64: 1, 512, 128>}, {transform_indices = @transform_7, window_bounds = array<i64: 1, 1, 8, 128>}]} {
    %c0 = arith.constant 0 : index
    %c0_0 = arith.constant 0 : index
    %c0_1 = arith.constant 0 : index
    %0 = vector.load %arg2[%c0, %c0_0, %c0_1] : memref<1x512x128xf32, #tpu.memory_space<vmem>>, vector<1x512x128xf32>
    %1 = vector.shape_cast %0 : vector<1x512x128xf32> to vector<512x128xf32>
    %c0_2 = arith.constant 0 : index
    %c0_3 = arith.constant 0 : index
    %2 = vector.load %arg3[%c0_2, %c0_3] : memref<128x128xf32, #tpu.memory_space<vmem>>, vector<128x128xf32>
    %cst = arith.constant dense<0.000000e+00> : vector<512x128xf32>
    %3 = tpu.matmul %1, %2, %cst {dimension_numbers = #tpu.dot_dimension_numbers<[1], [0], [0], [1], [0, 0, 1, 1], [], []>} : vector<512x128xf32>, vector<128x128xf32>, vector<512x128xf32> -> vector<512x128xf32>
    %c0_4 = arith.constant 0 : index
    %c0_5 = arith.constant 0 : index
    %4 = vector.load %arg4[%c0_4, %c0_5] : memref<1x128xf32, #tpu.memory_space<vmem>>, vector<1x128xf32>
    %5 = vector.broadcast %4 : vector<1x128xf32> to vector<512x128xf32>
    %6 = arith.mulf %3, %5 : vector<512x128xf32>
    %c0_6 = arith.constant 0 : index
    %c0_7 = arith.constant 0 : index
    %7 = vector.load %arg5[%c0_6, %c0_7] : memref<1x128xf32, #tpu.memory_space<vmem>>, vector<1x128xf32>
    %8 = vector.broadcast %7 : vector<1x128xf32> to vector<512x128xf32>
    %9 = arith.addf %6, %8 : vector<512x128xf32>
    %cst_8 = arith.constant 0.000000e+00 : f32
    %10 = vector.broadcast %cst_8 : f32 to vector<512x128xf32>
    %11 = arith.maximumf %9, %10 : vector<512x128xf32>
    %c0_9 = arith.constant 0 : index
    %c0_10 = arith.constant 0 : index
    %12 = vector.load %arg6[%c0_9, %c0_10] : memref<128x128xf32, #tpu.memory_space<vmem>>, vector<128x128xf32>
    %cst_11 = arith.constant dense<0.000000e+00> : vector<512x128xf32>
    %13 = tpu.matmul %11, %12, %cst_11 {dimension_numbers = #tpu.dot_dimension_numbers<[1], [0], [0], [1], [0, 0, 1, 1], [], []>} : vector<512x128xf32>, vector<128x128xf32>, vector<512x128xf32> -> vector<512x128xf32>
    %c0_12 = arith.constant 0 : index
    %c0_13 = arith.constant 0 : index
    %14 = vector.load %arg7[%c0_12, %c0_13] : memref<1x128xf32, #tpu.memory_space<vmem>>, vector<1x128xf32>
    %15 = vector.broadcast %14 : vector<1x128xf32> to vector<512x128xf32>
    %16 = arith.addf %13, %15 : vector<512x128xf32>
    %c0_14 = arith.constant 0 : index
    %c0_15 = arith.constant 0 : index
    %c0_16 = arith.constant 0 : index
    %17 = vector.load %arg8[%c0_14, %c0_15, %c0_16] : memref<1x512x128xf32, #tpu.memory_space<vmem>>, vector<1x512x128xf32>
    %18 = vector.shape_cast %17 : vector<1x512x128xf32> to vector<512x128xf32>
    %19 = vector.shape_cast %16 : vector<512x128xf32> to vector<1x512x128xf32>
    tpu.vector_store %arg8[%c0_14, %c0_15, %c0_16], %19 {strides = array<i32>} : memref<1x512x128xf32, #tpu.memory_space<vmem>>, vector<1x512x128xf32>,
    %cst_17 = arith.constant 1.000000e+00 : f32
    %20 = vector.broadcast %cst_17 : f32 to vector<8x512xf32>
    %cst_18 = arith.constant dense<0.000000e+00> : vector<8x128xf32>
    %21 = tpu.matmul %20, %16, %cst_18 {dimension_numbers = #tpu.dot_dimension_numbers<[1], [0], [0], [1], [0, 0, 1, 1], [], []>} : vector<8x512xf32>, vector<512x128xf32>, vector<8x128xf32> -> vector<8x128xf32>
    %c0_19 = arith.constant 0 : index
    %c0_20 = arith.constant 0 : index
    %c0_21 = arith.constant 0 : index
    %c0_22 = arith.constant 0 : index
    %22 = vector.load %arg9[%c0_19, %c0_20, %c0_21, %c0_22] : memref<1x1x8x128xf32, #tpu.memory_space<vmem>>, vector<1x1x8x128xf32>
    %23 = vector.shape_cast %22 : vector<1x1x8x128xf32> to vector<8x128xf32>
    %24 = vector.shape_cast %21 : vector<8x128xf32> to vector<1x1x8x128xf32>
    tpu.vector_store %arg9[%c0_19, %c0_20, %c0_21, %c0_22], %24 {strides = array<i32>} : memref<1x1x8x128xf32, #tpu.memory_space<vmem>>, vector<1x1x8x128xf32>,
    return
  }
  func.func @transform_0(%arg0: i32, %arg1: i32) -> (i32, i32, i32) {
    %c0_i32 = arith.constant 0 : i32
    %c0_i32_0 = arith.constant 0 : i32
    return %arg0, %arg1, %c0_i32 : i32, i32, i32
  }
  func.func @transform_1(%arg0: i32, %arg1: i32) -> (i32, i32) {
    %c0_i32 = arith.constant 0 : i32
    %c0_i32_0 = arith.constant 0 : i32
    %c0_i32_1 = arith.constant 0 : i32
    return %c0_i32, %c0_i32_0 : i32, i32
  }
  func.func @transform_2(%arg0: i32, %arg1: i32) -> (i32, i32) {
    %c0_i32 = arith.constant 0 : i32
    %c0_i32_0 = arith.constant 0 : i32
    %c0_i32_1 = arith.constant 0 : i32
    return %c0_i32, %c0_i32_0 : i32, i32
  }
  func.func @transform_3(%arg0: i32, %arg1: i32) -> (i32, i32) {
    %c0_i32 = arith.constant 0 : i32
    %c0_i32_0 = arith.constant 0 : i32
    %c0_i32_1 = arith.constant 0 : i32
    return %c0_i32, %c0_i32_0 : i32, i32
  }
  func.func @transform_4(%arg0: i32, %arg1: i32) -> (i32, i32) {
    %c0_i32 = arith.constant 0 : i32
    %c0_i32_0 = arith.constant 0 : i32
    %c0_i32_1 = arith.constant 0 : i32
    return %c0_i32, %c0_i32_0 : i32, i32
  }
  func.func @transform_5(%arg0: i32, %arg1: i32) -> (i32, i32) {
    %c0_i32 = arith.constant 0 : i32
    %c0_i32_0 = arith.constant 0 : i32
    %c0_i32_1 = arith.constant 0 : i32
    return %c0_i32, %c0_i32_0 : i32, i32
  }
  func.func @transform_6(%arg0: i32, %arg1: i32) -> (i32, i32, i32) {
    %c0_i32 = arith.constant 0 : i32
    %c0_i32_0 = arith.constant 0 : i32
    return %arg0, %arg1, %c0_i32 : i32, i32, i32
  }
  func.func @transform_7(%arg0: i32, %arg1: i32) -> (i32, i32, i32, i32) {
    %c0_i32 = arith.constant 0 : i32
    %c0_i32_0 = arith.constant 0 : i32
    %c0_i32_1 = arith.constant 0 : i32
    return %arg0, %arg1, %c0_i32, %c0_i32_0 : i32, i32, i32, i32
  }
}

module attributes {stable_mosaic.version = 11 : i64} {
  func.func @_gate_proj_kernel(%arg0: i32, %arg1: i32, %arg2: memref<1x512x128xf32, #tpu.memory_space<vmem>>, %arg3: memref<1x1x128xf32, #tpu.memory_space<vmem>>, %arg4: memref<128x128xf32, #tpu.memory_space<vmem>>, %arg5: memref<1x128xf32, #tpu.memory_space<vmem>>, %arg6: memref<1x512x128xf32, #tpu.memory_space<vmem>>) attributes {dimension_semantics = [#tpu.dimension_semantics<parallel>, #tpu.dimension_semantics<parallel>], iteration_bounds = array<i64: 2, 2>, scalar_prefetch = 0 : i64, scratch_operands = 0 : i64, tpu.core_type = #tpu.core_type<tc>, window_params = [{transform_indices = @transform_0, window_bounds = array<i64: 1, 512, 128>}, {transform_indices = @transform_1, window_bounds = array<i64: 1, 1, 128>}, {pipeline_mode = #tpu.pipeline_mode<synchronous>, transform_indices = @transform_2, window_bounds = array<i64: 128, 128>}, {pipeline_mode = #tpu.pipeline_mode<synchronous>, transform_indices = @transform_3, window_bounds = array<i64: 1, 128>}, {transform_indices = @transform_4, window_bounds = array<i64: 1, 512, 128>}]} {
    %c0 = arith.constant 0 : index
    %c0_0 = arith.constant 0 : index
    %c0_1 = arith.constant 0 : index
    %0 = vector.load %arg2[%c0, %c0_0, %c0_1] : memref<1x512x128xf32, #tpu.memory_space<vmem>>, vector<1x512x128xf32>
    %1 = vector.shape_cast %0 : vector<1x512x128xf32> to vector<512x128xf32>
    %c0_2 = arith.constant 0 : index
    %c0_3 = arith.constant 0 : index
    %c0_4 = arith.constant 0 : index
    %2 = vector.load %arg3[%c0_2, %c0_3, %c0_4] : memref<1x1x128xf32, #tpu.memory_space<vmem>>, vector<1x1x128xf32>
    %3 = vector.shape_cast %2 : vector<1x1x128xf32> to vector<1x128xf32>
    %4 = vector.broadcast %3 : vector<1x128xf32> to vector<512x128xf32>
    %5 = arith.mulf %1, %4 : vector<512x128xf32>
    %c0_5 = arith.constant 0 : index
    %c0_6 = arith.constant 0 : index
    %6 = vector.load %arg4[%c0_5, %c0_6] : memref<128x128xf32, #tpu.memory_space<vmem>>, vector<128x128xf32>
    %cst = arith.constant dense<0.000000e+00> : vector<512x128xf32>
    %7 = tpu.matmul %5, %6, %cst {dimension_numbers = #tpu.dot_dimension_numbers<[1], [0], [0], [1], [0, 0, 1, 1], [], []>} : vector<512x128xf32>, vector<128x128xf32>, vector<512x128xf32> -> vector<512x128xf32>
    %c0_7 = arith.constant 0 : index
    %c0_8 = arith.constant 0 : index
    %8 = vector.load %arg5[%c0_7, %c0_8] : memref<1x128xf32, #tpu.memory_space<vmem>>, vector<1x128xf32>
    %9 = vector.broadcast %8 : vector<1x128xf32> to vector<512x128xf32>
    %10 = arith.addf %7, %9 : vector<512x128xf32>
    %c0_9 = arith.constant 0 : index
    %c0_10 = arith.constant 0 : index
    %c0_11 = arith.constant 0 : index
    %11 = vector.load %arg6[%c0_9, %c0_10, %c0_11] : memref<1x512x128xf32, #tpu.memory_space<vmem>>, vector<1x512x128xf32>
    %12 = vector.shape_cast %11 : vector<1x512x128xf32> to vector<512x128xf32>
    %13 = vector.shape_cast %10 : vector<512x128xf32> to vector<1x512x128xf32>
    tpu.vector_store %arg6[%c0_9, %c0_10, %c0_11], %13 {strides = array<i32>} : memref<1x512x128xf32, #tpu.memory_space<vmem>>, vector<1x512x128xf32>,
    return
  }
  func.func @transform_0(%arg0: i32, %arg1: i32) -> (i32, i32, i32) {
    %c0_i32 = arith.constant 0 : i32
    %c0_i32_0 = arith.constant 0 : i32
    return %arg0, %arg1, %c0_i32 : i32, i32, i32
  }
  func.func @transform_1(%arg0: i32, %arg1: i32) -> (i32, i32, i32) {
    %c0_i32 = arith.constant 0 : i32
    %c0_i32_0 = arith.constant 0 : i32
    %c0_i32_1 = arith.constant 0 : i32
    return %arg0, %c0_i32, %c0_i32_0 : i32, i32, i32
  }
  func.func @transform_2(%arg0: i32, %arg1: i32) -> (i32, i32) {
    %c0_i32 = arith.constant 0 : i32
    %c0_i32_0 = arith.constant 0 : i32
    %c0_i32_1 = arith.constant 0 : i32
    return %c0_i32, %c0_i32_0 : i32, i32
  }
  func.func @transform_3(%arg0: i32, %arg1: i32) -> (i32, i32) {
    %c0_i32 = arith.constant 0 : i32
    %c0_i32_0 = arith.constant 0 : i32
    %c0_i32_1 = arith.constant 0 : i32
    return %c0_i32, %c0_i32_0 : i32, i32
  }
  func.func @transform_4(%arg0: i32, %arg1: i32) -> (i32, i32, i32) {
    %c0_i32 = arith.constant 0 : i32
    %c0_i32_0 = arith.constant 0 : i32
    return %arg0, %arg1, %c0_i32 : i32, i32, i32
  }
}

</mosaic_0001>

<bundles_post_ra>
// kernel: hire_mlp_h_wai_forward.3
= control target key start
LH: loop header
LB: loop body
LE: loop exit
PB: predicated region body
PF: predicated region fallthrough
CT: control target
= control target key end

     0   :  { %s1568_s12 = smov 0   ;;  %s2076_s0 = inlined_call_operand.vmem [shape: f32[2048,128], index: 0, kind: input, shape index: {}]   ;;  %s2077_s1 = inlined_call_operand.vmem [shape: f32[128,128], index: 1, kind: input, shape index: {}]   ;;  %s2078_s2 = inlined_call_operand.vmem [shape: f32[8,128], index: 2, kind: output, shape index: {0}]   ;;  %s2079_s3 = inlined_call_operand.vmem [shape: f32[8,128], index: 3, kind: output, shape index: {1}]  }
   0x1 LB: > { %s1011_s13 = sadd.s32 4294967295, %s1544_s12   ;;  %p1014_p0 = scmp.ge.s32.totalorder %s1544_s12, 1  ;;  %s1544_s12 = sphi %s1568_s12, %s14_s12  }
   0x2   : > { %p131_p1 = scmp.lt.s32.totalorder %s1544_s12, 5 }
   0x4   : > { %p132_p2 = pnand %p1014_p0, %p131_p1 }
   0x6   : > { %135 = sbr.rel (%p132_p2) target bundleno = 684 (0x2ac), region = 28 }
   0xd   : > { %s1015_s14 = sshll.u32 %s1011_s13, 6  ;;  %p1017_p4 = scmp.ne.s32.totalorder %s1011_s13, 0 }
   0xe   : > { %p151_p3 = scmp.lt.s32.totalorder %s1015_s14, 255  ;;  %v1546_v0 = vmov (!%p1017_p4), 0.0  }
   0xf   : > { %159 = sbr.rel (%p1017_p4) target bundleno = 22 (0x16), region = 32  ;;  %160 = vst [vmem:[%s2078_s2] sm:$0xff] (!%p1017_p4), %v1546_v0  ;;  %161 = vst [vmem:[%s2079_s3] sm:$0xff] (!%p1017_p4), %v1546_v0 }
  0x10   : > { %s2162_s14 = smov (!%p151_p3, %s1015_s14), 255 }
  0x11   : > { %s1016_s15 = sshll.u32 %s2162_s14, 3 }
  0x12   : > { %s1579_s18 = scalar_lea.vmem %s2076_s0, %s1016_s15 }
  0x16 PF: > { %v226_v1 = vld [vmem:[%s2077_s1] sm:$0xff]  ;;  %v227_v2 = vld [vmem:[%s2077_s1 + $0x8] sm:$0xff]  ;;  %v228_v3 = vld [vmem:[%s2077_s1 + $0x10] sm:$0xff] }
  0x17   : > { %v1368_v4 = vpack.c.bf16 %v227_v2, %v226_v1  ;;  %v229_v5 = vld [vmem:[%s2077_s1 + $0x18] sm:$0xff]  ;;  %v230_v7 = vld [vmem:[%s2077_s1 + $0x20] sm:$0xff]  ;;  %v231_v8 = vld [vmem:[%s2077_s1 + $0x28] sm:$0xff] }
  0x18   : > { %v1372_v6 = vpack.c.bf16 %v229_v5, %v228_v3  ;;  %v1376_v9 = vpack.c.bf16 %v231_v8, %v230_v7  ;;  %v162_v10 = vld [vmem:[%s1579_s18] sm:$0xff]  ;;  %v232_v11 = vld [vmem:[%s2077_s1 + $0x30] sm:$0xff]  ;;  %v233_v12 = vld [vmem:[%s2077_s1 + $0x38] sm:$0xff] }
  0x19   : > { %1369 = vmatprep.subr.bf16.mxu0 %v1368_v4  ;;  %1272 = vmatprep.mubr.f32.mxu0 %v162_v10  ;;  %v1380_v13 = vpack.c.bf16 %v233_v12, %v232_v11  ;;  %v234_v14 = vld [vmem:[%s2077_s1 + $0x40] sm:$0xff]  ;;  %v235_v15 = vld [vmem:[%s2077_s1 + $0x48] sm:$0xff]  ;;  %v236_v17 = vld [vmem:[%s2077_s1 + $0x50] sm:$0xff] }
  0x1a   : > { %1371 = vmatpush3.bf16.msra.mxu0 %v1368_v4  ;;  %v1384_v16 = vpack.c.bf16 %v235_v15, %v234_v14  ;;  %v237_v18 = vld [vmem:[%s2077_s1 + $0x58] sm:$0xff]  ;;  %v238_v20 = vld [vmem:[%s2077_s1 + $0x60] sm:$0xff]  ;;  %v239_v21 = vld [vmem:[%s2077_s1 + $0x68] sm:$0xff] }
  0x1b   : > { %1373 = vmatprep.subr.bf16.mxu0 %v1372_v6  ;;  %v1388_v19 = vpack.c.bf16 %v237_v18, %v236_v17  ;;  %v1392_v22 = vpack.c.bf16 %v239_v21, %v238_v20  ;;  %v240_v23 = vld [vmem:[%s2077_s1 + $0x70] sm:$0xff]  ;;  %v241_v24 = vld [vmem:[%s2077_s1 + $0x78] sm:$0xff]  ;;  %v163_v26 = vld [vmem:[%s1579_s18 + $0x8] sm:$0xff] }
  0x1c   : > { %v1396_v25 = vpack.c.bf16 %v241_v24, %v240_v23  ;;  %v164_v27 = vld [vmem:[%s1579_s18 + $0x10] sm:$0xff]  ;;  %v165_v28 = vld [vmem:[%s1579_s18 + $0x18] sm:$0xff]  ;;  %v166_v29 = vld [vmem:[%s1579_s18 + $0x20] sm:$0xff] }
  0x1d   : > { %v167_v30 = vld [vmem:[%s1579_s18 + $0x28] sm:$0xff]  ;;  %v168_v31 = vld [vmem:[%s1579_s18 + $0x30] sm:$0xff]  ;;  %v169_v32 = vld [vmem:[%s1579_s18 + $0x38] sm:$0xff] }
  0x1e   : > { %1375 = vmatpush3.bf16.msra.mxu0 %v1372_v6  ;;  %v170_v33 = vld [vmem:[%s1579_s18 + $0x40] sm:$0xff]  ;;  %v171_v34 = vld [vmem:[%s1579_s18 + $0x48] sm:$0xff]  ;;  %v172_v35 = vld [vmem:[%s1579_s18 + $0x50] sm:$0xff] }
  0x1f   : > { %1377 = vmatprep.subr.bf16.mxu0 %v1376_v9  ;;  %v173_v36 = vld [vmem:[%s1579_s18 + $0x58] sm:$0xff]  ;;  %v174_v37 = vld [vmem:[%s1579_s18 + $0x60] sm:$0xff]  ;;  %v175_v38 = vld [vmem:[%s1579_s18 + $0x68] sm:$0xff] }
  0x20   : > { %v176_v39 = vld [vmem:[%s1579_s18 + $0x70] sm:$0xff]  ;;  %v177_v40 = vld [vmem:[%s1579_s18 + $0x78] sm:$0xff]  ;;  %v178_v41 = vld [vmem:[%s1579_s18 + $0x80] sm:$0xff] }
  0x21   : > { %v179_v42 = vld [vmem:[%s1579_s18 + $0x88] sm:$0xff]  ;;  %v180_v43 = vld [vmem:[%s1579_s18 + $0x90] sm:$0xff]  ;;  %v181_v44 = vld [vmem:[%s1579_s18 + $0x98] sm:$0xff] }
  0x22   : > { %1379 = vmatpush3.bf16.msra.mxu0 %v1376_v9  ;;  %v182_v45 = vld [vmem:[%s1579_s18 + $0xa0] sm:$0xff]  ;;  %v183_v46 = vld [vmem:[%s1579_s18 + $0xa8] sm:$0xff]  ;;  %v184_v47 = vld [vmem:[%s1579_s18 + $0xb0] sm:$0xff] }
  0x23   : > { %1381 = vmatprep.subr.bf16.mxu0 %v1380_v13  ;;  %v185_v48 = vld [vmem:[%s1579_s18 + $0xb8] sm:$0xff]  ;;  %v186_v49 = vld [vmem:[%s1579_s18 + $0xc0] sm:$0xff]  ;;  %v187_v50 = vld [vmem:[%s1579_s18 + $0xc8] sm:$0xff] }
  0x24   : > { %v188_v51 = vld [vmem:[%s1579_s18 + $0xd0] sm:$0xff]  ;;  %v189_v52 = vld [vmem:[%s1579_s18 + $0xd8] sm:$0xff]  ;;  %v190_v53 = vld [vmem:[%s1579_s18 + $0xe0] sm:$0xff] }
  0x25   : > { %v191_v54 = vld [vmem:[%s1579_s18 + $0xe8] sm:$0xff]  ;;  %v192_v55 = vld [vmem:[%s1579_s18 + $0xf0] sm:$0xff]  ;;  %v193_v56 = vld [vmem:[%s1579_s18 + $0xf8] sm:$0xff] }
  0x26   : > { %1383 = vmatpush3.bf16.msra.mxu0 %v1380_v13  ;;  %v194_v57 = vld [vmem:[%s1579_s18 + $0x100] sm:$0xff]  ;;  %v195_v58 = vld [vmem:[%s1579_s18 + $0x108] sm:$0xff]  ;;  %v196_v59 = vld [vmem:[%s1579_s18 + $0x110] sm:$0xff] }
  0x27   : > { %1385 = vmatprep.subr.bf16.mxu0 %v1384_v16  ;;  %v197_v60 = vld [vmem:[%s1579_s18 + $0x118] sm:$0xff]  ;;  %v198_v61 = vld [vmem:[%s1579_s18 + $0x120] sm:$0xff]  ;;  %v199_v62 = vld [vmem:[%s1579_s18 + $0x128] sm:$0xff] }
  0x28   : > { %v200_v63 = vld [vmem:[%s1579_s18 + $0x130] sm:$0xff]  ;;  %v201_v0 = vld [vmem:[%s1579_s18 + $0x138] sm:$0xff]  ;;  %v202_v1 = vld [vmem:[%s1579_s18 + $0x140] sm:$0xff] }
  0x29   : > { %v203_v2 = vld [vmem:[%s1579_s18 + $0x148] sm:$0xff]  ;;  %v204_v3 = vld [vmem:[%s1579_s18 + $0x150] sm:$0xff]  ;;  %v205_v4 = vld [vmem:[%s1579_s18 + $0x158] sm:$0xff] }
  0x2a   : > { %1387 = vmatpush3.bf16.msra.mxu0 %v1384_v16  ;;  %v206_v5 = vld [vmem:[%s1579_s18 + $0x160] sm:$0xff]  ;;  %v207_v6 = vld [vmem:[%s1579_s18 + $0x168] sm:$0xff]  ;;  %v208_v7 = vld [vmem:[%s1579_s18 + $0x170] sm:$0xff] }
  0x2b   : > { %1389 = vmatprep.subr.bf16.mxu0 %v1388_v19  ;;  %v209_v8 = vld [vmem:[%s1579_s18 + $0x178] sm:$0xff]  ;;  %v210_v9 = vld [vmem:[%s1579_s18 + $0x180] sm:$0xff]  ;;  %v211_v10 = vld [vmem:[%s1579_s18 + $0x188] sm:$0xff] }
  0x2c   : > { %v212_v11 = vld [vmem:[%s1579_s18 + $0x190] sm:$0xff]  ;;  %v213_v12 = vld [vmem:[%s1579_s18 + $0x198] sm:$0xff]  ;;  %v214_v13 = vld [vmem:[%s1579_s18 + $0x1a0] sm:$0xff] }
  0x2d   : > { %v215_v14 = vld [vmem:[%s1579_s18 + $0x1a8] sm:$0xff]  ;;  %v216_v15 = vld [vmem:[%s1579_s18 + $0x1b0] sm:$0xff]  ;;  %v217_v16 = vld [vmem:[%s1579_s18 + $0x1b8] sm:$0xff] }
  0x2e   : > { %1391 = vmatpush3.bf16.msra.mxu0 %v1388_v19  ;;  %v218_v17 = vld [vmem:[%s1579_s18 + $0x1c0] sm:$0xff]  ;;  %v219_v18 = vld [vmem:[%s1579_s18 + $0x1c8] sm:$0xff]  ;;  %v220_v19 = vld [vmem:[%s1579_s18 + $0x1d0] sm:$0xff] }
  0x2f   : > { %1393 = vmatprep.subr.bf16.mxu0 %v1392_v22  ;;  %v221_v20 = vld [vmem:[%s1579_s18 + $0x1d8] sm:$0xff]  ;;  %v222_v21 = vld [vmem:[%s1579_s18 + $0x1e0] sm:$0xff]  ;;  %v224_v23 = vld [vmem:[%s1579_s18 + $0x1f0] sm:$0xff] }
  0x30   : > { %v225_v24 = vld [vmem:[%s1579_s18 + $0x1f8] sm:$0xff] }
  0x32   : > { %1395 = vmatpush3.bf16.msra.mxu0 %v1392_v22  ;;  %v223_v22 = vld [vmem:[%s1579_s18 + $0x1e8] sm:$0xff] }
  0x33   : > { %1397 = vmatprep.subr.bf16.mxu0 %v1396_v25 }
  0x36   : > { %1399 = vmatpush3.bf16.msra.mxu0 %v1396_v25  ;;  %v2080_v25 = vmov 1.0  }
  0x37   : > { %692 = vmatprep.mubr.f32.mxu1 %v2080_v25 }
  0x39   : > { %1273 = vmatmul.mubr.f32.vlgmr.msra.gmra.mrb[0].mxu0 %v163_v26 }
  0x3a   : > { %1275 = vmatprep.mubr.f32.mxu0 %v164_v27 }
  0x3d   : > { %1276 = vmatmul.mubr.f32.gmra.mrb[2].mxu0 %v165_v28 }
  0x3e   : > { %1278 = vmatprep.mubr.f32.mxu0 %v166_v29 }
  0x41   : > { %1279 = vmatmul.mubr.f32.gmra.mrb[4].mxu0 %v167_v30 }
  0x42   : > { %1281 = vmatprep.mubr.f32.mxu0 %v168_v31 }
  0x45   : > { %1282 = vmatmul.mubr.f32.gmra.mrb[6].mxu0 %v169_v32 }
  0x46   : > { %1284 = vmatprep.mubr.f32.mxu0 %v170_v33 }
  0x49   : > { %1285 = vmatmul.mubr.f32.gmra.mrb[8].mxu0 %v171_v34 }
  0x4a   : > { %1287 = vmatprep.mubr.f32.mxu0 %v172_v35 }
  0x4d   : > { %1288 = vmatmul.mubr.f32.gmra.mrb[10].mxu0 %v173_v36 }
  0x4e   : > { %1290 = vmatprep.mubr.f32.mxu0 %v174_v37 }
  0x51   : > { %1291 = vmatmul.mubr.f32.gmra.mrb[12].mxu0 %v175_v38 }
  0x52   : > { %1293 = vmatprep.mubr.f32.mxu0 %v176_v39 }
  0x55   : > { %1294 = vmatmul.mubr.f32.gmra.mrb[14].mxu0 %v177_v40 }
  0x56   : > { %1296 = vmatprep.mubr.f32.mxu0 %v178_v41 }
  0x59   : > { %1297 = vmatmul.mubr.f32.gmra.mrb[16].mxu0 %v179_v42 }
  0x5a   : > { %1299 = vmatprep.mubr.f32.mxu0 %v180_v43 }
  0x5d   : > { %1300 = vmatmul.mubr.f32.gmra.mrb[18].mxu0 %v181_v44 }
  0x5e   : > { %1302 = vmatprep.mubr.f32.mxu0 %v182_v45 }
  0x61   : > { %1303 = vmatmul.mubr.f32.gmra.mrb[20].mxu0 %v183_v46 }
  0x62   : > { %1305 = vmatprep.mubr.f32.mxu0 %v184_v47 }
  0x65   : > { %1306 = vmatmul.mubr.f32.gmra.mrb[22].mxu0 %v185_v48 }
  0x66   : > { %1308 = vmatprep.mubr.f32.mxu0 %v186_v49 }
  0x69   : > { %1309 = vmatmul.mubr.f32.gmra.mrb[24].mxu0 %v187_v50 }
  0x6a   : > { %1311 = vmatprep.mubr.f32.mxu0 %v188_v51 }
  0x6d   : > { %1312 = vmatmul.mubr.f32.gmra.mrb[26].mxu0 %v189_v52 }
  0x6e   : > { %1314 = vmatprep.mubr.f32.mxu0 %v190_v53 }
  0x71   : > { %1315 = vmatmul.mubr.f32.gmra.mrb[28].mxu0 %v191_v54 }
  0x72   : > { %1317 = vmatprep.mubr.f32.mxu0 %v192_v55 }
  0x75   : > { %1318 = vmatmul.mubr.f32.gmra.mrb[30].mxu0 %v193_v56 }
  0x76   : > { %1320 = vmatprep.mubr.f32.mxu0 %v194_v57 }
  0x79   : > { %1321 = vmatmul.mubr.f32.gmra.mrb[32].mxu0 %v195_v58 }
  0x7a   : > { %1323 = vmatprep.mubr.f32.mxu0 %v196_v59 }
  0x7d   : > { %1324 = vmatmul.mubr.f32.gmra.mrb[34].mxu0 %v197_v60 }
  0x7e   : > { %1326 = vmatprep.mubr.f32.mxu0 %v198_v61 }
  0x81   : > { %1327 = vmatmul.mubr.f32.gmra.mrb[36].mxu0 %v199_v62 }
  0x82   : > { %1329 = vmatprep.mubr.f32.mxu0 %v200_v63 }
  0x85   : > { %1330 = vmatmul.mubr.f32.gmra.mrb[38].mxu0 %v201_v0 }
  0x86   : > { %1332 = vmatprep.mubr.f32.mxu0 %v202_v1 }
  0x89   : > { %1333 = vmatmul.mubr.f32.gmra.mrb[40].mxu0 %v203_v2 }
  0x8a   : > { %1335 = vmatprep.mubr.f32.mxu0 %v204_v3 }
  0x8d   : > { %1336 = vmatmul.mubr.f32.gmra.mrb[42].mxu0 %v205_v4 }
  0x8e   : > { %1338 = vmatprep.mubr.f32.mxu0 %v206_v5 }
  0x91   : > { %1339 = vmatmul.mubr.f32.gmra.mrb[44].mxu0 %v207_v6 }
  0x92   : > { %1341 = vmatprep.mubr.f32.mxu0 %v208_v7 }
  0x95   : > { %1342 = vmatmul.mubr.f32.gmra.mrb[46].mxu0 %v209_v8 }
  0x96   : > { %1344 = vmatprep.mubr.f32.mxu0 %v210_v9 }
  0x99   : > { %1345 = vmatmul.mubr.f32.gmra.mrb[48].mxu0 %v211_v10 }
  0x9a   : > { %1347 = vmatprep.mubr.f32.mxu0 %v212_v11 }
  0x9d   : > { %1348 = vmatmul.mubr.f32.gmra.mrb[50].mxu0 %v213_v12 }
  0x9e   : > { %1350 = vmatprep.mubr.f32.mxu0 %v214_v13 }
  0xa1   : > { %1351 = vmatmul.mubr.f32.gmra.mrb[52].mxu0 %v215_v14 }
  0xa2   : > { %1353 = vmatprep.mubr.f32.mxu0 %v216_v15 }
  0xa5   : > { %1354 = vmatmul.mubr.f32.gmra.mrb[54].mxu0 %v217_v16 }
  0xa6   : > { %1356 = vmatprep.mubr.f32.mxu0 %v218_v17 }
  0xa9   : > { %1357 = vmatmul.mubr.f32.gmra.mrb[56].mxu0 %v219_v18 }
  0xaa   : > { %1359 = vmatprep.mubr.f32.mxu0 %v220_v19 }
  0xad   : > { %1360 = vmatmul.mubr.f32.gmra.mrb[58].mxu0 %v221_v20 }
  0xae   : > { %1362 = vmatprep.mubr.f32.mxu0 %v222_v21 }
  0xb1   : > { %1363 = vmatmul.mubr.f32.gmra.mrb[60].mxu0 %v223_v22 }
  0xb2   : > { %1365 = vmatprep.mubr.f32.mxu0 %v224_v23 }
  0xb5   : > { %1366 = vmatmul.mubr.f32.gmra.mrb[62].mxu0 %v225_v24 }
 0x10c   : > { %v1274_v26 = vpop.f32.mrb[0].mxu0 }
 0x10d   : > { %v1700_v27 = vmul.f32 %v1274_v26, %v1274_v26  ;;  %v308_v28 = vpop.f32.mrb[1].mxu0 }
 0x10e   : > { %v1702_v29 = vmul.f32 %v308_v28, %v308_v28  ;;  %v1402_v30 = vpack.c.bf16 %v1274_v26, %v308_v28 }
 0x110   : > { %v1277_v32 = vpop.f32.mrb[2].mxu0 }
 0x111   : > { %v1706_v33 = vmul.f32 %v1277_v32, %v1277_v32  ;;  %v318_v34 = vpop.f32.mrb[3].mxu0 }
 0x112   : > { %v1406_v35 = vpack.c.bf16 %v1277_v32, %v318_v34  ;;  %v1708_v36 = vmul.f32 %v318_v34, %v318_v34 }
 0x114   : > { %v1280_v38 = vpop.f32.mrb[4].mxu0 }
 0x115   : > { %v1712_v39 = vmul.f32 %v1280_v38, %v1280_v38  ;;  %v328_v40 = vpop.f32.mrb[5].mxu0 }
 0x116   : > { %v1410_v41 = vpack.c.bf16 %v1280_v38, %v328_v40  ;;  %v1714_v42 = vmul.f32 %v328_v40, %v328_v40 }
 0x118   : > { %v1718_v44 = vpop.f32.mrb[6].mxu0 }
 0x119   : > { %v1722_v45 = vmul.f32 %v1718_v44, %v1718_v44  ;;  %v338_v46 = vpop.f32.mrb[7].mxu0 }
 0x11a   : > { %v1414_v47 = vpack.c.bf16 %v1718_v44, %v338_v46  ;;  %v1725_v48 = vmul.f32 %v338_v46, %v338_v46 }
 0x11c   : > { %v1729_v50 = vpop.f32.mrb[8].mxu0 }
 0x11d   : > { %v1733_v51 = vmul.f32 %v1729_v50, %v1729_v50  ;;  %v1735_v52 = vpop.f32.mrb[9].mxu0 }
 0x11e   : > { %v1418_v53 = vpack.c.bf16 %v1729_v50, %v1735_v52  ;;  %v1741_v54 = vmul.f32 %v1735_v52, %v1735_v52 }
 0x120   : > { %v1745_v56 = vpop.f32.mrb[10].mxu0 }
 0x121   : > { %v1749_v57 = vmul.f32 %v1745_v56, %v1745_v56  ;;  %v1751_v58 = vpop.f32.mrb[11].mxu0 }
 0x122   : > { %v1422_v59 = vpack.c.bf16 %v1745_v56, %v1751_v58  ;;  %v1757_v60 = vmul.f32 %v1751_v58, %v1751_v58 }
 0x124   : > { %v1761_v62 = vpop.f32.mrb[12].mxu0 }
 0x125   : > { %v1765_v63 = vmul.f32 %v1761_v62, %v1761_v62  ;;  %v1767_v0 = vpop.f32.mrb[13].mxu0 }
 0x126   : > { %v1426_v1 = vpack.c.bf16 %v1761_v62, %v1767_v0  ;;  %v1773_v2 = vmul.f32 %v1767_v0, %v1767_v0 }
 0x128   : > { %v1777_v4 = vpop.f32.mrb[14].mxu0 }
 0x129   : > { %v1781_v5 = vmul.f32 %v1777_v4, %v1777_v4  ;;  %v1783_v6 = vpop.f32.mrb[15].mxu0 }
 0x12a   : > { %v1430_v7 = vpack.c.bf16 %v1777_v4, %v1783_v6  ;;  %v1789_v8 = vmul.f32 %v1783_v6, %v1783_v6 }
 0x12c   : > { %v1298_v10 = vpop.f32.mrb[16].mxu0 }
 0x12d   : > { %v1793_v11 = vmul.f32 %v1298_v10, %v1298_v10  ;;  %v388_v12 = vpop.f32.mrb[17].mxu0 }
 0x12e   : > { %v1795_v13 = vmul.f32 %v388_v12, %v388_v12  ;;  %v1400_v14 = vpack.c.bf16 %v1298_v10, %v388_v12 }
 0x130   : > { %v1301_v16 = vpop.f32.mrb[18].mxu0  ;;  %1401 = vmatprep.subr.bf16.mxu1 %v1400_v14 }
 0x131   : > { %v1799_v17 = vmul.f32 %v1301_v16, %v1301_v16  ;;  %v398_v18 = vpop.f32.mrb[19].mxu0  ;;  %1403 = vmatpush3.bf16.msra.mxu1 %v1402_v30 }
 0x132   : > { %v1404_v19 = vpack.c.bf16 %v1301_v16, %v398_v18  ;;  %v1801_v20 = vmul.f32 %v398_v18, %v398_v18 }
 0x134   : > { %v1304_v22 = vpop.f32.mrb[20].mxu0  ;;  %1405 = vmatprep.subr.bf16.mxu1 %v1404_v19 }
 0x135   : > { %v1805_v23 = vmul.f32 %v1304_v22, %v1304_v22  ;;  %v408_v24 = vpop.f32.mrb[21].mxu0  ;;  %1407 = vmatpush3.bf16.msra.mxu1 %v1406_v35 }
 0x136   : > { %v1408_v26 = vpack.c.bf16 %v1304_v22, %v408_v24  ;;  %v1807_v28 = vmul.f32 %v408_v24, %v408_v24 }
 0x138   : > { %v1307_v34 = vpop.f32.mrb[22].mxu0  ;;  %1409 = vmatprep.subr.bf16.mxu1 %v1408_v26 }
 0x139   : > { %v1811_v30 = vmul.f32 %v1307_v34, %v1307_v34  ;;  %v418_v38 = vpop.f32.mrb[23].mxu0  ;;  %1411 = vmatpush3.bf16.msra.mxu1 %v1410_v41 }
 0x13a   : > { %v1412_v40 = vpack.c.bf16 %v1307_v34, %v418_v38  ;;  %v1813_v44 = vmul.f32 %v418_v38, %v418_v38 }
 0x13c   : > { %v1310_v50 = vpop.f32.mrb[24].mxu0  ;;  %1413 = vmatprep.subr.bf16.mxu1 %v1412_v40 }
 0x13d   : > { %v1817_v35 = vmul.f32 %v1310_v50, %v1310_v50  ;;  %v428_v52 = vpop.f32.mrb[25].mxu0  ;;  %1415 = vmatpush3.bf16.msra.mxu1 %v1414_v47 }
 0x13e   : > { %v1416_v10 = vpack.c.bf16 %v1310_v50, %v428_v52  ;;  %v1819_v12 = vmul.f32 %v428_v52, %v428_v52 }
 0x140   : > { %v1313_v16 = vpop.f32.mrb[26].mxu0  ;;  %1417 = vmatprep.subr.bf16.mxu1 %v1416_v10 }
 0x141   : > { %v1823_v41 = vmul.f32 %v1313_v16, %v1313_v16  ;;  %v438_v18 = vpop.f32.mrb[27].mxu0  ;;  %1419 = vmatpush3.bf16.msra.mxu1 %v1418_v53 }
 0x142   : > { %v1420_v19 = vpack.c.bf16 %v1313_v16, %v438_v18  ;;  %v1825_v22 = vmul.f32 %v438_v18, %v438_v18 }
 0x144   : > { %v1316_v26 = vpop.f32.mrb[28].mxu0  ;;  %1421 = vmatprep.subr.bf16.mxu1 %v1420_v19 }
 0x145   : > { %v1829_v47 = vmul.f32 %v1316_v26, %v1316_v26  ;;  %v448_v34 = vpop.f32.mrb[29].mxu0  ;;  %1423 = vmatpush3.bf16.msra.mxu1 %v1422_v59 }
 0x146   : > { %v1424_v38 = vpack.c.bf16 %v1316_v26, %v448_v34  ;;  %v1834_v40 = vmul.f32 %v448_v34, %v448_v34 }
 0x148   : > { %v1319_v50 = vpop.f32.mrb[30].mxu0  ;;  %1425 = vmatprep.subr.bf16.mxu1 %v1424_v38 }
 0x149   : > { %v1838_v52 = vmul.f32 %v1319_v50, %v1319_v50  ;;  %v458_v10 = vpop.f32.mrb[31].mxu0  ;;  %1427 = vmatpush3.bf16.msra.mxu1 %v1426_v1 }
 0x14a   : > { %v1428_v16 = vpack.c.bf16 %v1319_v50, %v458_v10  ;;  %v1843_v18 = vmul.f32 %v458_v10, %v458_v10 }
 0x14c   : > { %v1322_v58 = vpop.f32.mrb[32].mxu0  ;;  %1429 = vmatprep.subr.bf16.mxu1 %v1428_v16 }
 0x14d   : > { %v1847_v59 = vmul.f32 %v1322_v58, %v1322_v58  ;;  %v468_v19 = vpop.f32.mrb[33].mxu0  ;;  %1431 = vmatpush3.bf16.msra.mxu1 %v1430_v7 }
 0x14e   : > { %v1434_v26 = vpack.c.bf16 %v1322_v58, %v468_v19  ;;  %v1852_v34 = vmul.f32 %v468_v19, %v468_v19 }
 0x150   : > { %v1325_v0 = vpop.f32.mrb[34].mxu0  ;;  %693 = vmatmul.mubr.f32.vlgmr.msra.gmra.mrb[0].mxu1 %v2080_v25 }
 0x151   : > { %v1857_v1 = vmul.f32 %v1325_v0, %v1325_v0  ;;  %v478_v38 = vpop.f32.mrb[35].mxu0  ;;  %762 = vmatprep.mubr.f32.mxu1 %v2080_v25 }
 0x152   : > { %v1438_v50 = vpack.c.bf16 %v1325_v0, %v478_v38  ;;  %v1860_v10 = vmul.f32 %v478_v38, %v478_v38 }
 0x153   : > { %2098 = vst [vmem:[#allocation2_spill] sm:$0xff] %v1857_v1 }
 0x154   : > { %2099 = vst [vmem:[#allocation3_spill] sm:$0xff] %v1860_v10  ;;  %v1328_v6 = vpop.f32.mrb[36].mxu0 }
 0x155   : > { %v1864_v7 = vmul.f32 %v1328_v6, %v1328_v6  ;;  %v488_v16 = vpop.f32.mrb[37].mxu0 }
 0x156   : > { %v1442_v58 = vpack.c.bf16 %v1328_v6, %v488_v16  ;;  %v1866_v19 = vmul.f32 %v488_v16, %v488_v16 }
 0x157   : > { %2100 = vst [vmem:[#allocation4_spill] sm:$0xff] %v1864_v7 }
 0x158   : > { %2101 = vst [vmem:[#allocation5_spill] sm:$0xff] %v1866_v19  ;;  %v1870_v9 = vpop.f32.mrb[38].mxu0 }
 0x159   : > { %v1874_v0 = vmul.f32 %v1870_v9, %v1870_v9  ;;  %v498_v38 = vpop.f32.mrb[39].mxu0 }
 0x15a   : > { %v1446_v56 = vpack.c.bf16 %v1870_v9, %v498_v38  ;;  %v1877_v4 = vmul.f32 %v498_v38, %v498_v38 }
 0x15b   : > { %2102 = vst [vmem:[#allocation6_spill] sm:$0xff] %v1874_v0 }
 0x15c   : > { %2103 = vst [vmem:[#allocation7_spill] sm:$0xff] %v1877_v4  ;;  %v1881_v6 = vpop.f32.mrb[40].mxu0 }
 0x15d   : > { %v1885_v16 = vmul.f32 %v1881_v6, %v1881_v6  ;;  %v1887_v62 = vpop.f32.mrb[41].mxu0 }
 0x15e   : > { %v1450_v53 = vpack.c.bf16 %v1881_v6, %v1887_v62  ;;  %v1893_v61 = vmul.f32 %v1887_v62, %v1887_v62 }
 0x15f   : > { %2104 = vst [vmem:[#allocation8_spill] sm:$0xff] %v1885_v16 }
 0x160   : > { %2105 = vst [vmem:[#allocation9_spill] sm:$0xff] %v1893_v61  ;;  %v1897_v38 = vpop.f32.mrb[42].mxu0 }
 0x161   : > { %v1901_v3 = vmul.f32 %v1897_v38, %v1897_v38  ;;  %v1903_v24 = vpop.f32.mrb[43].mxu0 }
 0x162   : > { %v1909_v6 = vmul.f32 %v1903_v24, %v1903_v24 }
 0x163   : > { %2106 = vst [vmem:[#allocation10_spill] sm:$0xff] %v1901_v3 }
 0x164   : > { %2107 = vst [vmem:[#allocation11_spill] sm:$0xff] %v1909_v6  ;;  %v1913_v14 = vpop.f32.mrb[44].mxu0 }
 0x165   : > { %v1917_v9 = vmul.f32 %v1913_v14, %v1913_v14  ;;  %v1919_v49 = vpop.f32.mrb[45].mxu0 }
 0x166   : > { %v1925_v43 = vmul.f32 %v1919_v49, %v1919_v49 }
 0x167   : > { %2108 = vst [vmem:[#allocation12_spill] sm:$0xff] %v1917_v9 }
 0x168   : > { %2109 = vst [vmem:[#allocation13_spill] sm:$0xff] %v1925_v43  ;;  %v1929_v37 = vpop.f32.mrb[46].mxu0 }
 0x169   : > { %v1933_v62 = vmul.f32 %v1929_v37, %v1929_v37  ;;  %v1935_v21 = vpop.f32.mrb[47].mxu0 }
 0x16a   : > { %v1941_v25 = vmul.f32 %v1935_v21, %v1935_v21 }
 0x16b   : > { %2110 = vst [vmem:[#allocation14_spill] sm:$0xff] %v1933_v62 }
 0x16c   : > { %2111 = vst [vmem:[#allocation15_spill] sm:$0xff] %v1941_v25  ;;  %v1346_v46 = vpop.f32.mrb[48].mxu0 }
 0x16d   : > { %v1945_v32 = vmul.f32 %v1346_v46, %v1346_v46  ;;  %v548_v55 = vpop.f32.mrb[49].mxu0 }
 0x16e   : > { %v1432_v43 = vpack.c.bf16 %v1346_v46, %v548_v55  ;;  %v1947_v9 = vmul.f32 %v548_v55, %v548_v55 }
 0x170   : > { %v1349_v3 = vpop.f32.mrb[50].mxu0  ;;  %1433 = vmatprep.subr.bf16.mxu1 %v1432_v43 }
 0x171   : > { %v1951_v31 = vmul.f32 %v1349_v3, %v1349_v3  ;;  %v558_v61 = vpop.f32.mrb[51].mxu0  ;;  %1435 = vmatpush3.bf16.msra.mxu1 %v1434_v26 }
 0x172   : > { %v1436_v16 = vpack.c.bf16 %v1349_v3, %v558_v61  ;;  %v1953_v4 = vmul.f32 %v558_v61, %v558_v61 }
 0x174   : > { %v1352_v25 = vpop.f32.mrb[52].mxu0  ;;  %1437 = vmatprep.subr.bf16.mxu1 %v1436_v16 }
 0x175   : > { %v1957_v46 = vmul.f32 %v1352_v25, %v1352_v25  ;;  %v568_v55 = vpop.f32.mrb[53].mxu0  ;;  %1439 = vmatpush3.bf16.msra.mxu1 %v1438_v50 }
 0x176   : > { %v1440_v62 = vpack.c.bf16 %v1352_v25, %v568_v55  ;;  %v1959_v6 = vmul.f32 %v568_v55, %v568_v55 }
 0x177   : > { %2112 = vst [vmem:[#allocation16_spill] sm:$0xff] %v1957_v46 }
 0x178   : > { %2113 = vst [vmem:[#allocation17_spill] sm:$0xff] %v1959_v6  ;;  %v1355_v0 = vpop.f32.mrb[54].mxu0  ;;  %1441 = vmatprep.subr.bf16.mxu1 %v1440_v62 }
 0x179   : > { %v1963_v3 = vmul.f32 %v1355_v0, %v1355_v0  ;;  %v578_v61 = vpop.f32.mrb[55].mxu0  ;;  %1443 = vmatpush3.bf16.msra.mxu1 %v1442_v58 }
 0x17a   : > { %v1444_v26 = vpack.c.bf16 %v1355_v0, %v578_v61  ;;  %v825_v15 = vmul.f32 %v578_v61, %v578_v61 }
 0x17c   : > { %v1508_v16 = vpack.c.bf16 %v1963_v3, %v825_v15  ;;  %v1358_v19 = vpop.f32.mrb[56].mxu0  ;;  %1445 = vmatprep.subr.bf16.mxu1 %v1444_v26  ;;  %v2114_v3 = vpack.c.bf16 %v1897_v38, %v1903_v24  ;;  %v2117_v24 = vpack.c.bf16 %v1793_v11, %v1795_v13  ;;  %v2118_v38 = vmov 1.0  }
 0x17d   : > { %v828_v7 = vmul.f32 %v1358_v19, %v1358_v19  ;;  %v588_v50 = vpop.f32.mrb[57].mxu0  ;;  %1447 = vmatpush3.bf16.msra.mxu1 %v1446_v56  ;;  %v2122_v11 = vpack.c.bf16 %v1805_v23, %v1807_v28  ;;  %v2123_v13 = vpack.c.bf16 %v1712_v39, %v1714_v42  ;;  %v2128_v39 = vpack.c.bf16 %v1823_v41, %v1825_v22  ;;  %v2143_v23 = vld [vmem:[#allocation4_spill] sm:$0xff]  ;;  %v2144_v28 = vld [vmem:[#allocation5_spill] sm:$0xff]  ;;  %v2152_v41 = vld [vmem:[#allocation10_spill] sm:$0xff] }
 0x17e   : > { %v1448_v25 = vpack.c.bf16 %v1358_v19, %v588_v50  ;;  %v827_v55 = vmul.f32 %v588_v50, %v588_v50  ;;  %v2129_v42 = vpack.c.bf16 %v1749_v57, %v1757_v60  ;;  %v2134_v57 = vpack.c.bf16 %v1945_v32, %v1947_v9  ;;  %v2153_v22 = vld [vmem:[#allocation11_spill] sm:$0xff] }
 0x17f   : > { %v2135_v60 = vpack.c.bf16 %v1847_v59, %v1852_v34  ;;  %v2145_v32 = vpack.c.bf16 %v2143_v23, %v2144_v28  ;;  %v2158_v59 = vld [vmem:[#allocation14_spill] sm:$0xff]  ;;  %v2159_v34 = vld [vmem:[#allocation15_spill] sm:$0xff] }
 0x180   : > { %v1512_v10 = vpack.c.bf16 %v828_v7, %v827_v55  ;;  %v1361_v1 = vpop.f32.mrb[58].mxu0  ;;  %1449 = vmatprep.subr.bf16.mxu1 %v1448_v25  ;;  %v2119_v55 = vpack.c.bf16 %v1700_v27, %v1702_v29  ;;  %v2124_v27 = vpack.c.bf16 %v1811_v30, %v1813_v44  ;;  %v2125_v29 = vpack.c.bf16 %v1722_v45, %v1725_v48  ;;  %v2146_v30 = vld [vmem:[#allocation6_spill] sm:$0xff]  ;;  %v2147_v44 = vld [vmem:[#allocation7_spill] sm:$0xff] }
 0x181   : > { %v830_v43 = vmul.f32 %v1361_v1, %v1361_v1  ;;  %v598_v62 = vpop.f32.mrb[59].mxu0  ;;  %1451 = vmatpush3.bf16.msra.mxu1 %v1450_v53  ;;  %v2115_v53 = vpack.c.bf16 %v1913_v14, %v1919_v49  ;;  %v2120_v49 = vpack.c.bf16 %v1799_v17, %v1801_v20  ;;  %v2130_v45 = vpack.c.bf16 %v1829_v47, %v1834_v40  ;;  %v2138_v17 = vld [vmem:[#allocation3_spill] sm:$0xff]  ;;  %v2141_v20 = vld [vmem:[#allocation17_spill] sm:$0xff]  ;;  %v2155_v40 = vld [vmem:[#allocation12_spill] sm:$0xff] }
 0x182   : > { %v1452_v6 = vpack.c.bf16 %v1361_v1, %v598_v62  ;;  %v829_v46 = vmul.f32 %v598_v62, %v598_v62  ;;  %v2131_v48 = vpack.c.bf16 %v1765_v63, %v1773_v2  ;;  %v2136_v63 = vpack.c.bf16 %v1951_v31, %v1953_v4  ;;  %v2137_v2 = vld [vmem:[#allocation2_spill] sm:$0xff]  ;;  %v2149_v31 = vld [vmem:[#allocation8_spill] sm:$0xff] }
 0x183   : > { %v2154_v47 = vpack.c.bf16 %v2152_v41, %v2153_v22  ;;  %v2160_v4 = vpack.c.bf16 %v2158_v59, %v2159_v34 }
 0x184   : > { %v1516_v58 = vpack.c.bf16 %v830_v43, %v829_v46  ;;  %v1364_v0 = vpop.f32.mrb[60].mxu0  ;;  %1453 = vmatprep.subr.bf16.mxu1 %v1452_v6  ;;  %v2116_v43 = vpack.c.bf16 %v1929_v37, %v1935_v21  ;;  %v2121_v37 = vpack.c.bf16 %v1706_v33, %v1708_v36  ;;  %v2126_v33 = vpack.c.bf16 %v1817_v35, %v1819_v12  ;;  %v2150_v12 = vld [vmem:[#allocation9_spill] sm:$0xff] }
 0x185   : > { %v832_v61 = vmul.f32 %v1364_v0, %v1364_v0  ;;  %v608_v15 = vpop.f32.mrb[61].mxu0  ;;  %1455 = vmatpush3.bf16.msra.mxu1 %v2114_v3  ;;  %v2127_v36 = vpack.c.bf16 %v1733_v51, %v1741_v54  ;;  %v2132_v51 = vpack.c.bf16 %v1838_v52, %v1843_v18  ;;  %v2133_v54 = vpack.c.bf16 %v1781_v5, %v1789_v8  ;;  %v2140_v8 = vld [vmem:[#allocation16_spill] sm:$0xff]  ;;  %v2156_v52 = vld [vmem:[#allocation13_spill] sm:$0xff] }
 0x186   : > { %v1456_v56 = vpack.c.bf16 %v1364_v0, %v608_v15  ;;  %v831_v19 = vmul.f32 %v608_v15, %v608_v15  ;;  %v2139_v5 = vpack.c.bf16 %v2137_v2, %v2138_v17  ;;  %v2142_v21 = vpack.c.bf16 %v2140_v8, %v2141_v20 }
 0x187   : > { %v2148_v35 = vpack.c.bf16 %v2146_v30, %v2147_v44  ;;  %v2151_v14 = vpack.c.bf16 %v2149_v31, %v2150_v12  ;;  %v2157_v18 = vpack.c.bf16 %v2155_v40, %v2156_v52 }
 0x188   : > { %v1520_v26 = vpack.c.bf16 %v832_v61, %v831_v19  ;;  %v1367_v7 = vpop.f32.mrb[62].mxu0  ;;  %1457 = vmatprep.subr.bf16.mxu1 %v1456_v56  ;;  %v627_v61 = vld [vmem:[%s2078_s2] sm:$0xff] }
 0x189   : > { %v834_v50 = vmul.f32 %v1367_v7, %v1367_v7  ;;  %v618_v25 = vpop.f32.mrb[63].mxu0  ;;  %1459 = vmatpush3.bf16.msra.mxu1 %v2115_v53  ;;  %v770_v53 = vld [vmem:[%s2079_s3] sm:$0xff] }
 0x18a   : > { %v1460_v1 = vpack.c.bf16 %v1367_v7, %v618_v25  ;;  %v833_v46 = vmul.f32 %v618_v25, %v618_v25 }
 0x18c   : > { %v1524_v6 = vpack.c.bf16 %v834_v50, %v833_v46  ;;  %1461 = vmatprep.subr.bf16.mxu1 %v1460_v1 }
 0x18d   : > { %1463 = vmatpush3.bf16.msra.mxu1 %v2116_v43 }
 0x18e   : > { %1465 = vmatprep.subr.bf16.mxu1 %v2117_v24 }
 0x190   : > { %763 = vmatmul.mubr.f32.vlgmr.msra.gmra.mrb[2].mxu1 %v2118_v38 }
 0x191   : > { %1467 = vmatpush3.bf16.msra.mxu1 %v2119_v55  ;;  %899 = vmatprep.mubr.f32.mxu1 %v2118_v38 }
 0x192   : > { %1469 = vmatprep.subr.bf16.mxu1 %v2120_v49 }
 0x195   : > { %1471 = vmatpush3.bf16.msra.mxu1 %v2121_v37 }
 0x196   : > { %1473 = vmatprep.subr.bf16.mxu1 %v2122_v11 }
 0x199   : > { %1475 = vmatpush3.bf16.msra.mxu1 %v2123_v13 }
 0x19a   : > { %1477 = vmatprep.subr.bf16.mxu1 %v2124_v27 }
 0x19d   : > { %1479 = vmatpush3.bf16.msra.mxu1 %v2125_v29 }
 0x19e   : > { %1481 = vmatprep.subr.bf16.mxu1 %v2126_v33 }
 0x1a1   : > { %1483 = vmatpush3.bf16.msra.mxu1 %v2127_v36 }
 0x1a2   : > { %1485 = vmatprep.subr.bf16.mxu1 %v2128_v39 }
 0x1a5   : > { %1487 = vmatpush3.bf16.msra.mxu1 %v2129_v42 }
 0x1a6   : > { %1489 = vmatprep.subr.bf16.mxu1 %v2130_v45 }
 0x1a9   : > { %1491 = vmatpush3.bf16.msra.mxu1 %v2131_v48 }
 0x1aa   : > { %1493 = vmatprep.subr.bf16.mxu1 %v2132_v51 }
 0x1ad   : > { %1495 = vmatpush3.bf16.msra.mxu1 %v2133_v54 }
 0x1ae   : > { %1497 = vmatprep.subr.bf16.mxu1 %v2134_v57 }
 0x1b0   : > { %900 = vmatmul.mubr.f32.vlgmr.msra.gmra.mrb[4].mxu1 %v2118_v38 }
 0x1b1   : > { %1499 = vmatpush3.bf16.msra.mxu1 %v2135_v60  ;;  %969 = vmatprep.mubr.f32.mxu1 %v2118_v38 }
 0x1b2   : > { %1501 = vmatprep.subr.bf16.mxu1 %v2136_v63 }
 0x1b5   : > { %1503 = vmatpush3.bf16.msra.mxu1 %v2139_v5 }
 0x1b6   : > { %1505 = vmatprep.subr.bf16.mxu1 %v2142_v21 }
 0x1b9   : > { %1507 = vmatpush3.bf16.msra.mxu1 %v2145_v32 }
 0x1ba   : > { %1509 = vmatprep.subr.bf16.mxu1 %v1508_v16 }
 0x1bd   : > { %1511 = vmatpush3.bf16.msra.mxu1 %v2148_v35 }
 0x1be   : > { %1513 = vmatprep.subr.bf16.mxu1 %v1512_v10 }
 0x1c1   : > { %1515 = vmatpush3.bf16.msra.mxu1 %v2151_v14 }
 0x1c2   : > { %1517 = vmatprep.subr.bf16.mxu1 %v1516_v58 }
 0x1c5   : > { %1519 = vmatpush3.bf16.msra.mxu1 %v2154_v47 }
 0x1c6   : > { %1521 = vmatprep.subr.bf16.mxu1 %v1520_v26 }
 0x1c9   : > { %1523 = vmatpush3.bf16.msra.mxu1 %v2157_v18 }
 0x1ca   : > { %1525 = vmatprep.subr.bf16.mxu1 %v1524_v6 }
 0x1cd   : > { %1527 = vmatpush3.bf16.msra.mxu1 %v2160_v4 }
 0x1d0   : > { %970 = vmatmul.mubr.f32.vlgmr.msra.gmra.mrb[6].mxu1 %v2118_v38 }
 0x223   : > { %v1132_v10 = vpop.f32.mrb[0].mxu1 }
 0x224   : > { %v1133_v9 = vpop.f32.mrb[1].mxu1 }
 0x225   : > { %v1134_v16 = vadd.f32 %v1133_v9, %v1132_v10 }
 0x263   : > { %v1167_v62 = vpop.f32.mrb[2].mxu1 }
 0x264   : > { %v1168_v58 = vpop.f32.mrb[3].mxu1 }
 0x265   : > { %v1169_v0 = vadd.f32 %v1168_v58, %v1167_v62 }
 0x267   : > { %v765_v15 = vadd.f32 %v1169_v0, %v1134_v16 }
 0x269   : > { %v768_v3 = vadd.f32 %v765_v15, %v627_v61 }
 0x26b   : > { %769 = vst [vmem:[%s2078_s2] sm:$0xff] %v768_v3 }
 0x283   : > { %v1202_v56 = vpop.f32.mrb[4].mxu1 }
 0x284   : > { %v1203_v19 = vpop.f32.mrb[5].mxu1 }
 0x285   : > { %v1204_v26 = vadd.f32 %v1203_v19, %v1202_v56 }
 0x2a3   : > { %v1237_v7 = vpop.f32.mrb[6].mxu1 }
 0x2a4   : > { %v1238_v50 = vpop.f32.mrb[7].mxu1 }
 0x2a5   : > { %v1239_v25 = vadd.f32 %v1238_v50, %v1237_v7 }
 0x2a7   : > { %v972_v1 = vadd.f32 %v1239_v25, %v1204_v26 }
 0x2a9   : > { %v975_v46 = vadd.f32 %v972_v1, %v770_v53 }
 0x2ab   : > { %976 = vst [vmem:[%s2079_s3] sm:$0xff] %v975_v46 }
 0x2ac PF: > { %s14_s12 = sadd.s32 1, %s1544_s12  }
 0x2ad   : > { %p11_p5 = scmp.ge.s32.totalorder %s14_s12, 6  }
 0x2af   :  { %13 = sbr.rel (!%p11_p5) target bundleno = 1 (0x1), region = 66 }

// kernel: hire_mlp_h_wai_forward.4
= control target key start
LH: loop header
LB: loop body
LE: loop exit
PB: predicated region body
PF: predicated region fallthrough
CT: control target
= control target key end

     0   :  { %s2514_s24 = smov 0   ;;  %s2516_s25 = smov 0   ;;  %s3199_s0 = inlined_call_operand.vmem [shape: f32[2,1024,128], index: 0, kind: input, shape index: {}]   ;;  %s3200_s1 = inlined_call_operand.vmem [shape: f32[128,128], index: 1, kind: input, shape index: {}]   ;;  %s3201_s2 = inlined_call_operand.vmem [shape: f32[1,128], index: 2, kind: input, shape index: {}]   ;;  %s3202_s3 = inlined_call_operand.vmem [shape: f32[1,128], index: 3, kind: input, shape index: {}]   ;;  %s3203_s4 = inlined_call_operand.vmem [shape: f32[128,128], index: 4, kind: input, shape index: {}]   ;;  %s3204_s5 = inlined_call_operand.vmem [shape: f32[1,128], index: 5, kind: input, shape index: {}]   ;;  %s3205_s6 = inlined_call_operand.vmem [shape: f32[2,1024,128], index: 6, kind: output, shape index: {0}]   ;;  %s3206_s7 = inlined_call_operand.vmem [shape: f32[2,2,8,128], index: 7, kind: output, shape index: {1}]  }
   0x1   :  { %s2518_s26 = smov 0   ;;  %s2520_s27 = smov 0  }
   0x2   :  { %s2522_s28 = smov 0  }
   0x3 LB: > { %s27_s29 = sadd.s32 1, %s2463_s26  ;;  %s30_s30 = sadd.s32 1, %s2467_s27  ;;  %s2471_s28 = sphi %s2522_s28, %s18_s28   ;;  %s2467_s27 = sphi %s2520_s27, %s3210_s27   ;;  %s2463_s26 = sphi %s2518_s26, %s3209_s26   ;;  %s2459_s25 = sphi %s2516_s25, %s3208_s25   ;;  %s2455_s24 = sphi %s2514_s24, %s3207_s24  }
   0x4   : > { %p28_p0 = scmp.ge.s32.totalorder %s27_s29, 2  ;;  %p1764_p1 = scmp.ge.s32.totalorder %s2471_s28, 1 }
   0x5   : > { %p263_p2 = scmp.lt.s32.totalorder %s2471_s28, 5 }
   0x6   : > { %s3212_s29 = smov (%p28_p0, %s27_s29), 0  ;;  %s3214_s30 = smov (!%p28_p0, %s30_s30), %s2467_s27 }
   0x7   : > { %p264_p3 = pnand %p1764_p1, %p263_p2  ;;  %p32_p4 = scmp.ge.s32.totalorder %s3214_s30, 2 }
   0x8   : > { %v403_v0 = vld [vmem:[%s3200_s1] sm:$0xff] (!%p264_p3)  ;;  %v404_v1 = vld [vmem:[%s3200_s1 + $0x8] sm:$0xff] (!%p264_p3)  ;;  %v405_v2 = vld [vmem:[%s3200_s1 + $0x10] sm:$0xff] (!%p264_p3)  ;;  %s1765_s14 = sshll.u32 (!%p264_p3), %s2455_s24, 6  ;;  %p312_p5 = scmp.lt.s32.totalorder (!%p264_p3), %s2459_s25, 1 }
   0x9   : > { %s3216_s30 = smov (%p32_p4, %s3214_s30), 0  ;;  %267 = sbr.rel (%p264_p3) target bundleno = 827 (0x33b), region = 44 }
   0xa   : > { %v2264_v3 = vpack.c.bf16 (!%p264_p3), %v404_v1, %v403_v0  ;;  %v406_v4 = vld [vmem:[%s3200_s1 + $0x18] sm:$0xff] (!%p264_p3)  ;;  %p314_p6 = scmp.lt.s32.totalorder (!%p264_p3), %s1765_s14, 127  ;;  %v407_v6 = vld [vmem:[%s3200_s1 + $0x20] sm:$0xff] (!%p264_p3)  ;;  %v408_v7 = vld [vmem:[%s3200_s1 + $0x28] sm:$0xff] (!%p264_p3)  ;;  %p333_p7 = scmp.lt.s32.totalorder (!%p264_p3), %s2455_s24, 1 }
   0xb   : > { %v2268_v5 = vpack.c.bf16 (!%p264_p3), %v406_v4, %v405_v2  ;;  %v2272_v8 = vpack.c.bf16 (!%p264_p3), %v408_v7, %v407_v6  ;;  %v409_v9 = vld [vmem:[%s3200_s1 + $0x30] sm:$0xff] (!%p264_p3)  ;;  %v410_v10 = vld [vmem:[%s3200_s1 + $0x38] sm:$0xff] (!%p264_p3)  ;;  %v411_v13 = vld [vmem:[%s3200_s1 + $0x40] sm:$0xff] (!%p264_p3) }
   0xc   : > { %2265 = vmatprep.subr.bf16.mxu0 (!%p264_p3), %v2264_v3  ;;  %v2276_v12 = vpack.c.bf16 (!%p264_p3), %v410_v10, %v409_v9  ;;  %v412_v14 = vld [vmem:[%s3200_s1 + $0x48] sm:$0xff] (!%p264_p3)  ;;  %v413_v16 = vld [vmem:[%s3200_s1 + $0x50] sm:$0xff] (!%p264_p3)  ;;  %v414_v17 = vld [vmem:[%s3200_s1 + $0x58] sm:$0xff] (!%p264_p3) }
   0xd   : > { %2267 = vmatpush3.bf16.msra.mxu0 (!%p264_p3), %v2264_v3  ;;  %v2280_v15 = vpack.c.bf16 (!%p264_p3), %v412_v14, %v411_v13  ;;  %v2284_v18 = vpack.c.bf16 (!%p264_p3), %v414_v17, %v413_v16  ;;  %v415_v19 = vld [vmem:[%s3200_s1 + $0x60] sm:$0xff] (!%p264_p3)  ;;  %v416_v20 = vld [vmem:[%s3200_s1 + $0x68] sm:$0xff] (!%p264_p3)  ;;  %v417_v22 = vld [vmem:[%s3200_s1 + $0x70] sm:$0xff] (!%p264_p3) }
   0xe   : > { %2269 = vmatprep.subr.bf16.mxu0 (!%p264_p3), %v2268_v5  ;;  %v2288_v21 = vpack.c.bf16 (!%p264_p3), %v416_v20, %v415_v19  ;;  %v418_v23 = vld [vmem:[%s3200_s1 + $0x78] sm:$0xff] (!%p264_p3)  ;;  %v1010_v25 = vld [vmem:[%s3203_s4] sm:$0xff] (!%p264_p3)  ;;  %v1011_v26 = vld [vmem:[%s3203_s4 + $0x8] sm:$0xff] (!%p264_p3) }
   0xf   : > { %v2292_v24 = vpack.c.bf16 (!%p264_p3), %v418_v23, %v417_v22  ;;  %v1012_v27 = vld [vmem:[%s3203_s4 + $0x10] sm:$0xff] (!%p264_p3)  ;;  %v2296_v29 = vpack.c.bf16 (!%p264_p3), %v1011_v26, %v1010_v25  ;;  %v1013_v30 = vld [vmem:[%s3203_s4 + $0x18] sm:$0xff] (!%p264_p3)  ;;  %v1014_v33 = vld [vmem:[%s3203_s4 + $0x20] sm:$0xff] (!%p264_p3) }
  0x10   : > { %s3218_s25 = smov (!%p312_p5, %s2459_s25), 1  ;;  %s3220_s14 = smov (!%p314_p6, %s1765_s14), 127  ;;  %v2300_v32 = vpack.c.bf16 %v1013_v30, %v1012_v27  ;;  %v1015_v34 = vld [vmem:[%s3203_s4 + $0x28] sm:$0xff]  ;;  %v1016_v38 = vld [vmem:[%s3203_s4 + $0x30] sm:$0xff]  ;;  %v1017_v39 = vld [vmem:[%s3203_s4 + $0x38] sm:$0xff] }
  0x11   : > { %s1766_s21 = sshll.u32 %s3218_s25, 7  ;;  %2271 = vmatpush3.bf16.msra.mxu0 %v2268_v5  ;;  %2297 = vmatprep.subr.bf16.mxu1 %v2296_v29  ;;  %v2304_v36 = vpack.c.bf16 %v1015_v34, %v1014_v33  ;;  %v2308_v41 = vpack.c.bf16 %v1017_v39, %v1016_v38  ;;  %v1018_v43 = vld [vmem:[%s3203_s4 + $0x40] sm:$0xff]  ;;  %v1019_v44 = vld [vmem:[%s3203_s4 + $0x48] sm:$0xff]  ;;  %v1020_v48 = vld [vmem:[%s3203_s4 + $0x50] sm:$0xff]  ;;  %s3222_s24 = smov (!%p333_p7, %s2455_s24), 1 }
  0x12   : > { %s2568_s22 = sadd.s32 %s1766_s21, %s3220_s14  ;;  %2273 = vmatprep.subr.bf16.mxu0 %v2272_v8  ;;  %2299 = vmatpush3.bf16.msra.mxu1 %v2296_v29  ;;  %v2312_v46 = vpack.c.bf16 %v1019_v44, %v1018_v43  ;;  %v1021_v49 = vld [vmem:[%s3203_s4 + $0x58] sm:$0xff]  ;;  %v1022_v22 = vld [vmem:[%s3203_s4 + $0x60] sm:$0xff]  ;;  %v1023_v23 = vld [vmem:[%s3203_s4 + $0x68] sm:$0xff] }
  0x13   : > { %s1767_s11 = sshll.u32 %s2568_s22, 3  ;;  %2301 = vmatprep.subr.bf16.mxu1 %v2300_v32  ;;  %v2316_v51 = vpack.c.bf16 %v1021_v49, %v1020_v48  ;;  %v2320_v25 = vpack.c.bf16 %v1023_v23, %v1022_v22  ;;  %v1024_v27 = vld [vmem:[%s3203_s4 + $0x70] sm:$0xff]  ;;  %v2723_v48 = vld [vmem:[%s3201_s2] ss:$0 sm:$0xff]  ;;  %s1771_s22 = sshll.u32 %s3218_s25, 1 }
  0x14   : > { %s2582_s15 = scalar_lea.vmem %s3199_s0, %s1767_s11  ;;  %s2868_s18 = scalar_lea.vmem %s3205_s6, %s1767_s11 }
  0x15   : > { %v339_v11 = vld [vmem:[%s2582_s15] sm:$0xff]  ;;  %2275 = vmatpush3.bf16.msra.mxu0 %v2272_v8  ;;  %v340_v28 = vld [vmem:[%s2582_s15 + $0x8] sm:$0xff]  ;;  %v341_v31 = vld [vmem:[%s2582_s15 + $0x10] sm:$0xff]  ;;  %s336_s11 = sadd.s32 %s1771_s22, %s3222_s24 }
  0x16   : > { %2040 = vmatprep.mubr.f32.mxu0 %v339_v11  ;;  %2277 = vmatprep.subr.bf16.mxu0 %v2276_v12  ;;  %v342_v35 = vld [vmem:[%s2582_s15 + $0x18] sm:$0xff]  ;;  %v343_v37 = vld [vmem:[%s2582_s15 + $0x20] sm:$0xff]  ;;  %v344_v40 = vld [vmem:[%s2582_s15 + $0x28] sm:$0xff]  ;;  %s1772_s19 = sshll.u32 %s336_s11, 3 }
  0x17   : > { %2303 = vmatpush3.bf16.msra.mxu1 %v2300_v32  ;;  %v345_v42 = vld [vmem:[%s2582_s15 + $0x30] sm:$0xff]  ;;  %v346_v45 = vld [vmem:[%s2582_s15 + $0x38] sm:$0xff]  ;;  %v347_v47 = vld [vmem:[%s2582_s15 + $0x40] sm:$0xff]  ;;  %s338_s23 = scalar_lea.vmem %s3206_s7, %s1772_s19 }
  0x18   : > { %2305 = vmatprep.subr.bf16.mxu1 %v2304_v36  ;;  %v348_v50 = vld [vmem:[%s2582_s15 + $0x48] sm:$0xff]  ;;  %v349_v52 = vld [vmem:[%s2582_s15 + $0x50] sm:$0xff]  ;;  %v350_v53 = vld [vmem:[%s2582_s15 + $0x58] sm:$0xff] }
  0x19   : > { %2279 = vmatpush3.bf16.msra.mxu0 %v2276_v12  ;;  %v351_v54 = vld [vmem:[%s2582_s15 + $0x60] sm:$0xff]  ;;  %v352_v55 = vld [vmem:[%s2582_s15 + $0x68] sm:$0xff]  ;;  %v353_v56 = vld [vmem:[%s2582_s15 + $0x70] sm:$0xff] }
  0x1a   : > { %2281 = vmatprep.subr.bf16.mxu0 %v2280_v15  ;;  %v354_v57 = vld [vmem:[%s2582_s15 + $0x78] sm:$0xff]  ;;  %v355_v58 = vld [vmem:[%s2582_s15 + $0x80] sm:$0xff]  ;;  %v356_v59 = vld [vmem:[%s2582_s15 + $0x88] sm:$0xff] }
  0x1b   : > { %2307 = vmatpush3.bf16.msra.mxu1 %v2304_v36  ;;  %v357_v60 = vld [vmem:[%s2582_s15 + $0x90] sm:$0xff]  ;;  %v358_v61 = vld [vmem:[%s2582_s15 + $0x98] sm:$0xff]  ;;  %v359_v62 = vld [vmem:[%s2582_s15 + $0xa0] sm:$0xff] }
  0x1c   : > { %2309 = vmatprep.subr.bf16.mxu1 %v2308_v41  ;;  %v360_v63 = vld [vmem:[%s2582_s15 + $0xa8] sm:$0xff]  ;;  %v361_v0 = vld [vmem:[%s2582_s15 + $0xb0] sm:$0xff]  ;;  %v362_v1 = vld [vmem:[%s2582_s15 + $0xb8] sm:$0xff] }
  0x1d   : > { %2283 = vmatpush3.bf16.msra.mxu0 %v2280_v15  ;;  %v363_v2 = vld [vmem:[%s2582_s15 + $0xc0] sm:$0xff]  ;;  %v364_v3 = vld [vmem:[%s2582_s15 + $0xc8] sm:$0xff]  ;;  %v365_v4 = vld [vmem:[%s2582_s15 + $0xd0] sm:$0xff] }
  0x1e   : > { %2285 = vmatprep.subr.bf16.mxu0 %v2284_v18  ;;  %v366_v5 = vld [vmem:[%s2582_s15 + $0xd8] sm:$0xff]  ;;  %v367_v6 = vld [vmem:[%s2582_s15 + $0xe0] sm:$0xff]  ;;  %v368_v7 = vld [vmem:[%s2582_s15 + $0xe8] sm:$0xff] }
  0x1f   : > { %2311 = vmatpush3.bf16.msra.mxu1 %v2308_v41  ;;  %v369_v8 = vld [vmem:[%s2582_s15 + $0xf0] sm:$0xff]  ;;  %v370_v9 = vld [vmem:[%s2582_s15 + $0xf8] sm:$0xff]  ;;  %v371_v10 = vld [vmem:[%s2582_s15 + $0x100] sm:$0xff] }
  0x20   : > { %2313 = vmatprep.subr.bf16.mxu1 %v2312_v46  ;;  %v372_v11 = vld [vmem:[%s2582_s15 + $0x108] sm:$0xff]  ;;  %v373_v12 = vld [vmem:[%s2582_s15 + $0x110] sm:$0xff]  ;;  %v374_v13 = vld [vmem:[%s2582_s15 + $0x118] sm:$0xff] }
  0x21   : > { %2287 = vmatpush3.bf16.msra.mxu0 %v2284_v18  ;;  %v375_v14 = vld [vmem:[%s2582_s15 + $0x120] sm:$0xff]  ;;  %v376_v15 = vld [vmem:[%s2582_s15 + $0x128] sm:$0xff]  ;;  %v377_v16 = vld [vmem:[%s2582_s15 + $0x130] sm:$0xff] }
  0x22   : > { %2289 = vmatprep.subr.bf16.mxu0 %v2288_v21  ;;  %v378_v17 = vld [vmem:[%s2582_s15 + $0x138] sm:$0xff]  ;;  %v379_v18 = vld [vmem:[%s2582_s15 + $0x140] sm:$0xff]  ;;  %v380_v19 = vld [vmem:[%s2582_s15 + $0x148] sm:$0xff] }
  0x23   : > { %2315 = vmatpush3.bf16.msra.mxu1 %v2312_v46  ;;  %v381_v20 = vld [vmem:[%s2582_s15 + $0x150] sm:$0xff]  ;;  %v384_v26 = vld [vmem:[%s2582_s15 + $0x168] sm:$0xff]  ;;  %v387_v32 = vld [vmem:[%s2582_s15 + $0x180] sm:$0xff] }
  0x24   : > { %2317 = vmatprep.subr.bf16.mxu1 %v2316_v51  ;;  %v385_v29 = vld [vmem:[%s2582_s15 + $0x170] sm:$0xff]  ;;  %v388_v33 = vld [vmem:[%s2582_s15 + $0x188] sm:$0xff]  ;;  %v391_v36 = vld [vmem:[%s2582_s15 + $0x1a0] sm:$0xff] }
  0x25   : > { %2291 = vmatpush3.bf16.msra.mxu0 %v2288_v21  ;;  %v382_v21 = vld [vmem:[%s2582_s15 + $0x158] sm:$0xff]  ;;  %v389_v34 = vld [vmem:[%s2582_s15 + $0x190] sm:$0xff]  ;;  %v396_v41 = vld [vmem:[%s2582_s15 + $0x1c8] sm:$0xff] }
  0x26   : > { %2293 = vmatprep.subr.bf16.mxu0 %v2292_v24  ;;  %v393_v38 = vld [vmem:[%s2582_s15 + $0x1b0] sm:$0xff]  ;;  %v394_v39 = vld [vmem:[%s2582_s15 + $0x1b8] sm:$0xff]  ;;  %v399_v44 = vld [vmem:[%s2582_s15 + $0x1e0] sm:$0xff] }
  0x27   : > { %2319 = vmatpush3.bf16.msra.mxu1 %v2316_v51  ;;  %v398_v43 = vld [vmem:[%s2582_s15 + $0x1d8] sm:$0xff]  ;;  %v401_v46 = vld [vmem:[%s2582_s15 + $0x1f0] sm:$0xff] }
  0x28   : > { %2321 = vmatprep.subr.bf16.mxu1 %v2320_v25 }
  0x29   : > { %2295 = vmatpush3.bf16.msra.mxu0 %v2292_v24  ;;  %v383_v24 = vld [vmem:[%s2582_s15 + $0x160] sm:$0xff] }
  0x2b   : > { %2323 = vmatpush3.bf16.msra.mxu1 %v2320_v25 }
  0x2c   : > { %2041 = vmatmul.mubr.f32.vlgmr.msra.gmra.mrb[0].mxu0 %v340_v28  ;;  %v1025_v28 = vld [vmem:[%s3203_s4 + $0x78] sm:$0xff] }
  0x2d   : > { %2043 = vmatprep.mubr.f32.mxu0 %v341_v31  ;;  %v2324_v30 = vpack.c.bf16 %v1025_v28, %v1024_v27  ;;  %v386_v31 = vld [vmem:[%s2582_s15 + $0x178] sm:$0xff] }
  0x2f   : > { %2325 = vmatprep.subr.bf16.mxu1 %v2324_v30 }
  0x30   : > { %2044 = vmatmul.mubr.f32.gmra.mrb[2].mxu0 %v342_v35  ;;  %2327 = vmatpush3.bf16.msra.mxu1 %v2324_v30  ;;  %v390_v35 = vld [vmem:[%s2582_s15 + $0x198] sm:$0xff] }
  0x31   : > { %2046 = vmatprep.mubr.f32.mxu0 %v343_v37  ;;  %v392_v37 = vld [vmem:[%s2582_s15 + $0x1a8] sm:$0xff] }
  0x34   : > { %2047 = vmatmul.mubr.f32.gmra.mrb[4].mxu0 %v344_v40  ;;  %v395_v40 = vld [vmem:[%s2582_s15 + $0x1c0] sm:$0xff] }
  0x35   : > { %2049 = vmatprep.mubr.f32.mxu0 %v345_v42  ;;  %v397_v42 = vld [vmem:[%s2582_s15 + $0x1d0] sm:$0xff] }
  0x38   : > { %2050 = vmatmul.mubr.f32.gmra.mrb[6].mxu0 %v346_v45  ;;  %v400_v45 = vld [vmem:[%s2582_s15 + $0x1e8] sm:$0xff] }
  0x39   : > { %2052 = vmatprep.mubr.f32.mxu0 %v347_v47  ;;  %v402_v47 = vld [vmem:[%s2582_s15 + $0x1f8] sm:$0xff] }
  0x3c   : > { %2053 = vmatmul.mubr.f32.gmra.mrb[8].mxu0 %v348_v50  ;;  %v2728_v50 = vld [vmem:[%s3202_s3] ss:$0 sm:$0xff] }
  0x3d   : > { %2055 = vmatprep.mubr.f32.mxu0 %v349_v52 }
  0x40   : > { %2056 = vmatmul.mubr.f32.gmra.mrb[10].mxu0 %v350_v53 }
  0x41   : > { %2058 = vmatprep.mubr.f32.mxu0 %v351_v54 }
  0x44   : > { %2059 = vmatmul.mubr.f32.gmra.mrb[12].mxu0 %v352_v55 }
  0x45   : > { %2061 = vmatprep.mubr.f32.mxu0 %v353_v56 }
  0x48   : > { %2062 = vmatmul.mubr.f32.gmra.mrb[14].mxu0 %v354_v57 }
  0x49   : > { %2064 = vmatprep.mubr.f32.mxu0 %v355_v58 }
  0x4c   : > { %2065 = vmatmul.mubr.f32.gmra.mrb[16].mxu0 %v356_v59 }
  0x4d   : > { %2067 = vmatprep.mubr.f32.mxu0 %v357_v60 }
  0x50   : > { %2068 = vmatmul.mubr.f32.gmra.mrb[18].mxu0 %v358_v61 }
  0x51   : > { %2070 = vmatprep.mubr.f32.mxu0 %v359_v62 }
  0x54   : > { %2071 = vmatmul.mubr.f32.gmra.mrb[20].mxu0 %v360_v63 }
  0x55   : > { %2073 = vmatprep.mubr.f32.mxu0 %v361_v0 }
  0x58   : > { %2074 = vmatmul.mubr.f32.gmra.mrb[22].mxu0 %v362_v1 }
  0x59   : > { %2076 = vmatprep.mubr.f32.mxu0 %v363_v2 }
  0x5c   : > { %2077 = vmatmul.mubr.f32.gmra.mrb[24].mxu0 %v364_v3 }
  0x5d   : > { %2079 = vmatprep.mubr.f32.mxu0 %v365_v4 }
  0x60   : > { %2080 = vmatmul.mubr.f32.gmra.mrb[26].mxu0 %v366_v5 }
  0x61   : > { %2082 = vmatprep.mubr.f32.mxu0 %v367_v6 }
  0x64   : > { %2083 = vmatmul.mubr.f32.gmra.mrb[28].mxu0 %v368_v7 }
  0x65   : > { %2085 = vmatprep.mubr.f32.mxu0 %v369_v8 }
  0x68   : > { %2086 = vmatmul.mubr.f32.gmra.mrb[30].mxu0 %v370_v9 }
  0x69   : > { %2088 = vmatprep.mubr.f32.mxu0 %v371_v10 }
  0x6c   : > { %2089 = vmatmul.mubr.f32.gmra.mrb[32].mxu0 %v372_v11 }
  0x6d   : > { %2091 = vmatprep.mubr.f32.mxu0 %v373_v12 }
  0x70   : > { %2092 = vmatmul.mubr.f32.gmra.mrb[34].mxu0 %v374_v13 }
  0x71   : > { %2094 = vmatprep.mubr.f32.mxu0 %v375_v14 }
  0x74   : > { %2095 = vmatmul.mubr.f32.gmra.mrb[36].mxu0 %v376_v15 }
  0x75   : > { %2097 = vmatprep.mubr.f32.mxu0 %v377_v16 }
  0x78   : > { %2098 = vmatmul.mubr.f32.gmra.mrb[38].mxu0 %v378_v17 }
  0x79   : > { %2100 = vmatprep.mubr.f32.mxu0 %v379_v18 }
  0x7c   : > { %2101 = vmatmul.mubr.f32.gmra.mrb[40].mxu0 %v380_v19 }
  0x7d   : > { %2103 = vmatprep.mubr.f32.mxu0 %v381_v20 }
  0x80   : > { %2104 = vmatmul.mubr.f32.gmra.mrb[42].mxu0 %v382_v21 }
  0x81   : > { %2106 = vmatprep.mubr.f32.mxu0 %v383_v24 }
  0x84   : > { %2107 = vmatmul.mubr.f32.gmra.mrb[44].mxu0 %v384_v26 }
  0x85   : > { %2109 = vmatprep.mubr.f32.mxu0 %v385_v29 }
  0x88   : > { %2110 = vmatmul.mubr.f32.gmra.mrb[46].mxu0 %v386_v31 }
  0x89   : > { %2112 = vmatprep.mubr.f32.mxu0 %v387_v32 }
  0x8c   : > { %2113 = vmatmul.mubr.f32.gmra.mrb[48].mxu0 %v388_v33 }
  0x8d   : > { %2115 = vmatprep.mubr.f32.mxu0 %v389_v34 }
  0x90   : > { %2116 = vmatmul.mubr.f32.gmra.mrb[50].mxu0 %v390_v35 }
  0x91   : > { %2118 = vmatprep.mubr.f32.mxu0 %v391_v36 }
  0x94   : > { %2119 = vmatmul.mubr.f32.gmra.mrb[52].mxu0 %v392_v37 }
  0x95   : > { %2121 = vmatprep.mubr.f32.mxu0 %v393_v38 }
  0x98   : > { %2122 = vmatmul.mubr.f32.gmra.mrb[54].mxu0 %v394_v39 }
  0x99   : > { %2124 = vmatprep.mubr.f32.mxu0 %v395_v40 }
  0x9c   : > { %2125 = vmatmul.mubr.f32.gmra.mrb[56].mxu0 %v396_v41 }
  0x9d   : > { %2127 = vmatprep.mubr.f32.mxu0 %v397_v42 }
  0xa0   : > { %2128 = vmatmul.mubr.f32.gmra.mrb[58].mxu0 %v398_v43 }
  0xa1   : > { %2130 = vmatprep.mubr.f32.mxu0 %v399_v44 }
  0xa4   : > { %2131 = vmatmul.mubr.f32.gmra.mrb[60].mxu0 %v400_v45 }
  0xa5   : > { %2133 = vmatprep.mubr.f32.mxu0 %v401_v46 }
  0xa8   : > { %2134 = vmatmul.mubr.f32.gmra.mrb[62].mxu0 %v402_v47 }
  0xff   : > { %v2042_v49 = vpop.f32.mrb[0].mxu0 }
 0x100   : > { %v812_v51 = vmul.f32 %v2042_v49, %v2723_v48  ;;  %v485_v52 = vpop.f32.mrb[1].mxu0 }
 0x101   : > { %v811_v53 = vmul.f32 %v2723_v48, %v485_v52 }
 0x102   : > { %v883_v54 = vadd.f32 %v2728_v50, %v812_v51 }
 0x103   : > { %v2045_v55 = vpop.f32.mrb[2].mxu0  ;;  %v882_v56 = vadd.f32 %v2728_v50, %v811_v53 }
 0x104   : > { %v814_v57 = vmul.f32 %v2045_v55, %v2723_v48  ;;  %v495_v58 = vpop.f32.mrb[3].mxu0  ;;  %v947_v61 = vmax.f32 %v883_v54, 0.0 }
 0x105   : > { %v813_v59 = vmul.f32 %v2723_v48, %v495_v58  ;;  %v946_v60 = vmax.f32 %v882_v56, 0.0 }
 0x106   : > { %v885_v62 = vadd.f32 %v2728_v50, %v814_v57 }
 0x107   : > { %v884_v63 = vadd.f32 %v2728_v50, %v813_v59  ;;  %v2048_v0 = vpop.f32.mrb[4].mxu0  ;;  %2168 = vmatprep.mubr.f32.mxu1 %v946_v60 }
 0x108   : > { %v816_v1 = vmul.f32 %v2048_v0, %v2723_v48  ;;  %v505_v2 = vpop.f32.mrb[5].mxu0  ;;  %2169 = vmatmul.mubr.f32.vlgmr.msra.gmra.mrb[0].mxu1 %v947_v61  ;;  %v949_v5 = vmax.f32 %v885_v62, 0.0 }
 0x109   : > { %v948_v3 = vmax.f32 %v884_v63, 0.0  ;;  %v815_v4 = vmul.f32 %v2723_v48, %v505_v2 }
 0x10a   : > { %v887_v6 = vadd.f32 %v2728_v50, %v816_v1 }
 0x10b   : > { %v886_v7 = vadd.f32 %v2728_v50, %v815_v4  ;;  %v2051_v8 = vpop.f32.mrb[6].mxu0  ;;  %2171 = vmatprep.mubr.f32.mxu1 %v948_v3 }
 0x10c   : > { %v818_v9 = vmul.f32 %v2051_v8, %v2723_v48  ;;  %v515_v10 = vpop.f32.mrb[7].mxu0  ;;  %2172 = vmatmul.mubr.f32.gmra.mrb[2].mxu1 %v949_v5  ;;  %v951_v13 = vmax.f32 %v887_v6, 0.0 }
 0x10d   : > { %v950_v11 = vmax.f32 %v886_v7, 0.0  ;;  %v817_v12 = vmul.f32 %v2723_v48, %v515_v10 }
 0x10e   : > { %v889_v14 = vadd.f32 %v2728_v50, %v818_v9 }
 0x10f   : > { %v888_v15 = vadd.f32 %v2728_v50, %v817_v12  ;;  %v2054_v16 = vpop.f32.mrb[8].mxu0  ;;  %2174 = vmatprep.mubr.f32.mxu1 %v950_v11 }
 0x110   : > { %v820_v17 = vmul.f32 %v2054_v16, %v2723_v48  ;;  %v525_v18 = vpop.f32.mrb[9].mxu0  ;;  %2175 = vmatmul.mubr.f32.gmra.mrb[4].mxu1 %v951_v13  ;;  %v953_v21 = vmax.f32 %v889_v14, 0.0 }
 0x111   : > { %v952_v19 = vmax.f32 %v888_v15, 0.0  ;;  %v819_v20 = vmul.f32 %v2723_v48, %v525_v18 }
 0x112   : > { %v891_v22 = vadd.f32 %v2728_v50, %v820_v17 }
 0x113   : > { %v890_v23 = vadd.f32 %v2728_v50, %v819_v20  ;;  %v2057_v24 = vpop.f32.mrb[10].mxu0  ;;  %2177 = vmatprep.mubr.f32.mxu1 %v952_v19 }
 0x114   : > { %v822_v25 = vmul.f32 %v2057_v24, %v2723_v48  ;;  %v535_v26 = vpop.f32.mrb[11].mxu0  ;;  %2178 = vmatmul.mubr.f32.gmra.mrb[6].mxu1 %v953_v21  ;;  %v955_v29 = vmax.f32 %v891_v22, 0.0 }
 0x115   : > { %v954_v27 = vmax.f32 %v890_v23, 0.0  ;;  %v821_v28 = vmul.f32 %v2723_v48, %v535_v26 }
 0x116   : > { %v893_v30 = vadd.f32 %v2728_v50, %v822_v25 }
 0x117   : > { %v892_v31 = vadd.f32 %v2728_v50, %v821_v28  ;;  %v2060_v32 = vpop.f32.mrb[12].mxu0  ;;  %2180 = vmatprep.mubr.f32.mxu1 %v954_v27 }
 0x118   : > { %v824_v33 = vmul.f32 %v2060_v32, %v2723_v48  ;;  %v545_v34 = vpop.f32.mrb[13].mxu0  ;;  %2181 = vmatmul.mubr.f32.gmra.mrb[8].mxu1 %v955_v29  ;;  %v957_v37 = vmax.f32 %v893_v30, 0.0 }
 0x119   : > { %v956_v35 = vmax.f32 %v892_v31, 0.0  ;;  %v823_v36 = vmul.f32 %v2723_v48, %v545_v34 }
 0x11a   : > { %v895_v38 = vadd.f32 %v2728_v50, %v824_v33 }
 0x11b   : > { %v894_v39 = vadd.f32 %v2728_v50, %v823_v36  ;;  %v2063_v40 = vpop.f32.mrb[14].mxu0  ;;  %2183 = vmatprep.mubr.f32.mxu1 %v956_v35 }
 0x11c   : > { %v826_v41 = vmul.f32 %v2063_v40, %v2723_v48  ;;  %v555_v42 = vpop.f32.mrb[15].mxu0  ;;  %2184 = vmatmul.mubr.f32.gmra.mrb[10].mxu1 %v957_v37  ;;  %v959_v45 = vmax.f32 %v895_v38, 0.0 }
 0x11d   : > { %v958_v43 = vmax.f32 %v894_v39, 0.0  ;;  %v825_v44 = vmul.f32 %v2723_v48, %v555_v42 }
 0x11e   : > { %v897_v46 = vadd.f32 %v2728_v50, %v826_v41 }
 0x11f   : > { %v896_v47 = vadd.f32 %v2728_v50, %v825_v44  ;;  %v2066_v49 = vpop.f32.mrb[16].mxu0  ;;  %2186 = vmatprep.mubr.f32.mxu1 %v958_v43 }
 0x120   : > { %v828_v51 = vmul.f32 %v2066_v49, %v2723_v48  ;;  %v565_v52 = vpop.f32.mrb[17].mxu0  ;;  %2187 = vmatmul.mubr.f32.gmra.mrb[12].mxu1 %v959_v45  ;;  %v961_v55 = vmax.f32 %v897_v46, 0.0 }
 0x121   : > { %v960_v53 = vmax.f32 %v896_v47, 0.0  ;;  %v827_v54 = vmul.f32 %v2723_v48, %v565_v52 }
 0x122   : > { %v899_v56 = vadd.f32 %v2728_v50, %v828_v51 }
 0x123   : > { %v898_v57 = vadd.f32 %v2728_v50, %v827_v54  ;;  %v2069_v58 = vpop.f32.mrb[18].mxu0  ;;  %2189 = vmatprep.mubr.f32.mxu1 %v960_v53 }
 0x124   : > { %v830_v59 = vmul.f32 %v2069_v58, %v2723_v48  ;;  %v575_v60 = vpop.f32.mrb[19].mxu0  ;;  %2190 = vmatmul.mubr.f32.gmra.mrb[14].mxu1 %v961_v55  ;;  %v963_v63 = vmax.f32 %v899_v56, 0.0 }
 0x125   : > { %v962_v61 = vmax.f32 %v898_v57, 0.0  ;;  %v829_v62 = vmul.f32 %v2723_v48, %v575_v60 }
 0x126   : > { %v901_v0 = vadd.f32 %v2728_v50, %v830_v59 }
 0x127   : > { %v900_v1 = vadd.f32 %v2728_v50, %v829_v62  ;;  %v2072_v2 = vpop.f32.mrb[20].mxu0  ;;  %2192 = vmatprep.mubr.f32.mxu1 %v962_v61 }
 0x128   : > { %v832_v3 = vmul.f32 %v2072_v2, %v2723_v48  ;;  %v585_v4 = vpop.f32.mrb[21].mxu0  ;;  %2193 = vmatmul.mubr.f32.gmra.mrb[16].mxu1 %v963_v63  ;;  %v965_v7 = vmax.f32 %v901_v0, 0.0 }
 0x129   : > { %v964_v5 = vmax.f32 %v900_v1, 0.0  ;;  %v831_v6 = vmul.f32 %v2723_v48, %v585_v4 }
 0x12a   : > { %v903_v8 = vadd.f32 %v2728_v50, %v832_v3 }
 0x12b   : > { %v902_v9 = vadd.f32 %v2728_v50, %v831_v6  ;;  %v2075_v10 = vpop.f32.mrb[22].mxu0  ;;  %2195 = vmatprep.mubr.f32.mxu1 %v964_v5 }
 0x12c   : > { %v834_v11 = vmul.f32 %v2075_v10, %v2723_v48  ;;  %v595_v12 = vpop.f32.mrb[23].mxu0  ;;  %2196 = vmatmul.mubr.f32.gmra.mrb[18].mxu1 %v965_v7  ;;  %v967_v15 = vmax.f32 %v903_v8, 0.0 }
 0x12d   : > { %v966_v13 = vmax.f32 %v902_v9, 0.0  ;;  %v833_v14 = vmul.f32 %v2723_v48, %v595_v12 }
 0x12e   : > { %v905_v16 = vadd.f32 %v2728_v50, %v834_v11 }
 0x12f   : > { %v904_v17 = vadd.f32 %v2728_v50, %v833_v14  ;;  %v2078_v18 = vpop.f32.mrb[24].mxu0  ;;  %2198 = vmatprep.mubr.f32.mxu1 %v966_v13 }
 0x130   : > { %v836_v19 = vmul.f32 %v2078_v18, %v2723_v48  ;;  %v605_v20 = vpop.f32.mrb[25].mxu0  ;;  %2199 = vmatmul.mubr.f32.gmra.mrb[20].mxu1 %v967_v15  ;;  %v969_v23 = vmax.f32 %v905_v16, 0.0 }
 0x131   : > { %v968_v21 = vmax.f32 %v904_v17, 0.0  ;;  %v835_v22 = vmul.f32 %v2723_v48, %v605_v20 }
 0x132   : > { %v907_v24 = vadd.f32 %v2728_v50, %v836_v19 }
 0x133   : > { %v906_v25 = vadd.f32 %v2728_v50, %v835_v22  ;;  %v2081_v26 = vpop.f32.mrb[26].mxu0  ;;  %2201 = vmatprep.mubr.f32.mxu1 %v968_v21 }
 0x134   : > { %v838_v27 = vmul.f32 %v2081_v26, %v2723_v48  ;;  %v615_v28 = vpop.f32.mrb[27].mxu0  ;;  %2202 = vmatmul.mubr.f32.gmra.mrb[22].mxu1 %v969_v23  ;;  %v971_v31 = vmax.f32 %v907_v24, 0.0 }
 0x135   : > { %v970_v29 = vmax.f32 %v906_v25, 0.0  ;;  %v837_v30 = vmul.f32 %v2723_v48, %v615_v28 }
 0x136   : > { %v909_v32 = vadd.f32 %v2728_v50, %v838_v27 }
 0x137   : > { %v908_v33 = vadd.f32 %v2728_v50, %v837_v30  ;;  %v2084_v34 = vpop.f32.mrb[28].mxu0  ;;  %2204 = vmatprep.mubr.f32.mxu1 %v970_v29 }
 0x138   : > { %v840_v35 = vmul.f32 %v2084_v34, %v2723_v48  ;;  %v625_v36 = vpop.f32.mrb[29].mxu0  ;;  %2205 = vmatmul.mubr.f32.gmra.mrb[24].mxu1 %v971_v31  ;;  %v973_v39 = vmax.f32 %v909_v32, 0.0 }
 0x139   : > { %v972_v37 = vmax.f32 %v908_v33, 0.0  ;;  %v839_v38 = vmul.f32 %v2723_v48, %v625_v36 }
 0x13a   : > { %v911_v40 = vadd.f32 %v2728_v50, %v840_v35 }
 0x13b   : > { %v910_v41 = vadd.f32 %v2728_v50, %v839_v38  ;;  %v2087_v42 = vpop.f32.mrb[30].mxu0  ;;  %2207 = vmatprep.mubr.f32.mxu1 %v972_v37 }
 0x13c   : > { %v842_v43 = vmul.f32 %v2087_v42, %v2723_v48  ;;  %v635_v44 = vpop.f32.mrb[31].mxu0  ;;  %2208 = vmatmul.mubr.f32.gmra.mrb[26].mxu1 %v973_v39  ;;  %v975_v47 = vmax.f32 %v911_v40, 0.0 }
 0x13d   : > { %v974_v45 = vmax.f32 %v910_v41, 0.0  ;;  %v841_v46 = vmul.f32 %v2723_v48, %v635_v44 }
 0x13e   : > { %v913_v49 = vadd.f32 %v2728_v50, %v842_v43 }
 0x13f   : > { %v912_v51 = vadd.f32 %v2728_v50, %v841_v46  ;;  %v2090_v52 = vpop.f32.mrb[32].mxu0  ;;  %2210 = vmatprep.mubr.f32.mxu1 %v974_v45 }
 0x140   : > { %v844_v53 = vmul.f32 %v2090_v52, %v2723_v48  ;;  %v645_v54 = vpop.f32.mrb[33].mxu0  ;;  %2211 = vmatmul.mubr.f32.gmra.mrb[28].mxu1 %v975_v47  ;;  %v977_v57 = vmax.f32 %v913_v49, 0.0 }
 0x141   : > { %v976_v55 = vmax.f32 %v912_v51, 0.0  ;;  %v843_v56 = vmul.f32 %v2723_v48, %v645_v54 }
 0x142   : > { %v915_v58 = vadd.f32 %v2728_v50, %v844_v53 }
 0x143   : > { %v914_v59 = vadd.f32 %v2728_v50, %v843_v56  ;;  %v2093_v60 = vpop.f32.mrb[34].mxu0  ;;  %2213 = vmatprep.mubr.f32.mxu1 %v976_v55 }
 0x144   : > { %v846_v61 = vmul.f32 %v2093_v60, %v2723_v48  ;;  %v655_v62 = vpop.f32.mrb[35].mxu0  ;;  %2214 = vmatmul.mubr.f32.gmra.mrb[30].mxu1 %v977_v57  ;;  %v979_v1 = vmax.f32 %v915_v58, 0.0 }
 0x145   : > { %v978_v63 = vmax.f32 %v914_v59, 0.0  ;;  %v845_v0 = vmul.f32 %v2723_v48, %v655_v62 }
 0x146   : > { %v917_v2 = vadd.f32 %v2728_v50, %v846_v61 }
 0x147   : > { %v916_v3 = vadd.f32 %v2728_v50, %v845_v0  ;;  %v2096_v4 = vpop.f32.mrb[36].mxu0  ;;  %2216 = vmatprep.mubr.f32.mxu1 %v978_v63 }
 0x148   : > { %v848_v5 = vmul.f32 %v2096_v4, %v2723_v48  ;;  %v665_v6 = vpop.f32.mrb[37].mxu0  ;;  %2217 = vmatmul.mubr.f32.gmra.mrb[32].mxu1 %v979_v1  ;;  %v981_v9 = vmax.f32 %v917_v2, 0.0 }
 0x149   : > { %v980_v7 = vmax.f32 %v916_v3, 0.0  ;;  %v847_v8 = vmul.f32 %v2723_v48, %v665_v6 }
 0x14a   : > { %v919_v10 = vadd.f32 %v2728_v50, %v848_v5 }
 0x14b   : > { %v918_v11 = vadd.f32 %v2728_v50, %v847_v8  ;;  %v2099_v12 = vpop.f32.mrb[38].mxu0  ;;  %2219 = vmatprep.mubr.f32.mxu1 %v980_v7 }
 0x14c   : > { %v850_v13 = vmul.f32 %v2099_v12, %v2723_v48  ;;  %v675_v14 = vpop.f32.mrb[39].mxu0  ;;  %2220 = vmatmul.mubr.f32.gmra.mrb[34].mxu1 %v981_v9  ;;  %v983_v17 = vmax.f32 %v919_v10, 0.0 }
 0x14d   : > { %v982_v15 = vmax.f32 %v918_v11, 0.0  ;;  %v849_v16 = vmul.f32 %v2723_v48, %v675_v14 }
 0x14e   : > { %v921_v18 = vadd.f32 %v2728_v50, %v850_v13 }
 0x14f   : > { %v920_v19 = vadd.f32 %v2728_v50, %v849_v16  ;;  %v2102_v20 = vpop.f32.mrb[40].mxu0  ;;  %2222 = vmatprep.mubr.f32.mxu1 %v982_v15 }
 0x150   : > { %v852_v21 = vmul.f32 %v2102_v20, %v2723_v48  ;;  %v685_v22 = vpop.f32.mrb[41].mxu0  ;;  %2223 = vmatmul.mubr.f32.gmra.mrb[36].mxu1 %v983_v17  ;;  %v985_v25 = vmax.f32 %v921_v18, 0.0 }
 0x151   : > { %v984_v23 = vmax.f32 %v920_v19, 0.0  ;;  %v851_v24 = vmul.f32 %v2723_v48, %v685_v22 }
 0x152   : > { %v923_v26 = vadd.f32 %v2728_v50, %v852_v21 }
 0x153   : > { %v922_v27 = vadd.f32 %v2728_v50, %v851_v24  ;;  %v2105_v28 = vpop.f32.mrb[42].mxu0  ;;  %2225 = vmatprep.mubr.f32.mxu1 %v984_v23 }
 0x154   : > { %v854_v29 = vmul.f32 %v2105_v28, %v2723_v48  ;;  %v695_v30 = vpop.f32.mrb[43].mxu0  ;;  %2226 = vmatmul.mubr.f32.gmra.mrb[38].mxu1 %v985_v25  ;;  %v987_v33 = vmax.f32 %v923_v26, 0.0 }
 0x155   : > { %v986_v31 = vmax.f32 %v922_v27, 0.0  ;;  %v853_v32 = vmul.f32 %v2723_v48, %v695_v30 }
 0x156   : > { %v925_v34 = vadd.f32 %v2728_v50, %v854_v29 }
 0x157   : > { %v924_v35 = vadd.f32 %v2728_v50, %v853_v32  ;;  %v2108_v36 = vpop.f32.mrb[44].mxu0  ;;  %2228 = vmatprep.mubr.f32.mxu1 %v986_v31 }
 0x158   : > { %v856_v37 = vmul.f32 %v2108_v36, %v2723_v48  ;;  %v705_v38 = vpop.f32.mrb[45].mxu0  ;;  %2229 = vmatmul.mubr.f32.gmra.mrb[40].mxu1 %v987_v33  ;;  %v989_v41 = vmax.f32 %v925_v34, 0.0 }
 0x159   : > { %v988_v39 = vmax.f32 %v924_v35, 0.0  ;;  %v855_v40 = vmul.f32 %v2723_v48, %v705_v38 }
 0x15a   : > { %v927_v42 = vadd.f32 %v2728_v50, %v856_v37 }
 0x15b   : > { %v926_v43 = vadd.f32 %v2728_v50, %v855_v40  ;;  %v2111_v44 = vpop.f32.mrb[46].mxu0  ;;  %2231 = vmatprep.mubr.f32.mxu1 %v988_v39 }
 0x15c   : > { %v858_v45 = vmul.f32 %v2111_v44, %v2723_v48  ;;  %v715_v46 = vpop.f32.mrb[47].mxu0  ;;  %2232 = vmatmul.mubr.f32.gmra.mrb[42].mxu1 %v989_v41  ;;  %v991_v51 = vmax.f32 %v927_v42, 0.0 }
 0x15d   : > { %v990_v47 = vmax.f32 %v926_v43, 0.0  ;;  %v857_v49 = vmul.f32 %v2723_v48, %v715_v46 }
 0x15e   : > { %v929_v52 = vadd.f32 %v2728_v50, %v858_v45 }
 0x15f   : > { %v928_v53 = vadd.f32 %v2728_v50, %v857_v49  ;;  %v2114_v54 = vpop.f32.mrb[48].mxu0  ;;  %2234 = vmatprep.mubr.f32.mxu1 %v990_v47 }
 0x160   : > { %v860_v55 = vmul.f32 %v2114_v54, %v2723_v48  ;;  %v725_v56 = vpop.f32.mrb[49].mxu0  ;;  %2235 = vmatmul.mubr.f32.gmra.mrb[44].mxu1 %v991_v51  ;;  %v993_v59 = vmax.f32 %v929_v52, 0.0 }
 0x161   : > { %v992_v57 = vmax.f32 %v928_v53, 0.0  ;;  %v859_v58 = vmul.f32 %v2723_v48, %v725_v56 }
 0x162   : > { %v931_v60 = vadd.f32 %v2728_v50, %v860_v55 }
 0x163   : > { %v930_v61 = vadd.f32 %v2728_v50, %v859_v58  ;;  %v2117_v62 = vpop.f32.mrb[50].mxu0  ;;  %2237 = vmatprep.mubr.f32.mxu1 %v992_v57  ;;  %v2861_v58 = vld [vmem:[%s3204_s5] ss:$0 sm:$0xff] }
 0x164   : > { %v862_v63 = vmul.f32 %v2117_v62, %v2723_v48  ;;  %v735_v0 = vpop.f32.mrb[51].mxu0  ;;  %2238 = vmatmul.mubr.f32.gmra.mrb[46].mxu1 %v993_v59  ;;  %v995_v3 = vmax.f32 %v931_v60, 0.0 }
 0x165   : > { %v994_v1 = vmax.f32 %v930_v61, 0.0  ;;  %v861_v2 = vmul.f32 %v2723_v48, %v735_v0 }
 0x166   : > { %v933_v4 = vadd.f32 %v2728_v50, %v862_v63  ;;  %v2473_v63 = vmov 1.0  }
 0x167   : > { %v932_v5 = vadd.f32 %v2728_v50, %v861_v2  ;;  %v2120_v6 = vpop.f32.mrb[52].mxu0  ;;  %2240 = vmatprep.mubr.f32.mxu1 %v994_v1  ;;  %1546 = vmatprep.mubr.f32.mxu0 %v2473_v63 }
 0x168   : > { %v864_v7 = vmul.f32 %v2120_v6, %v2723_v48  ;;  %v745_v8 = vpop.f32.mrb[53].mxu0  ;;  %2241 = vmatmul.mubr.f32.gmra.mrb[48].mxu1 %v995_v3  ;;  %v997_v11 = vmax.f32 %v933_v4, 0.0 }
 0x169   : > { %v996_v9 = vmax.f32 %v932_v5, 0.0  ;;  %v863_v10 = vmul.f32 %v2723_v48, %v745_v8 }
 0x16a   : > { %v935_v12 = vadd.f32 %v2728_v50, %v864_v7 }
 0x16b   : > { %v934_v13 = vadd.f32 %v2728_v50, %v863_v10  ;;  %v2123_v14 = vpop.f32.mrb[54].mxu0  ;;  %2243 = vmatprep.mubr.f32.mxu1 %v996_v9 }
 0x16c   : > { %v866_v15 = vmul.f32 %v2123_v14, %v2723_v48  ;;  %v755_v16 = vpop.f32.mrb[55].mxu0  ;;  %2244 = vmatmul.mubr.f32.gmra.mrb[50].mxu1 %v997_v11  ;;  %v999_v19 = vmax.f32 %v935_v12, 0.0 }
 0x16d   : > { %v998_v17 = vmax.f32 %v934_v13, 0.0  ;;  %v865_v18 = vmul.f32 %v2723_v48, %v755_v16 }
 0x16e   : > { %v937_v20 = vadd.f32 %v2728_v50, %v866_v15 }
 0x16f   : > { %v936_v21 = vadd.f32 %v2728_v50, %v865_v18  ;;  %v2126_v22 = vpop.f32.mrb[56].mxu0  ;;  %2246 = vmatprep.mubr.f32.mxu1 %v998_v17 }
 0x170   : > { %v868_v23 = vmul.f32 %v2126_v22, %v2723_v48  ;;  %v765_v24 = vpop.f32.mrb[57].mxu0  ;;  %2247 = vmatmul.mubr.f32.gmra.mrb[52].mxu1 %v999_v19  ;;  %v1001_v27 = vmax.f32 %v937_v20, 0.0 }
 0x171   : > { %v1000_v25 = vmax.f32 %v936_v21, 0.0  ;;  %v867_v26 = vmul.f32 %v2723_v48, %v765_v24 }
 0x172   : > { %v939_v28 = vadd.f32 %v2728_v50, %v868_v23 }
 0x173   : > { %v938_v29 = vadd.f32 %v2728_v50, %v867_v26  ;;  %v2129_v30 = vpop.f32.mrb[58].mxu0  ;;  %2249 = vmatprep.mubr.f32.mxu1 %v1000_v25 }
 0x174   : > { %v870_v31 = vmul.f32 %v2129_v30, %v2723_v48  ;;  %v775_v32 = vpop.f32.mrb[59].mxu0  ;;  %2250 = vmatmul.mubr.f32.gmra.mrb[54].mxu1 %v1001_v27  ;;  %v1003_v35 = vmax.f32 %v939_v28, 0.0 }
 0x175   : > { %v1002_v33 = vmax.f32 %v938_v29, 0.0  ;;  %v869_v34 = vmul.f32 %v2723_v48, %v775_v32 }
 0x176   : > { %v941_v36 = vadd.f32 %v2728_v50, %v870_v31 }
 0x177   : > { %v940_v37 = vadd.f32 %v2728_v50, %v869_v34  ;;  %v2132_v38 = vpop.f32.mrb[60].mxu0  ;;  %2252 = vmatprep.mubr.f32.mxu1 %v1002_v33 }
 0x178   : > { %v872_v39 = vmul.f32 %v2132_v38, %v2723_v48  ;;  %v785_v40 = vpop.f32.mrb[61].mxu0  ;;  %2253 = vmatmul.mubr.f32.gmra.mrb[56].mxu1 %v1003_v35  ;;  %v1005_v43 = vmax.f32 %v941_v36, 0.0 }
 0x179   : > { %v1004_v41 = vmax.f32 %v940_v37, 0.0  ;;  %v871_v42 = vmul.f32 %v2723_v48, %v785_v40 }
 0x17a   : > { %v943_v44 = vadd.f32 %v2728_v50, %v872_v39 }
 0x17b   : > { %v942_v45 = vadd.f32 %v2728_v50, %v871_v42  ;;  %v2135_v46 = vpop.f32.mrb[62].mxu0  ;;  %2255 = vmatprep.mubr.f32.mxu1 %v1004_v41 }
 0x17c   : > { %v874_v47 = vmul.f32 %v2135_v46, %v2723_v48  ;;  %v795_v49 = vpop.f32.mrb[63].mxu0  ;;  %2256 = vmatmul.mubr.f32.gmra.mrb[58].mxu1 %v1005_v43  ;;  %v1007_v53 = vmax.f32 %v943_v44, 0.0 }
 0x17d   : > { %v1006_v51 = vmax.f32 %v942_v45, 0.0  ;;  %v873_v52 = vmul.f32 %v2723_v48, %v795_v49 }
 0x17e   : > { %v945_v54 = vadd.f32 %v2728_v50, %v874_v47 }
 0x17f   : > { %v944_v55 = vadd.f32 %v2728_v50, %v873_v52  ;;  %2258 = vmatprep.mubr.f32.mxu1 %v1006_v51 }
 0x180   : > { %2259 = vmatmul.mubr.f32.gmra.mrb[60].mxu1 %v1007_v53  ;;  %v1009_v57 = vmax.f32 %v945_v54, 0.0 }
 0x181   : > { %v1008_v56 = vmax.f32 %v944_v55, 0.0 }
 0x183   : > { %2261 = vmatprep.mubr.f32.mxu1 %v1008_v56 }
 0x184   : > { %2262 = vmatmul.mubr.f32.gmra.mrb[62].mxu1 %v1009_v57 }
 0x185   : > { %1616 = vmatprep.mubr.f32.mxu1 %v2473_v63 }
 0x1db   : > { %v2170_v48 = vpop.f32.mrb[0].mxu1 }
 0x1dc   : > { %v2871_v50 = vadd.f32 %v2170_v48, %v2861_v58  ;;  %v1099_v59 = vpop.f32.mrb[1].mxu1 }
 0x1dd   : > { %v2874_v60 = vadd.f32 %v2861_v58, %v1099_v59 }
 0x1de   : > { %1419 = vst [vmem:[%s2868_s18 + $0x8] sm:$0xff] %v2871_v50 }
 0x1df   : > { %1418 = vst [vmem:[%s2868_s18] sm:$0xff] %v2874_v60  ;;  %v2330_v61 = vpack.c.bf16 %v2871_v50, %v2874_v60  ;;  %v2173_v62 = vpop.f32.mrb[2].mxu1 }
 0x1e0   : > { %v2885_v0 = vadd.f32 %v2173_v62, %v2861_v58  ;;  %v1109_v1 = vpop.f32.mrb[3].mxu1 }
 0x1e1   : > { %v2888_v2 = vadd.f32 %v2861_v58, %v1109_v1 }
 0x1e2   : > { %1421 = vst [vmem:[%s2868_s18 + $0x18] sm:$0xff] %v2885_v0 }
 0x1e3   : > { %1420 = vst [vmem:[%s2868_s18 + $0x10] sm:$0xff] %v2888_v2  ;;  %v2334_v3 = vpack.c.bf16 %v2885_v0, %v2888_v2  ;;  %v2176_v4 = vpop.f32.mrb[4].mxu1 }
 0x1e4   : > { %v2897_v5 = vadd.f32 %v2176_v4, %v2861_v58  ;;  %v1119_v6 = vpop.f32.mrb[5].mxu1 }
 0x1e5   : > { %v2900_v7 = vadd.f32 %v2861_v58, %v1119_v6 }
 0x1e6   : > { %1423 = vst [vmem:[%s2868_s18 + $0x28] sm:$0xff] %v2897_v5 }
 0x1e7   : > { %1422 = vst [vmem:[%s2868_s18 + $0x20] sm:$0xff] %v2900_v7  ;;  %v2338_v8 = vpack.c.bf16 %v2897_v5, %v2900_v7  ;;  %v2179_v9 = vpop.f32.mrb[6].mxu1 }
 0x1e8   : > { %v2909_v10 = vadd.f32 %v2179_v9, %v2861_v58  ;;  %v1129_v11 = vpop.f32.mrb[7].mxu1 }
 0x1e9   : > { %v2912_v12 = vadd.f32 %v2861_v58, %v1129_v11 }
 0x1ea   : > { %1425 = vst [vmem:[%s2868_s18 + $0x38] sm:$0xff] %v2909_v10 }
 0x1eb   : > { %1424 = vst [vmem:[%s2868_s18 + $0x30] sm:$0xff] %v2912_v12  ;;  %v2342_v13 = vpack.c.bf16 %v2909_v10, %v2912_v12  ;;  %v2182_v14 = vpop.f32.mrb[8].mxu1 }
 0x1ec   : > { %v2921_v15 = vadd.f32 %v2182_v14, %v2861_v58  ;;  %v1139_v16 = vpop.f32.mrb[9].mxu1 }
 0x1ed   : > { %v2924_v17 = vadd.f32 %v2861_v58, %v1139_v16 }
 0x1ee   : > { %1427 = vst [vmem:[%s2868_s18 + $0x48] sm:$0xff] %v2921_v15 }
 0x1ef   : > { %1426 = vst [vmem:[%s2868_s18 + $0x40] sm:$0xff] %v2924_v17  ;;  %v2346_v18 = vpack.c.bf16 %v2921_v15, %v2924_v17  ;;  %v2185_v19 = vpop.f32.mrb[10].mxu1 }
 0x1f0   : > { %v2933_v20 = vadd.f32 %v2185_v19, %v2861_v58  ;;  %v1149_v21 = vpop.f32.mrb[11].mxu1 }
 0x1f1   : > { %v2936_v22 = vadd.f32 %v2861_v58, %v1149_v21 }
 0x1f2   : > { %1429 = vst [vmem:[%s2868_s18 + $0x58] sm:$0xff] %v2933_v20 }
 0x1f3   : > { %1428 = vst [vmem:[%s2868_s18 + $0x50] sm:$0xff] %v2936_v22  ;;  %v2350_v23 = vpack.c.bf16 %v2933_v20, %v2936_v22  ;;  %v2188_v24 = vpop.f32.mrb[12].mxu1 }
 0x1f4   : > { %v2945_v25 = vadd.f32 %v2188_v24, %v2861_v58  ;;  %v1159_v26 = vpop.f32.mrb[13].mxu1 }
 0x1f5   : > { %v2948_v27 = vadd.f32 %v2861_v58, %v1159_v26 }
 0x1f6   : > { %1431 = vst [vmem:[%s2868_s18 + $0x68] sm:$0xff] %v2945_v25 }
 0x1f7   : > { %1430 = vst [vmem:[%s2868_s18 + $0x60] sm:$0xff] %v2948_v27  ;;  %v2354_v28 = vpack.c.bf16 %v2945_v25, %v2948_v27  ;;  %v2191_v29 = vpop.f32.mrb[14].mxu1 }
 0x1f8   : > { %v2957_v30 = vadd.f32 %v2191_v29, %v2861_v58  ;;  %v1169_v31 = vpop.f32.mrb[15].mxu1 }
 0x1f9   : > { %v2960_v32 = vadd.f32 %v2861_v58, %v1169_v31 }
 0x1fa   : > { %1433 = vst [vmem:[%s2868_s18 + $0x78] sm:$0xff] %v2957_v30 }
 0x1fb   : > { %1432 = vst [vmem:[%s2868_s18 + $0x70] sm:$0xff] %v2960_v32  ;;  %v2358_v33 = vpack.c.bf16 %v2957_v30, %v2960_v32  ;;  %v2194_v34 = vpop.f32.mrb[16].mxu1 }
 0x1fc   : > { %v1185_v35 = vadd.f32 %v2194_v34, %v2861_v58  ;;  %v1179_v36 = vpop.f32.mrb[17].mxu1 }
 0x1fd   : > { %v1180_v37 = vadd.f32 %v2861_v58, %v1179_v36 }
 0x1fe   : > { %1435 = vst [vmem:[%s2868_s18 + $0x88] sm:$0xff] %v1185_v35 }
 0x1ff   : > { %1434 = vst [vmem:[%s2868_s18 + $0x80] sm:$0xff] %v1180_v37  ;;  %v2328_v38 = vpack.c.bf16 %v1185_v35, %v1180_v37  ;;  %v2197_v39 = vpop.f32.mrb[18].mxu1 }
 0x200   : > { %v1195_v40 = vadd.f32 %v2197_v39, %v2861_v58  ;;  %v1189_v41 = vpop.f32.mrb[19].mxu1 }
 0x201   : > { %v1190_v42 = vadd.f32 %v2861_v58, %v1189_v41  ;;  %2329 = vmatprep.subr.bf16.mxu0 %v2328_v38 }
 0x202   : > { %1437 = vst [vmem:[%s2868_s18 + $0x98] sm:$0xff] %v1195_v40  ;;  %2331 = vmatpush3.bf16.msra.mxu0 %v2330_v61 }
 0x203   : > { %1436 = vst [vmem:[%s2868_s18 + $0x90] sm:$0xff] %v1190_v42  ;;  %v2332_v43 = vpack.c.bf16 %v1195_v40, %v1190_v42  ;;  %v2200_v44 = vpop.f32.mrb[20].mxu1 }
 0x204   : > { %v1205_v45 = vadd.f32 %v2200_v44, %v2861_v58  ;;  %v1199_v46 = vpop.f32.mrb[21].mxu1 }
 0x205   : > { %v1200_v47 = vadd.f32 %v2861_v58, %v1199_v46  ;;  %2333 = vmatprep.subr.bf16.mxu0 %v2332_v43 }
 0x206   : > { %1439 = vst [vmem:[%s2868_s18 + $0xa8] sm:$0xff] %v1205_v45  ;;  %2335 = vmatpush3.bf16.msra.mxu0 %v2334_v3 }
 0x207   : > { %1438 = vst [vmem:[%s2868_s18 + $0xa0] sm:$0xff] %v1200_v47  ;;  %v2336_v49 = vpack.c.bf16 %v1205_v45, %v1200_v47  ;;  %v2203_v51 = vpop.f32.mrb[22].mxu1 }
 0x208   : > { %v1215_v52 = vadd.f32 %v2203_v51, %v2861_v58  ;;  %v1209_v53 = vpop.f32.mrb[23].mxu1 }
 0x209   : > { %v1210_v54 = vadd.f32 %v2861_v58, %v1209_v53  ;;  %2337 = vmatprep.subr.bf16.mxu0 %v2336_v49 }
 0x20a   : > { %1441 = vst [vmem:[%s2868_s18 + $0xb8] sm:$0xff] %v1215_v52  ;;  %2339 = vmatpush3.bf16.msra.mxu0 %v2338_v8 }
 0x20b   : > { %1440 = vst [vmem:[%s2868_s18 + $0xb0] sm:$0xff] %v1210_v54  ;;  %v2340_v55 = vpack.c.bf16 %v1215_v52, %v1210_v54  ;;  %v2206_v56 = vpop.f32.mrb[24].mxu1 }
 0x20c   : > { %v1225_v57 = vadd.f32 %v2206_v56, %v2861_v58  ;;  %v1219_v48 = vpop.f32.mrb[25].mxu1 }
 0x20d   : > { %v1220_v50 = vadd.f32 %v2861_v58, %v1219_v48  ;;  %2341 = vmatprep.subr.bf16.mxu0 %v2340_v55 }
 0x20e   : > { %1443 = vst [vmem:[%s2868_s18 + $0xc8] sm:$0xff] %v1225_v57  ;;  %2343 = vmatpush3.bf16.msra.mxu0 %v2342_v13 }
 0x20f   : > { %1442 = vst [vmem:[%s2868_s18 + $0xc0] sm:$0xff] %v1220_v50  ;;  %v2344_v59 = vpack.c.bf16 %v1225_v57, %v1220_v50  ;;  %v2209_v60 = vpop.f32.mrb[26].mxu1 }
 0x210   : > { %v1235_v61 = vadd.f32 %v2209_v60, %v2861_v58  ;;  %v1229_v62 = vpop.f32.mrb[27].mxu1 }
 0x211   : > { %v1230_v0 = vadd.f32 %v2861_v58, %v1229_v62  ;;  %2345 = vmatprep.subr.bf16.mxu0 %v2344_v59 }
 0x212   : > { %1445 = vst [vmem:[%s2868_s18 + $0xd8] sm:$0xff] %v1235_v61  ;;  %2347 = vmatpush3.bf16.msra.mxu0 %v2346_v18 }
 0x213   : > { %1444 = vst [vmem:[%s2868_s18 + $0xd0] sm:$0xff] %v1230_v0  ;;  %v2348_v1 = vpack.c.bf16 %v1235_v61, %v1230_v0  ;;  %v2212_v2 = vpop.f32.mrb[28].mxu1 }
 0x214   : > { %v1245_v3 = vadd.f32 %v2212_v2, %v2861_v58  ;;  %v1239_v4 = vpop.f32.mrb[29].mxu1 }
 0x215   : > { %v1240_v5 = vadd.f32 %v2861_v58, %v1239_v4  ;;  %2349 = vmatprep.subr.bf16.mxu0 %v2348_v1 }
 0x216   : > { %1447 = vst [vmem:[%s2868_s18 + $0xe8] sm:$0xff] %v1245_v3  ;;  %2351 = vmatpush3.bf16.msra.mxu0 %v2350_v23 }
 0x217   : > { %1446 = vst [vmem:[%s2868_s18 + $0xe0] sm:$0xff] %v1240_v5  ;;  %v2352_v6 = vpack.c.bf16 %v1245_v3, %v1240_v5  ;;  %v2215_v7 = vpop.f32.mrb[30].mxu1 }
 0x218   : > { %v1255_v8 = vadd.f32 %v2215_v7, %v2861_v58  ;;  %v1249_v9 = vpop.f32.mrb[31].mxu1 }
 0x219   : > { %v1250_v10 = vadd.f32 %v2861_v58, %v1249_v9  ;;  %2353 = vmatprep.subr.bf16.mxu0 %v2352_v6 }
 0x21a   : > { %1449 = vst [vmem:[%s2868_s18 + $0xf8] sm:$0xff] %v1255_v8  ;;  %2355 = vmatpush3.bf16.msra.mxu0 %v2354_v28 }
 0x21b   : > { %1448 = vst [vmem:[%s2868_s18 + $0xf0] sm:$0xff] %v1250_v10  ;;  %v2356_v11 = vpack.c.bf16 %v1255_v8, %v1250_v10  ;;  %v2218_v12 = vpop.f32.mrb[32].mxu1 }
 0x21c   : > { %v3022_v13 = vadd.f32 %v2218_v12, %v2861_v58  ;;  %v1259_v14 = vpop.f32.mrb[33].mxu1 }
 0x21d   : > { %v3025_v15 = vadd.f32 %v2861_v58, %v1259_v14  ;;  %2357 = vmatprep.subr.bf16.mxu0 %v2356_v11 }
 0x21e   : > { %1451 = vst [vmem:[%s2868_s18 + $0x108] sm:$0xff] %v3022_v13  ;;  %2359 = vmatpush3.bf16.msra.mxu0 %v2358_v33 }
 0x21f   : > { %1450 = vst [vmem:[%s2868_s18 + $0x100] sm:$0xff] %v3025_v15  ;;  %v2362_v16 = vpack.c.bf16 %v3022_v13, %v3025_v15  ;;  %v2221_v17 = vpop.f32.mrb[34].mxu1 }
 0x220   : > { %v3037_v18 = vadd.f32 %v2221_v17, %v2861_v58  ;;  %v1269_v19 = vpop.f32.mrb[35].mxu1 }
 0x221   : > { %v3040_v20 = vadd.f32 %v2861_v58, %v1269_v19  ;;  %1547 = vmatmul.mubr.f32.vlgmr.msra.gmra.mrb[64].mxu0 %v2473_v63 }
 0x222   : > { %1453 = vst [vmem:[%s2868_s18 + $0x118] sm:$0xff] %v3037_v18 }
 0x223   : > { %1452 = vst [vmem:[%s2868_s18 + $0x110] sm:$0xff] %v3040_v20  ;;  %v2366_v21 = vpack.c.bf16 %v3037_v18, %v3040_v20  ;;  %v2224_v22 = vpop.f32.mrb[36].mxu1 }
 0x224   : > { %v3050_v23 = vadd.f32 %v2224_v22, %v2861_v58  ;;  %v1279_v24 = vpop.f32.mrb[37].mxu1 }
 0x225   : > { %v3053_v25 = vadd.f32 %v2861_v58, %v1279_v24 }
 0x226   : > { %1455 = vst [vmem:[%s2868_s18 + $0x128] sm:$0xff] %v3050_v23 }
 0x227   : > { %1454 = vst [vmem:[%s2868_s18 + $0x120] sm:$0xff] %v3053_v25  ;;  %v2370_v26 = vpack.c.bf16 %v3050_v23, %v3053_v25  ;;  %v2227_v27 = vpop.f32.mrb[38].mxu1 }
 0x228   : > { %v3062_v28 = vadd.f32 %v2227_v27, %v2861_v58  ;;  %v1289_v29 = vpop.f32.mrb[39].mxu1 }
 0x229   : > { %v3065_v30 = vadd.f32 %v2861_v58, %v1289_v29 }
 0x22a   : > { %1457 = vst [vmem:[%s2868_s18 + $0x138] sm:$0xff] %v3062_v28 }
 0x22b   : > { %1456 = vst [vmem:[%s2868_s18 + $0x130] sm:$0xff] %v3065_v30  ;;  %v2374_v31 = vpack.c.bf16 %v3062_v28, %v3065_v30  ;;  %v2230_v32 = vpop.f32.mrb[40].mxu1 }
 0x22c   : > { %v3074_v33 = vadd.f32 %v2230_v32, %v2861_v58  ;;  %v1299_v34 = vpop.f32.mrb[41].mxu1 }
 0x22d   : > { %v3077_v35 = vadd.f32 %v2861_v58, %v1299_v34 }
 0x22e   : > { %1459 = vst [vmem:[%s2868_s18 + $0x148] sm:$0xff] %v3074_v33 }
 0x22f   : > { %1458 = vst [vmem:[%s2868_s18 + $0x140] sm:$0xff] %v3077_v35  ;;  %v2378_v36 = vpack.c.bf16 %v3074_v33, %v3077_v35  ;;  %v2233_v37 = vpop.f32.mrb[42].mxu1 }
 0x230   : > { %v3086_v38 = vadd.f32 %v2233_v37, %v2861_v58  ;;  %v1309_v39 = vpop.f32.mrb[43].mxu1 }
 0x231   : > { %v3089_v40 = vadd.f32 %v2861_v58, %v1309_v39 }
 0x232   : > { %1461 = vst [vmem:[%s2868_s18 + $0x158] sm:$0xff] %v3086_v38 }
 0x233   : > { %1460 = vst [vmem:[%s2868_s18 + $0x150] sm:$0xff] %v3089_v40  ;;  %v2382_v41 = vpack.c.bf16 %v3086_v38, %v3089_v40  ;;  %v2236_v42 = vpop.f32.mrb[44].mxu1 }
 0x234   : > { %v3098_v43 = vadd.f32 %v2236_v42, %v2861_v58  ;;  %v1319_v44 = vpop.f32.mrb[45].mxu1 }
 0x235   : > { %v3101_v45 = vadd.f32 %v2861_v58, %v1319_v44 }
 0x236   : > { %1463 = vst [vmem:[%s2868_s18 + $0x168] sm:$0xff] %v3098_v43 }
 0x237   : > { %1462 = vst [vmem:[%s2868_s18 + $0x160] sm:$0xff] %v3101_v45  ;;  %v2386_v46 = vpack.c.bf16 %v3098_v43, %v3101_v45  ;;  %v2239_v47 = vpop.f32.mrb[46].mxu1 }
 0x238   : > { %v3110_v49 = vadd.f32 %v2239_v47, %v2861_v58  ;;  %v1329_v51 = vpop.f32.mrb[47].mxu1 }
 0x239   : > { %v3113_v52 = vadd.f32 %v2861_v58, %v1329_v51 }
 0x23a   : > { %1465 = vst [vmem:[%s2868_s18 + $0x178] sm:$0xff] %v3110_v49 }
 0x23b   : > { %1464 = vst [vmem:[%s2868_s18 + $0x170] sm:$0xff] %v3113_v52  ;;  %v2390_v53 = vpack.c.bf16 %v3110_v49, %v3113_v52  ;;  %v2242_v54 = vpop.f32.mrb[48].mxu1 }
 0x23c   : > { %v1345_v55 = vadd.f32 %v2242_v54, %v2861_v58  ;;  %v1339_v56 = vpop.f32.mrb[49].mxu1 }
 0x23d   : > { %v1340_v57 = vadd.f32 %v2861_v58, %v1339_v56 }
 0x23e   : > { %1467 = vst [vmem:[%s2868_s18 + $0x188] sm:$0xff] %v1345_v55 }
 0x23f   : > { %1466 = vst [vmem:[%s2868_s18 + $0x180] sm:$0xff] %v1340_v57  ;;  %v2360_v48 = vpack.c.bf16 %v1345_v55, %v1340_v57  ;;  %v2245_v50 = vpop.f32.mrb[50].mxu1 }
 0x240   : > { %v1355_v59 = vadd.f32 %v2245_v50, %v2861_v58  ;;  %v1349_v60 = vpop.f32.mrb[51].mxu1 }
 0x241   : > { %v1350_v61 = vadd.f32 %v2861_v58, %v1349_v60  ;;  %2361 = vmatprep.subr.bf16.mxu1 %v2360_v48 }
 0x242   : > { %1469 = vst [vmem:[%s2868_s18 + $0x198] sm:$0xff] %v1355_v59  ;;  %2363 = vmatpush3.bf16.msra.mxu1 %v2362_v16 }
 0x243   : > { %1468 = vst [vmem:[%s2868_s18 + $0x190] sm:$0xff] %v1350_v61  ;;  %v2364_v62 = vpack.c.bf16 %v1355_v59, %v1350_v61  ;;  %v2248_v0 = vpop.f32.mrb[52].mxu1 }
 0x244   : > { %v1365_v1 = vadd.f32 %v2248_v0, %v2861_v58  ;;  %v1359_v2 = vpop.f32.mrb[53].mxu1 }
 0x245   : > { %v1360_v3 = vadd.f32 %v2861_v58, %v1359_v2  ;;  %2365 = vmatprep.subr.bf16.mxu1 %v2364_v62 }
 0x246   : > { %1471 = vst [vmem:[%s2868_s18 + $0x1a8] sm:$0xff] %v1365_v1  ;;  %2367 = vmatpush3.bf16.msra.mxu1 %v2366_v21 }
 0x247   : > { %1470 = vst [vmem:[%s2868_s18 + $0x1a0] sm:$0xff] %v1360_v3  ;;  %v2368_v4 = vpack.c.bf16 %v1365_v1, %v1360_v3  ;;  %v2251_v5 = vpop.f32.mrb[54].mxu1 }
 0x248   : > { %v1375_v6 = vadd.f32 %v2251_v5, %v2861_v58  ;;  %v1369_v7 = vpop.f32.mrb[55].mxu1 }
 0x249   : > { %v1370_v8 = vadd.f32 %v2861_v58, %v1369_v7  ;;  %2369 = vmatprep.subr.bf16.mxu1 %v2368_v4 }
 0x24a   : > { %1473 = vst [vmem:[%s2868_s18 + $0x1b8] sm:$0xff] %v1375_v6  ;;  %2371 = vmatpush3.bf16.msra.mxu1 %v2370_v26 }
 0x24b   : > { %1472 = vst [vmem:[%s2868_s18 + $0x1b0] sm:$0xff] %v1370_v8  ;;  %v2372_v9 = vpack.c.bf16 %v1375_v6, %v1370_v8  ;;  %v2254_v10 = vpop.f32.mrb[56].mxu1 }
 0x24c   : > { %v1385_v11 = vadd.f32 %v2254_v10, %v2861_v58  ;;  %v1379_v12 = vpop.f32.mrb[57].mxu1 }
 0x24d   : > { %v1380_v13 = vadd.f32 %v2861_v58, %v1379_v12  ;;  %2373 = vmatprep.subr.bf16.mxu1 %v2372_v9 }
 0x24e   : > { %1475 = vst [vmem:[%s2868_s18 + $0x1c8] sm:$0xff] %v1385_v11  ;;  %2375 = vmatpush3.bf16.msra.mxu1 %v2374_v31 }
 0x24f   : > { %1474 = vst [vmem:[%s2868_s18 + $0x1c0] sm:$0xff] %v1380_v13  ;;  %v2376_v14 = vpack.c.bf16 %v1385_v11, %v1380_v13  ;;  %v2257_v15 = vpop.f32.mrb[58].mxu1 }
 0x250   : > { %v1395_v16 = vadd.f32 %v2257_v15, %v2861_v58  ;;  %v1389_v17 = vpop.f32.mrb[59].mxu1 }
 0x251   : > { %v1390_v18 = vadd.f32 %v2861_v58, %v1389_v17  ;;  %2377 = vmatprep.subr.bf16.mxu1 %v2376_v14 }
 0x252   : > { %1477 = vst [vmem:[%s2868_s18 + $0x1d8] sm:$0xff] %v1395_v16  ;;  %2379 = vmatpush3.bf16.msra.mxu1 %v2378_v36 }
 0x253   : > { %1476 = vst [vmem:[%s2868_s18 + $0x1d0] sm:$0xff] %v1390_v18  ;;  %v2380_v19 = vpack.c.bf16 %v1395_v16, %v1390_v18  ;;  %v2260_v20 = vpop.f32.mrb[60].mxu1 }
 0x254   : > { %v1405_v21 = vadd.f32 %v2260_v20, %v2861_v58  ;;  %v1399_v22 = vpop.f32.mrb[61].mxu1 }
 0x255   : > { %v1400_v23 = vadd.f32 %v2861_v58, %v1399_v22  ;;  %2381 = vmatprep.subr.bf16.mxu1 %v2380_v19 }
 0x256   : > { %1479 = vst [vmem:[%s2868_s18 + $0x1e8] sm:$0xff] %v1405_v21  ;;  %2383 = vmatpush3.bf16.msra.mxu1 %v2382_v41 }
 0x257   : > { %1478 = vst [vmem:[%s2868_s18 + $0x1e0] sm:$0xff] %v1400_v23  ;;  %v2384_v24 = vpack.c.bf16 %v1405_v21, %v1400_v23  ;;  %v2263_v25 = vpop.f32.mrb[62].mxu1 }
 0x258   : > { %v1415_v26 = vadd.f32 %v2263_v25, %v2861_v58  ;;  %v1409_v27 = vpop.f32.mrb[63].mxu1 }
 0x259   : > { %v1410_v28 = vadd.f32 %v2861_v58, %v1409_v27  ;;  %2385 = vmatprep.subr.bf16.mxu1 %v2384_v24 }
 0x25a   : > { %1481 = vst [vmem:[%s2868_s18 + $0x1f8] sm:$0xff] %v1415_v26  ;;  %2387 = vmatpush3.bf16.msra.mxu1 %v2386_v46 }
 0x25b   : > { %1480 = vst [vmem:[%s2868_s18 + $0x1f0] sm:$0xff] %v1410_v28  ;;  %v2388_v29 = vpack.c.bf16 %v1415_v26, %v1410_v28 }
 0x25d   : > { %2389 = vmatprep.subr.bf16.mxu1 %v2388_v29 }
 0x25e   : > { %2391 = vmatpush3.bf16.msra.mxu1 %v2390_v53 }
 0x261   : > { %1617 = vmatmul.mubr.f32.vlgmr.msra.gmra.mrb[64].mxu1 %v2473_v63 }
 0x2f4   : > { %v1970_v30 = vpop.f32.mrb[64].mxu0 }
 0x2f5   : > { %v1971_v31 = vpop.f32.mrb[65].mxu0 }
 0x2f6   : > { %v1972_v32 = vadd.f32 %v1971_v31, %v1970_v30 }
 0x334   : > { %v2005_v58 = vpop.f32.mrb[64].mxu1 }
 0x335   : > { %v2006_v33 = vpop.f32.mrb[65].mxu1 }
 0x336   : > { %v2007_v34 = vadd.f32 %v2006_v33, %v2005_v58 }
 0x338   : > { %v1619_v35 = vadd.f32 %v2007_v34, %v1972_v32 }
 0x33a   : > { %1622 = vst [vmem:[%s338_s23] sm:$0xff] %v1619_v35 }
 0x33b PF: > { %s18_s28 = sadd.s32 1, %s2471_s28   ;;  %s3207_s24 = smov %s2463_s26 }
 0x33c   : > { %p15_p8 = scmp.ge.s32.totalorder %s18_s28, 6   ;;  %s3208_s25 = smov %s2467_s27 }
 0x33d   : > { %s3209_s26 = smov %s3212_s29  ;;  %s3210_s27 = smov %s3216_s30 }
 0x33e   :  { %17 = sbr.rel (!%p15_p8) target bundleno = 3 (0x3), region = 86 }

// kernel: hire_mlp_h_wai_forward.5
= control target key start
LH: loop header
LB: loop body
LE: loop exit
PB: predicated region body
PF: predicated region fallthrough
CT: control target
= control target key end

     0   :  { %s1333_s15 = smov 0   ;;  %s1335_s16 = smov 0   ;;  %s1778_s0 = inlined_call_operand.vmem [shape: f32[2,1024,128], index: 0, kind: input, shape index: {}]   ;;  %s1779_s1 = inlined_call_operand.vmem [shape: f32[2,1,128], index: 1, kind: input, shape index: {}]   ;;  %s1780_s2 = inlined_call_operand.vmem [shape: f32[128,128], index: 2, kind: input, shape index: {}]   ;;  %s1781_s3 = inlined_call_operand.vmem [shape: f32[1,128], index: 3, kind: input, shape index: {}]   ;;  %s1782_s4 = inlined_call_operand.vmem [shape: f32[2,1024,128], index: 4, kind: output, shape index: {}]  }
   0x1   :  { %s1337_s17 = smov 0   ;;  %s1339_s18 = smov 0  }
   0x2   :  { %s1341_s19 = smov 0  }
   0x3 LB: > { %s23_s20 = sadd.s32 1, %s1298_s17  ;;  %s26_s21 = sadd.s32 1, %s1302_s18  ;;  %s1306_s19 = sphi %s1341_s19, %s14_s19   ;;  %s1302_s18 = sphi %s1339_s18, %s1786_s18   ;;  %s1298_s17 = sphi %s1337_s17, %s1785_s17   ;;  %s1294_s16 = sphi %s1335_s16, %s1784_s16   ;;  %s1290_s15 = sphi %s1333_s15, %s1783_s15  }
   0x4   : > { %p24_p0 = scmp.ge.s32.totalorder %s23_s20, 2  ;;  %p961_p1 = scmp.ge.s32.totalorder %s1306_s19, 1 }
   0x5   : > { %p191_p2 = scmp.lt.s32.totalorder %s1306_s19, 5 }
   0x6   : > { %s1788_s20 = smov (%p24_p0, %s23_s20), 0  ;;  %s1790_s21 = smov (!%p24_p0, %s26_s21), %s1302_s18 }
   0x7   : > { %p192_p3 = pnand %p961_p1, %p191_p2  ;;  %p28_p4 = scmp.ge.s32.totalorder %s1790_s21, 2 }
   0x8   : > { %v386_v0 = vld [vmem:[%s1780_s2] sm:$0xff] (!%p192_p3)  ;;  %v387_v1 = vld [vmem:[%s1780_s2 + $0x8] sm:$0xff] (!%p192_p3)  ;;  %v388_v2 = vld [vmem:[%s1780_s2 + $0x10] sm:$0xff] (!%p192_p3)  ;;  %s962_s28 = sshll.u32 (!%p192_p3), %s1290_s15, 6  ;;  %p229_p5 = scmp.lt.s32.totalorder (!%p192_p3), %s1294_s16, 1 }
   0x9   : > { %s1792_s21 = smov (%p28_p4, %s1790_s21), 0  ;;  %195 = sbr.rel (%p192_p3) target bundleno = 321 (0x141), region = 36 }
   0xa   : > { %v1180_v3 = vpack.c.bf16 (!%p192_p3), %v387_v1, %v386_v0  ;;  %v389_v4 = vld [vmem:[%s1780_s2 + $0x18] sm:$0xff] (!%p192_p3)  ;;  %p231_p6 = scmp.lt.s32.totalorder (!%p192_p3), %s962_s28, 127  ;;  %v390_v6 = vld [vmem:[%s1780_s2 + $0x20] sm:$0xff] (!%p192_p3)  ;;  %v391_v7 = vld [vmem:[%s1780_s2 + $0x28] sm:$0xff] (!%p192_p3) }
   0xb   : > { %v1184_v5 = vpack.c.bf16 (!%p192_p3), %v389_v4, %v388_v2  ;;  %v1188_v8 = vpack.c.bf16 (!%p192_p3), %v391_v7, %v390_v6  ;;  %v392_v9 = vld [vmem:[%s1780_s2 + $0x30] sm:$0xff] (!%p192_p3)  ;;  %v393_v10 = vld [vmem:[%s1780_s2 + $0x38] sm:$0xff] (!%p192_p3)  ;;  %v394_v17 = vld [vmem:[%s1780_s2 + $0x40] sm:$0xff] (!%p192_p3) }
   0xc   : > { %1181 = vmatprep.subr.bf16.mxu0 (!%p192_p3), %v1180_v3  ;;  %1212 = vmatprep.subr.bf16.mxu1 (!%p192_p3), %v1180_v3  ;;  %v1192_v14 = vpack.c.bf16 (!%p192_p3), %v393_v10, %v392_v9  ;;  %v395_v18 = vld [vmem:[%s1780_s2 + $0x48] sm:$0xff] (!%p192_p3)  ;;  %v396_v20 = vld [vmem:[%s1780_s2 + $0x50] sm:$0xff] (!%p192_p3)  ;;  %v397_v21 = vld [vmem:[%s1780_s2 + $0x58] sm:$0xff] (!%p192_p3) }
   0xd   : > { %1183 = vmatpush3.bf16.msra.mxu0 (!%p192_p3), %v1180_v3  ;;  %1220 = vmatpush3.bf16.msra.mxu1 (!%p192_p3), %v1180_v3  ;;  %v1196_v19 = vpack.c.bf16 (!%p192_p3), %v395_v18, %v394_v17  ;;  %v1200_v22 = vpack.c.bf16 (!%p192_p3), %v397_v21, %v396_v20  ;;  %v398_v23 = vld [vmem:[%s1780_s2 + $0x60] sm:$0xff] (!%p192_p3)  ;;  %v399_v24 = vld [vmem:[%s1780_s2 + $0x68] sm:$0xff] (!%p192_p3)  ;;  %v400_v25 = vld [vmem:[%s1780_s2 + $0x70] sm:$0xff] (!%p192_p3) }
   0xe   : > { %1185 = vmatprep.subr.bf16.mxu0 (!%p192_p3), %v1184_v5  ;;  %1213 = vmatprep.subr.bf16.mxu1 (!%p192_p3), %v1184_v5  ;;  %v401_v26 = vld [vmem:[%s1780_s2 + $0x78] sm:$0xff] (!%p192_p3)  ;;  %v1204_v27 = vpack.c.bf16 (!%p192_p3), %v399_v24, %v398_v23 }
   0xf   : > { %v1208_v31 = vpack.c.bf16 (!%p192_p3), %v401_v26, %v400_v25 }
  0x10   : > { %s1794_s16 = smov (!%p229_p5, %s1294_s16), 1  ;;  %s1796_s28 = smov (!%p231_p6, %s962_s28), 127 }
  0x11   : > { %s963_s9 = sshll.u32 %s1794_s16, 7  ;;  %s240_s12 = scalar_lea.vmem %s1779_s1, %s1794_s16  ;;  %1187 = vmatpush3.bf16.msra.mxu0 %v1184_v5  ;;  %1221 = vmatpush3.bf16.msra.mxu1 %v1184_v5 }
  0x12   : > { %s1387_s13 = sadd.s32 %s963_s9, %s1796_s28  ;;  %v1396_v11 = vld [vmem:[%s240_s12] ss:$0 sm:$0xff]  ;;  %1189 = vmatprep.subr.bf16.mxu0 %v1188_v8  ;;  %1214 = vmatprep.subr.bf16.mxu1 %v1188_v8 }
  0x13   : > { %s964_s24 = sshll.u32 %s1387_s13, 3 }
  0x14   : > { %s1403_s26 = scalar_lea.vmem %s1778_s0, %s964_s24  ;;  %s1633_s28 = scalar_lea.vmem %s1782_s4, %s964_s24 }
  0x15   : > { %v251_v12 = vld [vmem:[%s1403_s26] sm:$0xff]  ;;  %1191 = vmatpush3.bf16.msra.mxu0 %v1188_v8  ;;  %1222 = vmatpush3.bf16.msra.mxu1 %v1188_v8  ;;  %v272_v28 = vld [vmem:[%s1403_s26 + $0xa8] sm:$0xff]  ;;  %v273_v30 = vld [vmem:[%s1403_s26 + $0xb0] sm:$0xff] }
  0x16   : > { %v283_v13 = vld [vmem:[%s1403_s26 + $0x100] sm:$0xff]  ;;  %v322_v15 = vmul.f32 %v1396_v11, %v251_v12  ;;  %1193 = vmatprep.subr.bf16.mxu0 %v1192_v14  ;;  %1215 = vmatprep.subr.bf16.mxu1 %v1192_v14  ;;  %v304_v29 = vld [vmem:[%s1403_s26 + $0x1a8] sm:$0xff]  ;;  %v1437_v32 = vmul.f32 %v1396_v11, %v272_v28  ;;  %v1443_v34 = vmul.f32 %v1396_v11, %v273_v30  ;;  %v305_v35 = vld [vmem:[%s1403_s26 + $0x1b0] sm:$0xff] }
  0x17   : > { %v354_v16 = vmul.f32 %v1396_v11, %v283_v13  ;;  %v1440_v33 = vmul.f32 %v1396_v11, %v304_v29  ;;  %v274_v36 = vld [vmem:[%s1403_s26 + $0xb8] sm:$0xff]  ;;  %v1449_v38 = vmul.f32 %v1396_v11, %v305_v35  ;;  %v275_v41 = vld [vmem:[%s1403_s26 + $0xc0] sm:$0xff]  ;;  %v276_v43 = vld [vmem:[%s1403_s26 + $0xc8] sm:$0xff] }
  0x18   : > { %1084 = vmatprep.mubr.f32.mxu0 %v322_v15  ;;  %v306_v37 = vld [vmem:[%s1403_s26 + $0x1b8] sm:$0xff]  ;;  %v1452_v39 = vmul.f32 %v1396_v11, %v274_v36  ;;  %v307_v42 = vld [vmem:[%s1403_s26 + $0x1c0] sm:$0xff]  ;;  %v1461_v44 = vmul.f32 %v1396_v11, %v275_v41  ;;  %v1467_v46 = vmul.f32 %v1396_v11, %v276_v43  ;;  %v308_v47 = vld [vmem:[%s1403_s26 + $0x1c8] sm:$0xff] }
  0x19   : > { %1132 = vmatprep.mubr.f32.mxu1 %v354_v16  ;;  %1195 = vmatpush3.bf16.msra.mxu0 %v1192_v14  ;;  %v1455_v40 = vmul.f32 %v1396_v11, %v306_v37  ;;  %v1464_v45 = vmul.f32 %v1396_v11, %v307_v42  ;;  %v277_v48 = vld [vmem:[%s1403_s26 + $0xd0] sm:$0xff]  ;;  %v252_v50 = vld [vmem:[%s1403_s26 + $0x8] sm:$0xff]  ;;  %v1475_v52 = vmul.f32 %v1396_v11, %v308_v47  ;;  %v278_v55 = vld [vmem:[%s1403_s26 + $0xd8] sm:$0xff] }
  0x1a   : > { %1223 = vmatpush3.bf16.msra.mxu1 %v1192_v14  ;;  %1197 = vmatprep.subr.bf16.mxu0 %v1196_v19  ;;  %v309_v49 = vld [vmem:[%s1403_s26 + $0x1d0] sm:$0xff]  ;;  %v284_v51 = vld [vmem:[%s1403_s26 + $0x108] sm:$0xff]  ;;  %v1478_v53 = vmul.f32 %v1396_v11, %v277_v48  ;;  %v310_v56 = vld [vmem:[%s1403_s26 + $0x1d8] sm:$0xff]  ;;  %v1487_v58 = vmul.f32 %v1396_v11, %v278_v55  ;;  %v323_v14 = vmul.f32 %v1396_v11, %v252_v50 }
  0x1b   : > { %1216 = vmatprep.subr.bf16.mxu1 %v1196_v19  ;;  %v1481_v54 = vmul.f32 %v1396_v11, %v309_v49  ;;  %v279_v57 = vld [vmem:[%s1403_s26 + $0xe0] sm:$0xff]  ;;  %v1490_v59 = vmul.f32 %v1396_v11, %v310_v56  ;;  %v280_v62 = vld [vmem:[%s1403_s26 + $0xe8] sm:$0xff]  ;;  %v281_v3 = vld [vmem:[%s1403_s26 + $0xf0] sm:$0xff]  ;;  %v355_v15 = vmul.f32 %v1396_v11, %v284_v51 }
  0x1c   : > { %v1493_v60 = vmul.f32 %v1396_v11, %v279_v57  ;;  %v311_v61 = vld [vmem:[%s1403_s26 + $0x1e0] sm:$0xff]  ;;  %v312_v63 = vld [vmem:[%s1403_s26 + $0x1e8] sm:$0xff]  ;;  %v1502_v1 = vmul.f32 %v1396_v11, %v280_v62  ;;  %v313_v4 = vld [vmem:[%s1403_s26 + $0x1f0] sm:$0xff]  ;;  %v1513_v8 = vmul.f32 %v1396_v11, %v281_v3 }
  0x1d   : > { %1199 = vmatpush3.bf16.msra.mxu0 %v1196_v19  ;;  %v1499_v0 = vmul.f32 %v1396_v11, %v311_v61  ;;  %v1505_v2 = vmul.f32 %v1396_v11, %v312_v63  ;;  %v282_v5 = vld [vmem:[%s1403_s26 + $0xf8] sm:$0xff]  ;;  %v253_v6 = vld [vmem:[%s1403_s26 + $0x10] sm:$0xff]  ;;  %v1516_v9 = vmul.f32 %v1396_v11, %v313_v4  ;;  %v255_v20 = vld [vmem:[%s1403_s26 + $0x20] sm:$0xff] }
  0x1e   : > { %1224 = vmatpush3.bf16.msra.mxu1 %v1196_v19  ;;  %1201 = vmatprep.subr.bf16.mxu0 %v1200_v22  ;;  %v285_v7 = vld [vmem:[%s1403_s26 + $0x110] sm:$0xff]  ;;  %v1519_v10 = vmul.f32 %v1396_v11, %v282_v5  ;;  %v314_v12 = vld [vmem:[%s1403_s26 + $0x1f8] sm:$0xff]  ;;  %v324_v16 = vmul.f32 %v1396_v11, %v253_v6  ;;  %v287_v21 = vld [vmem:[%s1403_s26 + $0x120] sm:$0xff]  ;;  %v326_v24 = vmul.f32 %v1396_v11, %v255_v20 }
  0x1f   : > { %1217 = vmatprep.subr.bf16.mxu1 %v1200_v22  ;;  %v1523_v13 = vmul.f32 %v1396_v11, %v314_v12  ;;  %v356_v17 = vmul.f32 %v1396_v11, %v285_v7  ;;  %v254_v18 = vld [vmem:[%s1403_s26 + $0x18] sm:$0xff]  ;;  %v358_v25 = vmul.f32 %v1396_v11, %v287_v21  ;;  %v256_v26 = vld [vmem:[%s1403_s26 + $0x28] sm:$0xff]  ;;  %v257_v28 = vld [vmem:[%s1403_s26 + $0x30] sm:$0xff] }
  0x20   : > { %v286_v19 = vld [vmem:[%s1403_s26 + $0x118] sm:$0xff]  ;;  %v289_v29 = vld [vmem:[%s1403_s26 + $0x130] sm:$0xff]  ;;  %v327_v30 = vmul.f32 %v1396_v11, %v256_v26  ;;  %v328_v35 = vmul.f32 %v1396_v11, %v257_v28  ;;  %v259_v42 = vld [vmem:[%s1403_s26 + $0x40] sm:$0xff] }
  0x21   : > { %1203 = vmatpush3.bf16.msra.mxu0 %v1200_v22  ;;  %v357_v23 = vmul.f32 %v1396_v11, %v286_v19  ;;  %v360_v36 = vmul.f32 %v1396_v11, %v289_v29  ;;  %v258_v37 = vld [vmem:[%s1403_s26 + $0x38] sm:$0xff]  ;;  %v291_v43 = vld [vmem:[%s1403_s26 + $0x140] sm:$0xff]  ;;  %v330_v49 = vmul.f32 %v1396_v11, %v259_v42  ;;  %v260_v51 = vld [vmem:[%s1403_s26 + $0x48] sm:$0xff] }
  0x22   : > { %1225 = vmatpush3.bf16.msra.mxu1 %v1200_v22  ;;  %1205 = vmatprep.subr.bf16.mxu0 %v1204_v27  ;;  %v325_v22 = vmul.f32 %v1396_v11, %v254_v18  ;;  %v290_v41 = vld [vmem:[%s1403_s26 + $0x138] sm:$0xff]  ;;  %v329_v47 = vmul.f32 %v1396_v11, %v258_v37  ;;  %v362_v50 = vmul.f32 %v1396_v11, %v291_v43  ;;  %v292_v55 = vld [vmem:[%s1403_s26 + $0x148] sm:$0xff]  ;;  %v261_v56 = vld [vmem:[%s1403_s26 + $0x50] sm:$0xff] }
  0x23   : > { %1218 = vmatprep.subr.bf16.mxu1 %v1204_v27  ;;  %v361_v48 = vmul.f32 %v1396_v11, %v290_v41  ;;  %v293_v57 = vld [vmem:[%s1403_s26 + $0x150] sm:$0xff]  ;;  %v331_v61 = vmul.f32 %v1396_v11, %v260_v51  ;;  %v363_v62 = vmul.f32 %v1396_v11, %v292_v55  ;;  %v332_v63 = vmul.f32 %v1396_v11, %v261_v56  ;;  %v262_v4 = vld [vmem:[%s1403_s26 + $0x58] sm:$0xff]  ;;  %v263_v6 = vld [vmem:[%s1403_s26 + $0x60] sm:$0xff] }
  0x24   : > { %v364_v3 = vmul.f32 %v1396_v11, %v293_v57  ;;  %v294_v5 = vld [vmem:[%s1403_s26 + $0x158] sm:$0xff]  ;;  %v295_v7 = vld [vmem:[%s1403_s26 + $0x160] sm:$0xff]  ;;  %v333_v12 = vmul.f32 %v1396_v11, %v262_v4  ;;  %v296_v18 = vld [vmem:[%s1403_s26 + $0x168] sm:$0xff] }
  0x25   : > { %1207 = vmatpush3.bf16.msra.mxu0 %v1204_v27  ;;  %v265_v19 = vld [vmem:[%s1403_s26 + $0x70] sm:$0xff]  ;;  %v298_v26 = vld [vmem:[%s1403_s26 + $0x178] sm:$0xff]  ;;  %v299_v28 = vld [vmem:[%s1403_s26 + $0x180] sm:$0xff] }
  0x26   : > { %1226 = vmatpush3.bf16.msra.mxu1 %v1204_v27  ;;  %1209 = vmatprep.subr.bf16.mxu0 %v1208_v31  ;;  %v288_v27 = vld [vmem:[%s1403_s26 + $0x128] sm:$0xff]  ;;  %v297_v20 = vld [vmem:[%s1403_s26 + $0x170] sm:$0xff]  ;;  %v302_v51 = vld [vmem:[%s1403_s26 + $0x198] sm:$0xff] }
  0x27   : > { %1219 = vmatprep.subr.bf16.mxu1 %v1208_v31  ;;  %v300_v37 = vld [vmem:[%s1403_s26 + $0x188] sm:$0xff]  ;;  %v269_v41 = vld [vmem:[%s1403_s26 + $0x90] sm:$0xff]  ;;  %v271_v55 = vld [vmem:[%s1403_s26 + $0xa0] sm:$0xff] }
  0x28   : > { %v301_v42 = vld [vmem:[%s1403_s26 + $0x190] sm:$0xff]  ;;  %v303_v56 = vld [vmem:[%s1403_s26 + $0x1a0] sm:$0xff] }
  0x29   : > { %1211 = vmatpush3.bf16.msra.mxu0 %v1208_v31 }
  0x2a   : > { %1227 = vmatpush3.bf16.msra.mxu1 %v1208_v31  ;;  %v359_v31 = vmul.f32 %v1396_v11, %v288_v27  ;;  %v267_v27 = vld [vmem:[%s1403_s26 + $0x80] sm:$0xff] }
  0x2c   : > { %1085 = vmatmul.mubr.f32.vlgmr.msra.gmra.mrb[0].mxu0 %v323_v14  ;;  %v365_v14 = vmul.f32 %v1396_v11, %v294_v5 }
  0x2d   : > { %1133 = vmatmul.mubr.f32.vlgmr.msra.gmra.mrb[0].mxu1 %v355_v15  ;;  %1087 = vmatprep.mubr.f32.mxu0 %v324_v16  ;;  %v334_v15 = vmul.f32 %v1396_v11, %v263_v6  ;;  %v366_v16 = vmul.f32 %v1396_v11, %v295_v7 }
  0x2e   : > { %1135 = vmatprep.mubr.f32.mxu1 %v356_v17  ;;  %v264_v17 = vld [vmem:[%s1403_s26 + $0x68] sm:$0xff] }
  0x2f   : > { %v335_v21 = vmul.f32 %v1396_v11, %v264_v17 }
  0x30   : > { %1088 = vmatmul.mubr.f32.gmra.mrb[2].mxu0 %v325_v22  ;;  %v367_v22 = vmul.f32 %v1396_v11, %v296_v18 }
  0x31   : > { %1136 = vmatmul.mubr.f32.gmra.mrb[2].mxu1 %v357_v23  ;;  %1090 = vmatprep.mubr.f32.mxu0 %v326_v24  ;;  %v336_v23 = vmul.f32 %v1396_v11, %v265_v19  ;;  %v368_v24 = vmul.f32 %v1396_v11, %v297_v20 }
  0x32   : > { %1138 = vmatprep.mubr.f32.mxu1 %v358_v25  ;;  %v266_v25 = vld [vmem:[%s1403_s26 + $0x78] sm:$0xff] }
  0x33   : > { %v337_v29 = vmul.f32 %v1396_v11, %v266_v25 }
  0x34   : > { %1091 = vmatmul.mubr.f32.gmra.mrb[4].mxu0 %v327_v30  ;;  %v369_v30 = vmul.f32 %v1396_v11, %v298_v26 }
  0x35   : > { %1139 = vmatmul.mubr.f32.gmra.mrb[4].mxu1 %v359_v31  ;;  %1093 = vmatprep.mubr.f32.mxu0 %v328_v35  ;;  %v338_v31 = vmul.f32 %v1396_v11, %v267_v27  ;;  %v370_v35 = vmul.f32 %v1396_v11, %v299_v28 }
  0x36   : > { %1141 = vmatprep.mubr.f32.mxu1 %v360_v36  ;;  %v268_v36 = vld [vmem:[%s1403_s26 + $0x88] sm:$0xff] }
  0x37   : > { %v339_v43 = vmul.f32 %v1396_v11, %v268_v36 }
  0x38   : > { %1094 = vmatmul.mubr.f32.gmra.mrb[6].mxu0 %v329_v47  ;;  %v371_v47 = vmul.f32 %v1396_v11, %v300_v37 }
  0x39   : > { %1142 = vmatmul.mubr.f32.gmra.mrb[6].mxu1 %v361_v48  ;;  %1096 = vmatprep.mubr.f32.mxu0 %v330_v49  ;;  %v340_v48 = vmul.f32 %v1396_v11, %v269_v41  ;;  %v372_v49 = vmul.f32 %v1396_v11, %v301_v42 }
  0x3a   : > { %1144 = vmatprep.mubr.f32.mxu1 %v362_v50  ;;  %v270_v50 = vld [vmem:[%s1403_s26 + $0x98] sm:$0xff] }
  0x3b   : > { %v341_v57 = vmul.f32 %v1396_v11, %v270_v50 }
  0x3c   : > { %1097 = vmatmul.mubr.f32.gmra.mrb[8].mxu0 %v331_v61  ;;  %v373_v61 = vmul.f32 %v1396_v11, %v302_v51 }
  0x3d   : > { %1145 = vmatmul.mubr.f32.gmra.mrb[8].mxu1 %v363_v62  ;;  %1099 = vmatprep.mubr.f32.mxu0 %v332_v63  ;;  %v342_v62 = vmul.f32 %v1396_v11, %v271_v55  ;;  %v374_v63 = vmul.f32 %v1396_v11, %v303_v56  ;;  %v1626_v11 = vld [vmem:[%s1781_s3] ss:$0 sm:$0xff] }
  0x3e   : > { %1147 = vmatprep.mubr.f32.mxu1 %v364_v3 }
  0x40   : > { %1100 = vmatmul.mubr.f32.gmra.mrb[10].mxu0 %v333_v12 }
  0x41   : > { %1148 = vmatmul.mubr.f32.gmra.mrb[10].mxu1 %v365_v14  ;;  %1102 = vmatprep.mubr.f32.mxu0 %v334_v15 }
  0x42   : > { %1150 = vmatprep.mubr.f32.mxu1 %v366_v16 }
  0x44   : > { %1103 = vmatmul.mubr.f32.gmra.mrb[12].mxu0 %v335_v21 }
  0x45   : > { %1151 = vmatmul.mubr.f32.gmra.mrb[12].mxu1 %v367_v22  ;;  %1105 = vmatprep.mubr.f32.mxu0 %v336_v23 }
  0x46   : > { %1153 = vmatprep.mubr.f32.mxu1 %v368_v24 }
  0x48   : > { %1106 = vmatmul.mubr.f32.gmra.mrb[14].mxu0 %v337_v29 }
  0x49   : > { %1154 = vmatmul.mubr.f32.gmra.mrb[14].mxu1 %v369_v30  ;;  %1108 = vmatprep.mubr.f32.mxu0 %v338_v31 }
  0x4a   : > { %1156 = vmatprep.mubr.f32.mxu1 %v370_v35 }
  0x4c   : > { %1109 = vmatmul.mubr.f32.gmra.mrb[16].mxu0 %v339_v43 }
  0x4d   : > { %1157 = vmatmul.mubr.f32.gmra.mrb[16].mxu1 %v371_v47  ;;  %1111 = vmatprep.mubr.f32.mxu0 %v340_v48 }
  0x4e   : > { %1159 = vmatprep.mubr.f32.mxu1 %v372_v49 }
  0x50   : > { %1112 = vmatmul.mubr.f32.gmra.mrb[18].mxu0 %v341_v57 }
  0x51   : > { %1160 = vmatmul.mubr.f32.gmra.mrb[18].mxu1 %v373_v61  ;;  %1114 = vmatprep.mubr.f32.mxu0 %v342_v62 }
  0x52   : > { %1162 = vmatprep.mubr.f32.mxu1 %v374_v63 }
  0x54   : > { %1115 = vmatmul.mubr.f32.gmra.mrb[20].mxu0 %v1437_v32 }
  0x55   : > { %1163 = vmatmul.mubr.f32.gmra.mrb[20].mxu1 %v1440_v33  ;;  %1117 = vmatprep.mubr.f32.mxu0 %v1443_v34 }
  0x56   : > { %1165 = vmatprep.mubr.f32.mxu1 %v1449_v38 }
  0x58   : > { %1118 = vmatmul.mubr.f32.gmra.mrb[22].mxu0 %v1452_v39 }
  0x59   : > { %1166 = vmatmul.mubr.f32.gmra.mrb[22].mxu1 %v1455_v40  ;;  %1120 = vmatprep.mubr.f32.mxu0 %v1461_v44 }
  0x5a   : > { %1168 = vmatprep.mubr.f32.mxu1 %v1464_v45 }
  0x5c   : > { %1121 = vmatmul.mubr.f32.gmra.mrb[24].mxu0 %v1467_v46 }
  0x5d   : > { %1169 = vmatmul.mubr.f32.gmra.mrb[24].mxu1 %v1475_v52  ;;  %1123 = vmatprep.mubr.f32.mxu0 %v1478_v53 }
  0x5e   : > { %1171 = vmatprep.mubr.f32.mxu1 %v1481_v54 }
  0x60   : > { %1124 = vmatmul.mubr.f32.gmra.mrb[26].mxu0 %v1487_v58 }
  0x61   : > { %1172 = vmatmul.mubr.f32.gmra.mrb[26].mxu1 %v1490_v59  ;;  %1126 = vmatprep.mubr.f32.mxu0 %v1493_v60 }
  0x62   : > { %1174 = vmatprep.mubr.f32.mxu1 %v1499_v0 }
  0x64   : > { %1127 = vmatmul.mubr.f32.gmra.mrb[28].mxu0 %v1502_v1 }
  0x65   : > { %1175 = vmatmul.mubr.f32.gmra.mrb[28].mxu1 %v1505_v2  ;;  %1129 = vmatprep.mubr.f32.mxu0 %v1513_v8 }
  0x66   : > { %1177 = vmatprep.mubr.f32.mxu1 %v1516_v9 }
  0x68   : > { %1130 = vmatmul.mubr.f32.gmra.mrb[30].mxu0 %v1519_v10 }
  0x69   : > { %1178 = vmatmul.mubr.f32.gmra.mrb[30].mxu1 %v1523_v13 }
  0xff   : > { %v1086_v32 = vpop.f32.mrb[0].mxu0 }
 0x100   : > { %v1134_v33 = vpop.f32.mrb[0].mxu1  ;;  %v481_v34 = vadd.f32 %v1086_v32, %v1626_v11  ;;  %v475_v39 = vpop.f32.mrb[1].mxu0 }
 0x101   : > { %v641_v38 = vadd.f32 %v1134_v33, %v1626_v11  ;;  %v635_v40 = vpop.f32.mrb[1].mxu1  ;;  %v476_v44 = vadd.f32 %v1626_v11, %v475_v39 }
 0x102   : > { %v636_v45 = vadd.f32 %v1626_v11, %v635_v40  ;;  %795 = vst [vmem:[%s1633_s28 + $0x8] sm:$0xff] %v481_v34 }
 0x103   : > { %827 = vst [vmem:[%s1633_s28 + $0x108] sm:$0xff] %v641_v38  ;;  %794 = vst [vmem:[%s1633_s28] sm:$0xff] %v476_v44  ;;  %v1089_v46 = vpop.f32.mrb[2].mxu0 }
 0x104   : > { %826 = vst [vmem:[%s1633_s28 + $0x100] sm:$0xff] %v636_v45  ;;  %v1137_v52 = vpop.f32.mrb[2].mxu1  ;;  %v491_v53 = vadd.f32 %v1089_v46, %v1626_v11  ;;  %v485_v58 = vpop.f32.mrb[3].mxu0 }
 0x105   : > { %v651_v54 = vadd.f32 %v1137_v52, %v1626_v11  ;;  %v645_v59 = vpop.f32.mrb[3].mxu1  ;;  %v486_v60 = vadd.f32 %v1626_v11, %v485_v58 }
 0x106   : > { %v646_v0 = vadd.f32 %v1626_v11, %v645_v59  ;;  %797 = vst [vmem:[%s1633_s28 + $0x18] sm:$0xff] %v491_v53 }
 0x107   : > { %829 = vst [vmem:[%s1633_s28 + $0x118] sm:$0xff] %v651_v54  ;;  %796 = vst [vmem:[%s1633_s28 + $0x10] sm:$0xff] %v486_v60  ;;  %v1092_v1 = vpop.f32.mrb[4].mxu0 }
 0x108   : > { %828 = vst [vmem:[%s1633_s28 + $0x110] sm:$0xff] %v646_v0  ;;  %v1140_v2 = vpop.f32.mrb[4].mxu1  ;;  %v501_v8 = vadd.f32 %v1092_v1, %v1626_v11  ;;  %v495_v10 = vpop.f32.mrb[5].mxu0 }
 0x109   : > { %v661_v9 = vadd.f32 %v1140_v2, %v1626_v11  ;;  %v655_v13 = vpop.f32.mrb[5].mxu1  ;;  %v496_v3 = vadd.f32 %v1626_v11, %v495_v10 }
 0x10a   : > { %v656_v4 = vadd.f32 %v1626_v11, %v655_v13  ;;  %799 = vst [vmem:[%s1633_s28 + $0x28] sm:$0xff] %v501_v8 }
 0x10b   : > { %831 = vst [vmem:[%s1633_s28 + $0x128] sm:$0xff] %v661_v9  ;;  %798 = vst [vmem:[%s1633_s28 + $0x20] sm:$0xff] %v496_v3  ;;  %v1095_v5 = vpop.f32.mrb[6].mxu0 }
 0x10c   : > { %830 = vst [vmem:[%s1633_s28 + $0x120] sm:$0xff] %v656_v4  ;;  %v1143_v6 = vpop.f32.mrb[6].mxu1  ;;  %v511_v7 = vadd.f32 %v1095_v5, %v1626_v11  ;;  %v505_v14 = vpop.f32.mrb[7].mxu0 }
 0x10d   : > { %v671_v12 = vadd.f32 %v1143_v6, %v1626_v11  ;;  %v665_v15 = vpop.f32.mrb[7].mxu1  ;;  %v506_v16 = vadd.f32 %v1626_v11, %v505_v14 }
 0x10e   : > { %v666_v17 = vadd.f32 %v1626_v11, %v665_v15  ;;  %801 = vst [vmem:[%s1633_s28 + $0x38] sm:$0xff] %v511_v7 }
 0x10f   : > { %833 = vst [vmem:[%s1633_s28 + $0x138] sm:$0xff] %v671_v12  ;;  %800 = vst [vmem:[%s1633_s28 + $0x30] sm:$0xff] %v506_v16  ;;  %v1098_v18 = vpop.f32.mrb[8].mxu0 }
 0x110   : > { %832 = vst [vmem:[%s1633_s28 + $0x130] sm:$0xff] %v666_v17  ;;  %v1146_v19 = vpop.f32.mrb[8].mxu1  ;;  %v521_v20 = vadd.f32 %v1098_v18, %v1626_v11  ;;  %v515_v22 = vpop.f32.mrb[9].mxu0 }
 0x111   : > { %v681_v21 = vadd.f32 %v1146_v19, %v1626_v11  ;;  %v675_v23 = vpop.f32.mrb[9].mxu1  ;;  %v516_v24 = vadd.f32 %v1626_v11, %v515_v22 }
 0x112   : > { %v676_v25 = vadd.f32 %v1626_v11, %v675_v23  ;;  %803 = vst [vmem:[%s1633_s28 + $0x48] sm:$0xff] %v521_v20 }
 0x113   : > { %835 = vst [vmem:[%s1633_s28 + $0x148] sm:$0xff] %v681_v21  ;;  %802 = vst [vmem:[%s1633_s28 + $0x40] sm:$0xff] %v516_v24  ;;  %v1101_v26 = vpop.f32.mrb[10].mxu0 }
 0x114   : > { %834 = vst [vmem:[%s1633_s28 + $0x140] sm:$0xff] %v676_v25  ;;  %v1149_v27 = vpop.f32.mrb[10].mxu1  ;;  %v531_v28 = vadd.f32 %v1101_v26, %v1626_v11  ;;  %v525_v30 = vpop.f32.mrb[11].mxu0 }
 0x115   : > { %v691_v29 = vadd.f32 %v1149_v27, %v1626_v11  ;;  %v685_v31 = vpop.f32.mrb[11].mxu1  ;;  %v526_v35 = vadd.f32 %v1626_v11, %v525_v30 }
 0x116   : > { %v686_v36 = vadd.f32 %v1626_v11, %v685_v31  ;;  %805 = vst [vmem:[%s1633_s28 + $0x58] sm:$0xff] %v531_v28 }
 0x117   : > { %837 = vst [vmem:[%s1633_s28 + $0x158] sm:$0xff] %v691_v29  ;;  %804 = vst [vmem:[%s1633_s28 + $0x50] sm:$0xff] %v526_v35  ;;  %v1104_v37 = vpop.f32.mrb[12].mxu0 }
 0x118   : > { %836 = vst [vmem:[%s1633_s28 + $0x150] sm:$0xff] %v686_v36  ;;  %v1152_v41 = vpop.f32.mrb[12].mxu1  ;;  %v541_v42 = vadd.f32 %v1104_v37, %v1626_v11  ;;  %v535_v47 = vpop.f32.mrb[13].mxu0 }
 0x119   : > { %v701_v43 = vadd.f32 %v1152_v41, %v1626_v11  ;;  %v695_v48 = vpop.f32.mrb[13].mxu1  ;;  %v536_v49 = vadd.f32 %v1626_v11, %v535_v47 }
 0x11a   : > { %v696_v50 = vadd.f32 %v1626_v11, %v695_v48  ;;  %807 = vst [vmem:[%s1633_s28 + $0x68] sm:$0xff] %v541_v42 }
 0x11b   : > { %839 = vst [vmem:[%s1633_s28 + $0x168] sm:$0xff] %v701_v43  ;;  %806 = vst [vmem:[%s1633_s28 + $0x60] sm:$0xff] %v536_v49  ;;  %v1107_v51 = vpop.f32.mrb[14].mxu0 }
 0x11c   : > { %838 = vst [vmem:[%s1633_s28 + $0x160] sm:$0xff] %v696_v50  ;;  %v1155_v55 = vpop.f32.mrb[14].mxu1  ;;  %v551_v56 = vadd.f32 %v1107_v51, %v1626_v11  ;;  %v545_v61 = vpop.f32.mrb[15].mxu0 }
 0x11d   : > { %v711_v57 = vadd.f32 %v1155_v55, %v1626_v11  ;;  %v705_v62 = vpop.f32.mrb[15].mxu1  ;;  %v546_v63 = vadd.f32 %v1626_v11, %v545_v61 }
 0x11e   : > { %v706_v32 = vadd.f32 %v1626_v11, %v705_v62  ;;  %809 = vst [vmem:[%s1633_s28 + $0x78] sm:$0xff] %v551_v56 }
 0x11f   : > { %841 = vst [vmem:[%s1633_s28 + $0x178] sm:$0xff] %v711_v57  ;;  %808 = vst [vmem:[%s1633_s28 + $0x70] sm:$0xff] %v546_v63  ;;  %v1110_v33 = vpop.f32.mrb[16].mxu0 }
 0x120   : > { %840 = vst [vmem:[%s1633_s28 + $0x170] sm:$0xff] %v706_v32  ;;  %v1158_v34 = vpop.f32.mrb[16].mxu1  ;;  %v561_v38 = vadd.f32 %v1110_v33, %v1626_v11  ;;  %v555_v40 = vpop.f32.mrb[17].mxu0 }
 0x121   : > { %v721_v39 = vadd.f32 %v1158_v34, %v1626_v11  ;;  %v715_v44 = vpop.f32.mrb[17].mxu1  ;;  %v556_v45 = vadd.f32 %v1626_v11, %v555_v40 }
 0x122   : > { %v716_v46 = vadd.f32 %v1626_v11, %v715_v44  ;;  %811 = vst [vmem:[%s1633_s28 + $0x88] sm:$0xff] %v561_v38 }
 0x123   : > { %843 = vst [vmem:[%s1633_s28 + $0x188] sm:$0xff] %v721_v39  ;;  %810 = vst [vmem:[%s1633_s28 + $0x80] sm:$0xff] %v556_v45  ;;  %v1113_v52 = vpop.f32.mrb[18].mxu0 }
 0x124   : > { %842 = vst [vmem:[%s1633_s28 + $0x180] sm:$0xff] %v716_v46  ;;  %v1161_v53 = vpop.f32.mrb[18].mxu1  ;;  %v571_v54 = vadd.f32 %v1113_v52, %v1626_v11  ;;  %v565_v59 = vpop.f32.mrb[19].mxu0 }
 0x125   : > { %v731_v58 = vadd.f32 %v1161_v53, %v1626_v11  ;;  %v725_v60 = vpop.f32.mrb[19].mxu1  ;;  %v566_v0 = vadd.f32 %v1626_v11, %v565_v59 }
 0x126   : > { %v726_v1 = vadd.f32 %v1626_v11, %v725_v60  ;;  %813 = vst [vmem:[%s1633_s28 + $0x98] sm:$0xff] %v571_v54 }
 0x127   : > { %845 = vst [vmem:[%s1633_s28 + $0x198] sm:$0xff] %v731_v58  ;;  %812 = vst [vmem:[%s1633_s28 + $0x90] sm:$0xff] %v566_v0  ;;  %v1116_v2 = vpop.f32.mrb[20].mxu0 }
 0x128   : > { %844 = vst [vmem:[%s1633_s28 + $0x190] sm:$0xff] %v726_v1  ;;  %v1164_v8 = vpop.f32.mrb[20].mxu1  ;;  %v581_v9 = vadd.f32 %v1116_v2, %v1626_v11  ;;  %v575_v13 = vpop.f32.mrb[21].mxu0 }
 0x129   : > { %v741_v10 = vadd.f32 %v1164_v8, %v1626_v11  ;;  %v735_v3 = vpop.f32.mrb[21].mxu1  ;;  %v576_v4 = vadd.f32 %v1626_v11, %v575_v13 }
 0x12a   : > { %v736_v5 = vadd.f32 %v1626_v11, %v735_v3  ;;  %815 = vst [vmem:[%s1633_s28 + $0xa8] sm:$0xff] %v581_v9 }
 0x12b   : > { %847 = vst [vmem:[%s1633_s28 + $0x1a8] sm:$0xff] %v741_v10  ;;  %814 = vst [vmem:[%s1633_s28 + $0xa0] sm:$0xff] %v576_v4  ;;  %v1119_v6 = vpop.f32.mrb[22].mxu0 }
 0x12c   : > { %846 = vst [vmem:[%s1633_s28 + $0x1a0] sm:$0xff] %v736_v5  ;;  %v1167_v7 = vpop.f32.mrb[22].mxu1  ;;  %v591_v12 = vadd.f32 %v1119_v6, %v1626_v11  ;;  %v585_v15 = vpop.f32.mrb[23].mxu0 }
 0x12d   : > { %v751_v14 = vadd.f32 %v1167_v7, %v1626_v11  ;;  %v745_v16 = vpop.f32.mrb[23].mxu1  ;;  %v586_v17 = vadd.f32 %v1626_v11, %v585_v15 }
 0x12e   : > { %v746_v18 = vadd.f32 %v1626_v11, %v745_v16  ;;  %817 = vst [vmem:[%s1633_s28 + $0xb8] sm:$0xff] %v591_v12 }
 0x12f   : > { %849 = vst [vmem:[%s1633_s28 + $0x1b8] sm:$0xff] %v751_v14  ;;  %816 = vst [vmem:[%s1633_s28 + $0xb0] sm:$0xff] %v586_v17  ;;  %v1122_v19 = vpop.f32.mrb[24].mxu0 }
 0x130   : > { %848 = vst [vmem:[%s1633_s28 + $0x1b0] sm:$0xff] %v746_v18  ;;  %v1170_v20 = vpop.f32.mrb[24].mxu1  ;;  %v601_v21 = vadd.f32 %v1122_v19, %v1626_v11  ;;  %v595_v23 = vpop.f32.mrb[25].mxu0 }
 0x131   : > { %v761_v22 = vadd.f32 %v1170_v20, %v1626_v11  ;;  %v755_v24 = vpop.f32.mrb[25].mxu1  ;;  %v596_v25 = vadd.f32 %v1626_v11, %v595_v23 }
 0x132   : > { %v756_v26 = vadd.f32 %v1626_v11, %v755_v24  ;;  %819 = vst [vmem:[%s1633_s28 + $0xc8] sm:$0xff] %v601_v21 }
 0x133   : > { %851 = vst [vmem:[%s1633_s28 + $0x1c8] sm:$0xff] %v761_v22  ;;  %818 = vst [vmem:[%s1633_s28 + $0xc0] sm:$0xff] %v596_v25  ;;  %v1125_v27 = vpop.f32.mrb[26].mxu0 }
 0x134   : > { %850 = vst [vmem:[%s1633_s28 + $0x1c0] sm:$0xff] %v756_v26  ;;  %v1173_v28 = vpop.f32.mrb[26].mxu1  ;;  %v611_v29 = vadd.f32 %v1125_v27, %v1626_v11  ;;  %v605_v31 = vpop.f32.mrb[27].mxu0 }
 0x135   : > { %v771_v30 = vadd.f32 %v1173_v28, %v1626_v11  ;;  %v765_v35 = vpop.f32.mrb[27].mxu1  ;;  %v606_v36 = vadd.f32 %v1626_v11, %v605_v31 }
 0x136   : > { %v766_v37 = vadd.f32 %v1626_v11, %v765_v35  ;;  %821 = vst [vmem:[%s1633_s28 + $0xd8] sm:$0xff] %v611_v29 }
 0x137   : > { %853 = vst [vmem:[%s1633_s28 + $0x1d8] sm:$0xff] %v771_v30  ;;  %820 = vst [vmem:[%s1633_s28 + $0xd0] sm:$0xff] %v606_v36  ;;  %v1128_v41 = vpop.f32.mrb[28].mxu0 }
 0x138   : > { %852 = vst [vmem:[%s1633_s28 + $0x1d0] sm:$0xff] %v766_v37  ;;  %v1176_v42 = vpop.f32.mrb[28].mxu1  ;;  %v621_v43 = vadd.f32 %v1128_v41, %v1626_v11  ;;  %v615_v48 = vpop.f32.mrb[29].mxu0 }
 0x139   : > { %v781_v47 = vadd.f32 %v1176_v42, %v1626_v11  ;;  %v775_v49 = vpop.f32.mrb[29].mxu1  ;;  %v616_v50 = vadd.f32 %v1626_v11, %v615_v48 }
 0x13a   : > { %v776_v51 = vadd.f32 %v1626_v11, %v775_v49  ;;  %823 = vst [vmem:[%s1633_s28 + $0xe8] sm:$0xff] %v621_v43 }
 0x13b   : > { %855 = vst [vmem:[%s1633_s28 + $0x1e8] sm:$0xff] %v781_v47  ;;  %822 = vst [vmem:[%s1633_s28 + $0xe0] sm:$0xff] %v616_v50  ;;  %v1131_v55 = vpop.f32.mrb[30].mxu0 }
 0x13c   : > { %854 = vst [vmem:[%s1633_s28 + $0x1e0] sm:$0xff] %v776_v51  ;;  %v1179_v56 = vpop.f32.mrb[30].mxu1  ;;  %v631_v57 = vadd.f32 %v1131_v55, %v1626_v11  ;;  %v625_v62 = vpop.f32.mrb[31].mxu0 }
 0x13d   : > { %v791_v61 = vadd.f32 %v1179_v56, %v1626_v11  ;;  %v785_v63 = vpop.f32.mrb[31].mxu1  ;;  %v626_v32 = vadd.f32 %v1626_v11, %v625_v62 }
 0x13e   : > { %v786_v33 = vadd.f32 %v1626_v11, %v785_v63  ;;  %825 = vst [vmem:[%s1633_s28 + $0xf8] sm:$0xff] %v631_v57 }
 0x13f   : > { %857 = vst [vmem:[%s1633_s28 + $0x1f8] sm:$0xff] %v791_v61  ;;  %824 = vst [vmem:[%s1633_s28 + $0xf0] sm:$0xff] %v626_v32 }
 0x140   : > { %856 = vst [vmem:[%s1633_s28 + $0x1f0] sm:$0xff] %v786_v33 }
 0x141 PF: > { %s14_s19 = sadd.s32 1, %s1306_s19   ;;  %s1783_s15 = smov %s1298_s17 }
 0x142   : > { %p11_p7 = scmp.ge.s32.totalorder %s14_s19, 6   ;;  %s1784_s16 = smov %s1302_s18 }
 0x143   : > { %s1785_s17 = smov %s1788_s20  ;;  %s1786_s18 = smov %s1792_s21 }
 0x144   :  { %13 = sbr.rel (!%p11_p7) target bundleno = 3 (0x3), region = 69 }

</bundles_post_ra>
